<compile_context>
chip_gen: v7x
topology: tpu7x:2x2x1
jax: 0.10.0
libtpu: 0.0.40
codegen_flags: <defaults>
</compile_context>

<pallas_src>
import jax
import jax.numpy as jnp
from jax.experimental import pallas as pl
from jax.experimental.pallas import tpu as pltpu

INPUT_DIM = 200
IN_PAD = 256          # 200 -> 256 (lane-aligned contraction dim)
HIDDEN = (1024, 512, 128)
NUM_CLASSES = 39
OUT_PAD = 128         # 39 -> 128 (lane-dense output stores)
BN_EPS = 1e-5
LEAKY_SLOPE = 0.01    # nn.LeakyReLU default negative_slope

# Whether to attempt single-buffered resident params (falls back automatically).
_SINGLE_BUFFER_RESIDENTS = hasattr(pl, "Buffered")


# --------------------------------------------------------------------------
# Kernel
# --------------------------------------------------------------------------
def make_classifier_kernel(elementwise_bf16):
    """Build the kernel; `elementwise_bf16` picks the post-activation dtype
    (bf16 on v6e/v7x which have a bf16 VPU, f32 on v5e and older)."""
    act_dtype = jnp.bfloat16 if elementwise_bf16 else jnp.float32

    def classifier_kernel(x_ref,
                          w1_ref, b1_ref, t1_ref,
                          w2_ref, b2_ref, t2_ref,
                          w3_ref, b3_ref, t3_ref,
                          w4_ref, b4_ref,
                          o_ref):
        """One batch tile through the whole MLP. Weights are VMEM-resident bf16,
        BN scale is pre-folded into (W, b); BN shift `t` is added after LeakyReLU."""

        def hidden_block(h, w_ref, b_ref, t_ref):
            # Linear: bf16 inputs on the MXU, f32 accumulate, f32 bias add.
            y = jnp.dot(h.astype(jnp.bfloat16), w_ref[...],
                        preferred_element_type=jnp.float32) + b_ref[...]
            # LeakyReLU as a single max (valid because 0 < slope < 1).
            y = jnp.maximum(y, LEAKY_SLOPE * y)
            # BatchNorm1d eval-mode shift (scale folded into W, b);
            # Dropout(p=0.2) -> identity in eval mode.
            # bf16 add on v6e/v7x halves vreg / spill traffic of the wide
            # intermediates; f32 on v5e.
            return y.astype(act_dtype) + t_ref[...].astype(act_dtype)

        h = x_ref[...]                       # bf16 input tile, no cast needed
        h = hidden_block(h, w1_ref, b1_ref, t1_ref)
        h = hidden_block(h, w2_ref, b2_ref, t2_ref)
        h = hidden_block(h, w3_ref, b3_ref, t3_ref)
        # Final Linear(128, 128-padded)
        o_ref[...] = (jnp.dot(h.astype(jnp.bfloat16), w4_ref[...],
                              preferred_element_type=jnp.float32) + b4_ref[...])

    return classifier_kernel


# --------------------------------------------------------------------------
# Parameter construction / preparation
# --------------------------------------------------------------------------
def init_params(key):
    """PyTorch-equivalent params: Linear weights stored transposed (in, out)."""
    dims = (INPUT_DIM,) + HIDDEN + (NUM_CLASSES,)
    params = []
    for i in range(4):
        fan_in, fan_out = dims[i], dims[i + 1]
        key, kw, kb = jax.random.split(key, 3)
        bound = 1.0 / jnp.sqrt(fan_in)
        w = jax.random.uniform(kw, (fan_in, fan_out), jnp.float32, -bound, bound)
        b = jax.random.uniform(kb, (1, fan_out), jnp.float32, -bound, bound)
        params.append((w, b))

    bn = []
    for f in HIDDEN:
        gamma = jnp.ones((1, f), jnp.float32)
        beta = jnp.zeros((1, f), jnp.float32)
        running_mean = jnp.zeros((1, f), jnp.float32)
        running_var = jnp.ones((1, f), jnp.float32)
        bn.append((gamma, beta, running_mean, running_var))
    return params, bn


def prepare_params(params, bn):
    """Fold BN scale into the preceding Linear, pad, and cast weights to bf16."""
    hidden = []
    for (w, b), (gamma, beta, mean, var) in zip(params[:3], bn):
        s = gamma / jnp.sqrt(var + BN_EPS)
        # The fold commutes with LeakyReLU only if every channel scale is > 0.
        if not bool(jnp.all(s > 0)):
            # TODO(synk): fall back to applying the BN scale inside the kernel
            # (after LeakyReLU) when any gamma <= 0.
            raise ValueError("BN-scale fold requires gamma/sqrt(var+eps) > 0 per channel")
        t = beta - mean * s
        w_f = (w * s).astype(jnp.bfloat16)          # fold scale per output column
        b_f = (b * s).astype(jnp.float32)
        hidden.append([w_f, b_f, t.astype(jnp.float32)])

    # Pad first-layer input dim 200 -> 256 with zero rows (exact: zero contribution).
    hidden[0][0] = jnp.pad(hidden[0][0], ((0, IN_PAD - INPUT_DIM), (0, 0)))

    w4, b4 = params[3]
    w4p = jnp.pad(w4, ((0, 0), (0, OUT_PAD - NUM_CLASSES))).astype(jnp.bfloat16)
    b4p = jnp.pad(b4, ((0, 0), (0, OUT_PAD - NUM_CLASSES))).astype(jnp.float32)
    return [tuple(h) for h in hidden], (w4p, b4p)


# --------------------------------------------------------------------------
# Tile / dtype selection helpers
# --------------------------------------------------------------------------
def _round_up(n, m):
    return ((n + m - 1) // m) * m


def _device_kind():
    try:
        return jax.devices()[0].device_kind.lower()
    except Exception:
        return ""


def _default_elementwise_bf16():
    kind = _device_kind()
    # v5e and older have no bf16 VALU/EUP -> keep elementwise math in f32 there.
    return not any(tag in kind for tag in ("v2", "v3", "v4", "v5"))


def _select_tile_b(B, kind):
    if B >= 512:
        # Prefer 512 (amortizes per-step overhead) unless it wastes more padding.
        waste512 = pl.cdiv(B, 512) * 512 - B
        waste256 = pl.cdiv(B, 256) * 256 - B
        tile = 512 if waste512 <= waste256 else 256
    elif B >= 256:
        tile = 256
    else:
        tile = max(16, _round_up(B, 16))            # bf16 sublane-pack aligned
    # v7x: 2 TensorCores per chip -> make sure the ("parallel",) batch grid has
    # at least 2 steps so both cores get work.
    if "v7" in kind and B > 16 and pl.cdiv(B, tile) < 2:
        tile = max(16, _round_up((B + 1) // 2, 16))
    return tile


# --------------------------------------------------------------------------
# Wrapper
# --------------------------------------------------------------------------
def classifier_forward(x, prepared, tile_b=None, elementwise_bf16=None):
    global _SINGLE_BUFFER_RESIDENTS

    (w1, b1, t1), (w2, b2, t2), (w3, b3, t3) = prepared[0]
    w4, b4 = prepared[1]

    if elementwise_bf16 is None:
        elementwise_bf16 = _default_elementwise_bf16()

    B = x.shape[0]
    TILE_B = tile_b if tile_b is not None else _select_tile_b(B, _device_kind())
    B_pad = pl.cdiv(B, TILE_B) * TILE_B

    # Stream x in bf16: halves per-tile x DMA + double-buffer VMEM; padded rows/cols
    # are zeros (exact: zero contribution to the contraction).
    x_pad = jnp.pad(x.astype(jnp.bfloat16),
                    ((0, B_pad - B), (0, IN_PAD - INPUT_DIM)))

    params_flat = (w1, b1, t1, w2, b2, t2, w3, b3, t3, w4, b4)

    flops = 2 * B_pad * (IN_PAD * HIDDEN[0] + HIDDEN[0] * HIDDEN[1]
                         + HIDDEN[1] * HIDDEN[2] + HIDDEN[2] * OUT_PAD)
    bytes_accessed = int(x_pad.nbytes) + B_pad * OUT_PAD * 4 \
        + sum(int(p.nbytes) for p in params_flat)
    cost = pl.CostEstimate(flops=int(flops), transcendentals=0,
                           bytes_accessed=int(bytes_accessed))

    kernel = make_classifier_kernel(elementwise_bf16)

    def run(single_buffer_residents):
        def resident(a):
            # Full-array block, constant index_map -> loaded once, VMEM-resident.
            if single_buffer_residents:
                # Constant blocks are DMA'd once; single-buffering avoids wasting
                # a second VMEM copy on them.
                return pl.BlockSpec(a.shape, lambda i: (0, 0),
                                    pipeline_mode=pl.Buffered(1))
            return pl.BlockSpec(a.shape, lambda i: (0, 0))

        in_specs = [
            pl.BlockSpec((TILE_B, IN_PAD), lambda i: (i, 0)),   # x: tiled over batch
            resident(w1), resident(b1), resident(t1),
            resident(w2), resident(b2), resident(t2),
            resident(w3), resident(b3), resident(t3),
            resident(w4), resident(b4),
        ]
        out_spec = pl.BlockSpec((TILE_B, OUT_PAD), lambda i: (i, 0))

        return pl.pallas_call(
            kernel,
            out_shape=jax.ShapeDtypeStruct((B_pad, OUT_PAD), jnp.float32),
            grid=(B_pad // TILE_B,),
            in_specs=in_specs,
            out_specs=out_spec,
            compiler_params=pltpu.CompilerParams(
                dimension_semantics=("parallel",),
                vmem_limit_bytes=24 << 20,
            ),
            cost_estimate=cost,
        )(x_pad, *params_flat)

    if _SINGLE_BUFFER_RESIDENTS:
        try:
            out = run(True)
        except Exception:
            # pl.Buffered(1) not supported by this jax build -> default buffering.
            _SINGLE_BUFFER_RESIDENTS = False
            out = run(False)
    else:
        out = run(False)

    return out[:B, :NUM_CLASSES]


# --------------------------------------------------------------------------
# References
# --------------------------------------------------------------------------
def reference_bf16(x, prepared, elementwise_bf16):
    """Pure-JAX mirror of the kernel arithmetic (same folded bf16 params)."""
    act_dtype = jnp.bfloat16 if elementwise_bf16 else jnp.float32
    h = jnp.pad(x.astype(jnp.bfloat16), ((0, 0), (0, IN_PAD - INPUT_DIM)))
    for w, b, t in prepared[0]:
        y = jnp.dot(h.astype(jnp.bfloat16), w,
                    preferred_element_type=jnp.float32) + b
        y = jnp.maximum(y, LEAKY_SLOPE * y)
        h = y.astype(act_dtype) + t.astype(act_dtype)
    w4, b4 = prepared[1]
    out = jnp.dot(h.astype(jnp.bfloat16), w4,
                  preferred_element_type=jnp.float32) + b4
    return out[:, :NUM_CLASSES]


def reference_f32(x, params, bn):
    """Exact f32 eval-mode forward of the PyTorch module (no folding/padding)."""
    h = x
    for (w, b), (gamma, beta, mean, var) in zip(params[:3], bn):
        h = h @ w + b
        h = jnp.where(h >= 0, h, LEAKY_SLOPE * h)
        h = (h - mean) / jnp.sqrt(var + BN_EPS) * gamma + beta
    w4, b4 = params[3]
    return h @ w4 + b4


# --------------------------------------------------------------------------
if __name__ == "__main__":
    key = jax.random.PRNGKey(0)
    kx1, kx2, kp = jax.random.split(key, 3)

    params, bn = init_params(kp)
    prepared = prepare_params(params, bn)
    ew_bf16 = _default_elementwise_bf16()

    # Small batch: single-tile path.
    B = 8
    x = jax.random.normal(kx1, (B, INPUT_DIM), jnp.float32)
    out = jax.block_until_ready(classifier_forward(x, prepared,
                                                   elementwise_bf16=ew_bf16))
    assert out.shape == (B, NUM_CLASSES)
    assert jnp.allclose(out, reference_bf16(x, prepared, ew_bf16),
                        atol=1e-2, rtol=1e-2)
    assert jnp.allclose(out, reference_f32(x, params, bn), atol=5e-2, rtol=5e-2)

    # Larger (non-multiple) batch: exercises the batch grid + padding path.
    B2 = 300
    x2 = jax.random.normal(kx2, (B2, INPUT_DIM), jnp.float32)
    out2 = jax.block_until_ready(classifier_forward(x2, prepared,
                                                    elementwise_bf16=ew_bf16))
    assert out2.shape == (B2, NUM_CLASSES)
    assert jnp.allclose(out2, reference_bf16(x2, prepared, ew_bf16),
                        atol=1e-2, rtol=1e-2)

    print("KERNEL_OK")
</pallas_src>

<mosaic_0001>
module attributes {stable_mosaic.version = 11 : i64} {
  func.func @classifier_kernel(%arg0: i32, %arg1: memref<16x256xbf16, #tpu.memory_space<vmem>>, %arg2: memref<256x1024xbf16, #tpu.memory_space<vmem>>, %arg3: memref<1x1024xf32, #tpu.memory_space<vmem>>, %arg4: memref<1x1024xf32, #tpu.memory_space<vmem>>, %arg5: memref<1024x512xbf16, #tpu.memory_space<vmem>>, %arg6: memref<1x512xf32, #tpu.memory_space<vmem>>, %arg7: memref<1x512xf32, #tpu.memory_space<vmem>>, %arg8: memref<512x128xbf16, #tpu.memory_space<vmem>>, %arg9: memref<1x128xf32, #tpu.memory_space<vmem>>, %arg10: memref<1x128xf32, #tpu.memory_space<vmem>>, %arg11: memref<128x128xbf16, #tpu.memory_space<vmem>>, %arg12: memref<1x128xf32, #tpu.memory_space<vmem>>, %arg13: memref<16x128xf32, #tpu.memory_space<vmem>>) attributes {dimension_semantics = [#tpu.dimension_semantics<parallel>], iteration_bounds = array<i64: 1>, scalar_prefetch = 0 : i64, scratch_operands = 0 : i64, tpu.core_type = #tpu.core_type<tc>, window_params = [{transform_indices = @transform_0, window_bounds = array<i64: 16, 256>}, {pipeline_mode = #tpu.pipeline_mode<synchronous>, transform_indices = @transform_1, window_bounds = array<i64: 256, 1024>}, {pipeline_mode = #tpu.pipeline_mode<synchronous>, transform_indices = @transform_2, window_bounds = array<i64: 1, 1024>}, {pipeline_mode = #tpu.pipeline_mode<synchronous>, transform_indices = @transform_3, window_bounds = array<i64: 1, 1024>}, {pipeline_mode = #tpu.pipeline_mode<synchronous>, transform_indices = @transform_4, window_bounds = array<i64: 1024, 512>}, {pipeline_mode = #tpu.pipeline_mode<synchronous>, transform_indices = @transform_5, window_bounds = array<i64: 1, 512>}, {pipeline_mode = #tpu.pipeline_mode<synchronous>, transform_indices = @transform_6, window_bounds = array<i64: 1, 512>}, {pipeline_mode = #tpu.pipeline_mode<synchronous>, transform_indices = @transform_7, window_bounds = array<i64: 512, 128>}, {pipeline_mode = #tpu.pipeline_mode<synchronous>, transform_indices = @transform_8, window_bounds = array<i64: 1, 128>}, {pipeline_mode = #tpu.pipeline_mode<synchronous>, transform_indices = @transform_9, window_bounds = array<i64: 1, 128>}, {pipeline_mode = #tpu.pipeline_mode<synchronous>, transform_indices = @transform_10, window_bounds = array<i64: 128, 128>}, {pipeline_mode = #tpu.pipeline_mode<synchronous>, transform_indices = @transform_11, window_bounds = array<i64: 1, 128>}, {transform_indices = @transform_12, window_bounds = array<i64: 16, 128>}]} {
    %c0 = arith.constant 0 : index
    %c0_0 = arith.constant 0 : index
    %0 = vector.load %arg1[%c0, %c0_0] : memref<16x256xbf16, #tpu.memory_space<vmem>>, vector<16x256xbf16>
    %c0_1 = arith.constant 0 : index
    %c0_2 = arith.constant 0 : index
    %1 = vector.load %arg2[%c0_1, %c0_2] : memref<256x1024xbf16, #tpu.memory_space<vmem>>, vector<256x1024xbf16>
    %cst = arith.constant dense<0.000000e+00> : vector<16x1024xf32>
    %2 = tpu.matmul %0, %1, %cst {dimension_numbers = #tpu.dot_dimension_numbers<[1], [0], [0], [1], [0, 0, 1, 1], [], []>} : vector<16x256xbf16>, vector<256x1024xbf16>, vector<16x1024xf32> -> vector<16x1024xf32>
    %c0_3 = arith.constant 0 : index
    %c0_4 = arith.constant 0 : index
    %3 = vector.load %arg3[%c0_3, %c0_4] : memref<1x1024xf32, #tpu.memory_space<vmem>>, vector<1x1024xf32>
    %4 = vector.broadcast %3 : vector<1x1024xf32> to vector<16x1024xf32>
    %5 = arith.addf %2, %4 : vector<16x1024xf32>
    %cst_5 = arith.constant 0.00999999977 : f32
    %6 = vector.broadcast %cst_5 : f32 to vector<16x1024xf32>
    %7 = arith.mulf %6, %5 : vector<16x1024xf32>
    %8 = arith.maximumf %5, %7 : vector<16x1024xf32>
    %9 = arith.truncf %8 : vector<16x1024xf32> to vector<16x1024xbf16>
    %c0_6 = arith.constant 0 : index
    %c0_7 = arith.constant 0 : index
    %10 = vector.load %arg4[%c0_6, %c0_7] : memref<1x1024xf32, #tpu.memory_space<vmem>>, vector<1x1024xf32>
    %11 = arith.truncf %10 : vector<1x1024xf32> to vector<1x1024xbf16>
    %12 = vector.broadcast %11 : vector<1x1024xbf16> to vector<16x1024xbf16>
    %13 = arith.addf %9, %12 : vector<16x1024xbf16>
    %c0_8 = arith.constant 0 : index
    %c0_9 = arith.constant 0 : index
    %14 = vector.load %arg5[%c0_8, %c0_9] : memref<1024x512xbf16, #tpu.memory_space<vmem>>, vector<1024x512xbf16>
    %cst_10 = arith.constant dense<0.000000e+00> : vector<16x512xf32>
    %15 = tpu.matmul %13, %14, %cst_10 {dimension_numbers = #tpu.dot_dimension_numbers<[1], [0], [0], [1], [0, 0, 1, 1], [], []>} : vector<16x1024xbf16>, vector<1024x512xbf16>, vector<16x512xf32> -> vector<16x512xf32>
    %c0_11 = arith.constant 0 : index
    %c0_12 = arith.constant 0 : index
    %16 = vector.load %arg6[%c0_11, %c0_12] : memref<1x512xf32, #tpu.memory_space<vmem>>, vector<1x512xf32>
    %17 = vector.broadcast %16 : vector<1x512xf32> to vector<16x512xf32>
    %18 = arith.addf %15, %17 : vector<16x512xf32>
    %cst_13 = arith.constant 0.00999999977 : f32
    %19 = vector.broadcast %cst_13 : f32 to vector<16x512xf32>
    %20 = arith.mulf %19, %18 : vector<16x512xf32>
    %21 = arith.maximumf %18, %20 : vector<16x512xf32>
    %22 = arith.truncf %21 : vector<16x512xf32> to vector<16x512xbf16>
    %c0_14 = arith.constant 0 : index
    %c0_15 = arith.constant 0 : index
    %23 = vector.load %arg7[%c0_14, %c0_15] : memref<1x512xf32, #tpu.memory_space<vmem>>, vector<1x512xf32>
    %24 = arith.truncf %23 : vector<1x512xf32> to vector<1x512xbf16>
    %25 = vector.broadcast %24 : vector<1x512xbf16> to vector<16x512xbf16>
    %26 = arith.addf %22, %25 : vector<16x512xbf16>
    %c0_16 = arith.constant 0 : index
    %c0_17 = arith.constant 0 : index
    %27 = vector.load %arg8[%c0_16, %c0_17] : memref<512x128xbf16, #tpu.memory_space<vmem>>, vector<512x128xbf16>
    %cst_18 = arith.constant dense<0.000000e+00> : vector<16x128xf32>
    %28 = tpu.matmul %26, %27, %cst_18 {dimension_numbers = #tpu.dot_dimension_numbers<[1], [0], [0], [1], [0, 0, 1, 1], [], []>} : vector<16x512xbf16>, vector<512x128xbf16>, vector<16x128xf32> -> vector<16x128xf32>
    %c0_19 = arith.constant 0 : index
    %c0_20 = arith.constant 0 : index
    %29 = vector.load %arg9[%c0_19, %c0_20] : memref<1x128xf32, #tpu.memory_space<vmem>>, vector<1x128xf32>
    %30 = vector.broadcast %29 : vector<1x128xf32> to vector<16x128xf32>
    %31 = arith.addf %28, %30 : vector<16x128xf32>
    %cst_21 = arith.constant 0.00999999977 : f32
    %32 = vector.broadcast %cst_21 : f32 to vector<16x128xf32>
    %33 = arith.mulf %32, %31 : vector<16x128xf32>
    %34 = arith.maximumf %31, %33 : vector<16x128xf32>
    %35 = arith.truncf %34 : vector<16x128xf32> to vector<16x128xbf16>
    %c0_22 = arith.constant 0 : index
    %c0_23 = arith.constant 0 : index
    %36 = vector.load %arg10[%c0_22, %c0_23] : memref<1x128xf32, #tpu.memory_space<vmem>>, vector<1x128xf32>
    %37 = arith.truncf %36 : vector<1x128xf32> to vector<1x128xbf16>
    %38 = vector.broadcast %37 : vector<1x128xbf16> to vector<16x128xbf16>
    %39 = arith.addf %35, %38 : vector<16x128xbf16>
    %c0_24 = arith.constant 0 : index
    %c0_25 = arith.constant 0 : index
    %40 = vector.load %arg11[%c0_24, %c0_25] : memref<128x128xbf16, #tpu.memory_space<vmem>>, vector<128x128xbf16>
    %cst_26 = arith.constant dense<0.000000e+00> : vector<16x128xf32>
    %41 = tpu.matmul %39, %40, %cst_26 {dimension_numbers = #tpu.dot_dimension_numbers<[1], [0], [0], [1], [0, 0, 1, 1], [], []>} : vector<16x128xbf16>, vector<128x128xbf16>, vector<16x128xf32> -> vector<16x128xf32>
    %c0_27 = arith.constant 0 : index
    %c0_28 = arith.constant 0 : index
    %42 = vector.load %arg12[%c0_27, %c0_28] : memref<1x128xf32, #tpu.memory_space<vmem>>, vector<1x128xf32>
    %43 = vector.broadcast %42 : vector<1x128xf32> to vector<16x128xf32>
    %44 = arith.addf %41, %43 : vector<16x128xf32>
    %c0_29 = arith.constant 0 : index
    %c0_30 = arith.constant 0 : index
    %45 = vector.load %arg13[%c0_29, %c0_30] : memref<16x128xf32, #tpu.memory_space<vmem>>, vector<16x128xf32>
    tpu.vector_store %arg13[%c0_29, %c0_30], %44 {strides = array<i32>} : memref<16x128xf32, #tpu.memory_space<vmem>>, vector<16x128xf32>,
    return
  }
  func.func @transform_0(%arg0: i32) -> (i32, i32) {
    %c0_i32 = arith.constant 0 : i32
    %c0_i32_0 = arith.constant 0 : i32
    return %arg0, %c0_i32 : i32, i32
  }
  func.func @transform_1(%arg0: i32) -> (i32, i32) {
    %c0_i32 = arith.constant 0 : i32
    %c0_i32_0 = arith.constant 0 : i32
    %c0_i32_1 = arith.constant 0 : i32
    return %c0_i32, %c0_i32_0 : i32, i32
  }
  func.func @transform_2(%arg0: i32) -> (i32, i32) {
    %c0_i32 = arith.constant 0 : i32
    %c0_i32_0 = arith.constant 0 : i32
    %c0_i32_1 = arith.constant 0 : i32
    return %c0_i32, %c0_i32_0 : i32, i32
  }
  func.func @transform_3(%arg0: i32) -> (i32, i32) {
    %c0_i32 = arith.constant 0 : i32
    %c0_i32_0 = arith.constant 0 : i32
    %c0_i32_1 = arith.constant 0 : i32
    return %c0_i32, %c0_i32_0 : i32, i32
  }
  func.func @transform_4(%arg0: i32) -> (i32, i32) {
    %c0_i32 = arith.constant 0 : i32
    %c0_i32_0 = arith.constant 0 : i32
    %c0_i32_1 = arith.constant 0 : i32
    return %c0_i32, %c0_i32_0 : i32, i32
  }
  func.func @transform_5(%arg0: i32) -> (i32, i32) {
    %c0_i32 = arith.constant 0 : i32
    %c0_i32_0 = arith.constant 0 : i32
    %c0_i32_1 = arith.constant 0 : i32
    return %c0_i32, %c0_i32_0 : i32, i32
  }
  func.func @transform_6(%arg0: i32) -> (i32, i32) {
    %c0_i32 = arith.constant 0 : i32
    %c0_i32_0 = arith.constant 0 : i32
    %c0_i32_1 = arith.constant 0 : i32
    return %c0_i32, %c0_i32_0 : i32, i32
  }
  func.func @transform_7(%arg0: i32) -> (i32, i32) {
    %c0_i32 = arith.constant 0 : i32
    %c0_i32_0 = arith.constant 0 : i32
    %c0_i32_1 = arith.constant 0 : i32
    return %c0_i32, %c0_i32_0 : i32, i32
  }
  func.func @transform_8(%arg0: i32) -> (i32, i32) {
    %c0_i32 = arith.constant 0 : i32
    %c0_i32_0 = arith.constant 0 : i32
    %c0_i32_1 = arith.constant 0 : i32
    return %c0_i32, %c0_i32_0 : i32, i32
  }
  func.func @transform_9(%arg0: i32) -> (i32, i32) {
    %c0_i32 = arith.constant 0 : i32
    %c0_i32_0 = arith.constant 0 : i32
    %c0_i32_1 = arith.constant 0 : i32
    return %c0_i32, %c0_i32_0 : i32, i32
  }
  func.func @transform_10(%arg0: i32) -> (i32, i32) {
    %c0_i32 = arith.constant 0 : i32
    %c0_i32_0 = arith.constant 0 : i32
    %c0_i32_1 = arith.constant 0 : i32
    return %c0_i32, %c0_i32_0 : i32, i32
  }
  func.func @transform_11(%arg0: i32) -> (i32, i32) {
    %c0_i32 = arith.constant 0 : i32
    %c0_i32_0 = arith.constant 0 : i32
    %c0_i32_1 = arith.constant 0 : i32
    return %c0_i32, %c0_i32_0 : i32, i32
  }
  func.func @transform_12(%arg0: i32) -> (i32, i32) {
    %c0_i32 = arith.constant 0 : i32
    %c0_i32_0 = arith.constant 0 : i32
    return %arg0, %c0_i32 : i32, i32
  }
}

module attributes {stable_mosaic.version = 11 : i64} {
  func.func @classifier_kernel(%arg0: i32, %arg1: memref<16x256xbf16, #tpu.memory_space<vmem>>, %arg2: memref<256x1024xbf16, #tpu.memory_space<vmem>>, %arg3: memref<1x1024xf32, #tpu.memory_space<vmem>>, %arg4: memref<1x1024xf32, #tpu.memory_space<vmem>>, %arg5: memref<1024x512xbf16, #tpu.memory_space<vmem>>, %arg6: memref<1x512xf32, #tpu.memory_space<vmem>>, %arg7: memref<1x512xf32, #tpu.memory_space<vmem>>, %arg8: memref<512x128xbf16, #tpu.memory_space<vmem>>, %arg9: memref<1x128xf32, #tpu.memory_space<vmem>>, %arg10: memref<1x128xf32, #tpu.memory_space<vmem>>, %arg11: memref<128x128xbf16, #tpu.memory_space<vmem>>, %arg12: memref<1x128xf32, #tpu.memory_space<vmem>>, %arg13: memref<16x128xf32, #tpu.memory_space<vmem>>) attributes {dimension_semantics = [#tpu.dimension_semantics<parallel>], iteration_bounds = array<i64: 1>, scalar_prefetch = 0 : i64, scratch_operands = 0 : i64, tpu.core_type = #tpu.core_type<tc>, window_params = [{transform_indices = @transform_0, window_bounds = array<i64: 16, 256>}, {pipeline_mode = #tpu.pipeline_mode<synchronous>, transform_indices = @transform_1, window_bounds = array<i64: 256, 1024>}, {pipeline_mode = #tpu.pipeline_mode<synchronous>, transform_indices = @transform_2, window_bounds = array<i64: 1, 1024>}, {pipeline_mode = #tpu.pipeline_mode<synchronous>, transform_indices = @transform_3, window_bounds = array<i64: 1, 1024>}, {pipeline_mode = #tpu.pipeline_mode<synchronous>, transform_indices = @transform_4, window_bounds = array<i64: 1024, 512>}, {pipeline_mode = #tpu.pipeline_mode<synchronous>, transform_indices = @transform_5, window_bounds = array<i64: 1, 512>}, {pipeline_mode = #tpu.pipeline_mode<synchronous>, transform_indices = @transform_6, window_bounds = array<i64: 1, 512>}, {pipeline_mode = #tpu.pipeline_mode<synchronous>, transform_indices = @transform_7, window_bounds = array<i64: 512, 128>}, {pipeline_mode = #tpu.pipeline_mode<synchronous>, transform_indices = @transform_8, window_bounds = array<i64: 1, 128>}, {pipeline_mode = #tpu.pipeline_mode<synchronous>, transform_indices = @transform_9, window_bounds = array<i64: 1, 128>}, {pipeline_mode = #tpu.pipeline_mode<synchronous>, transform_indices = @transform_10, window_bounds = array<i64: 128, 128>}, {pipeline_mode = #tpu.pipeline_mode<synchronous>, transform_indices = @transform_11, window_bounds = array<i64: 1, 128>}, {transform_indices = @transform_12, window_bounds = array<i64: 16, 128>}]} {
    %c0 = arith.constant 0 : index
    %c0_0 = arith.constant 0 : index
    %0 = vector.load %arg1[%c0, %c0_0] : memref<16x256xbf16, #tpu.memory_space<vmem>>, vector<16x256xbf16>
    %c0_1 = arith.constant 0 : index
    %c0_2 = arith.constant 0 : index
    %1 = vector.load %arg2[%c0_1, %c0_2] : memref<256x1024xbf16, #tpu.memory_space<vmem>>, vector<256x1024xbf16>
    %cst = arith.constant dense<0.000000e+00> : vector<16x1024xf32>
    %2 = tpu.matmul %0, %1, %cst {dimension_numbers = #tpu.dot_dimension_numbers<[1], [0], [0], [1], [0, 0, 1, 1], [], []>} : vector<16x256xbf16>, vector<256x1024xbf16>, vector<16x1024xf32> -> vector<16x1024xf32>
    %c0_3 = arith.constant 0 : index
    %c0_4 = arith.constant 0 : index
    %3 = vector.load %arg3[%c0_3, %c0_4] : memref<1x1024xf32, #tpu.memory_space<vmem>>, vector<1x1024xf32>
    %4 = vector.broadcast %3 : vector<1x1024xf32> to vector<16x1024xf32>
    %5 = arith.addf %2, %4 : vector<16x1024xf32>
    %cst_5 = arith.constant 0.00999999977 : f32
    %6 = vector.broadcast %cst_5 : f32 to vector<16x1024xf32>
    %7 = arith.mulf %6, %5 : vector<16x1024xf32>
    %8 = arith.maximumf %5, %7 : vector<16x1024xf32>
    %9 = arith.truncf %8 : vector<16x1024xf32> to vector<16x1024xbf16>
    %c0_6 = arith.constant 0 : index
    %c0_7 = arith.constant 0 : index
    %10 = vector.load %arg4[%c0_6, %c0_7] : memref<1x1024xf32, #tpu.memory_space<vmem>>, vector<1x1024xf32>
    %11 = arith.truncf %10 : vector<1x1024xf32> to vector<1x1024xbf16>
    %12 = vector.broadcast %11 : vector<1x1024xbf16> to vector<16x1024xbf16>
    %13 = arith.addf %9, %12 : vector<16x1024xbf16>
    %c0_8 = arith.constant 0 : index
    %c0_9 = arith.constant 0 : index
    %14 = vector.load %arg5[%c0_8, %c0_9] : memref<1024x512xbf16, #tpu.memory_space<vmem>>, vector<1024x512xbf16>
    %cst_10 = arith.constant dense<0.000000e+00> : vector<16x512xf32>
    %15 = tpu.matmul %13, %14, %cst_10 {dimension_numbers = #tpu.dot_dimension_numbers<[1], [0], [0], [1], [0, 0, 1, 1], [], []>} : vector<16x1024xbf16>, vector<1024x512xbf16>, vector<16x512xf32> -> vector<16x512xf32>
    %c0_11 = arith.constant 0 : index
    %c0_12 = arith.constant 0 : index
    %16 = vector.load %arg6[%c0_11, %c0_12] : memref<1x512xf32, #tpu.memory_space<vmem>>, vector<1x512xf32>
    %17 = vector.broadcast %16 : vector<1x512xf32> to vector<16x512xf32>
    %18 = arith.addf %15, %17 : vector<16x512xf32>
    %cst_13 = arith.constant 0.00999999977 : f32
    %19 = vector.broadcast %cst_13 : f32 to vector<16x512xf32>
    %20 = arith.mulf %19, %18 : vector<16x512xf32>
    %21 = arith.maximumf %18, %20 : vector<16x512xf32>
    %22 = arith.truncf %21 : vector<16x512xf32> to vector<16x512xbf16>
    %c0_14 = arith.constant 0 : index
    %c0_15 = arith.constant 0 : index
    %23 = vector.load %arg7[%c0_14, %c0_15] : memref<1x512xf32, #tpu.memory_space<vmem>>, vector<1x512xf32>
    %24 = arith.truncf %23 : vector<1x512xf32> to vector<1x512xbf16>
    %25 = vector.broadcast %24 : vector<1x512xbf16> to vector<16x512xbf16>
    %26 = arith.addf %22, %25 : vector<16x512xbf16>
    %c0_16 = arith.constant 0 : index
    %c0_17 = arith.constant 0 : index
    %27 = vector.load %arg8[%c0_16, %c0_17] : memref<512x128xbf16, #tpu.memory_space<vmem>>, vector<512x128xbf16>
    %cst_18 = arith.constant dense<0.000000e+00> : vector<16x128xf32>
    %28 = tpu.matmul %26, %27, %cst_18 {dimension_numbers = #tpu.dot_dimension_numbers<[1], [0], [0], [1], [0, 0, 1, 1], [], []>} : vector<16x512xbf16>, vector<512x128xbf16>, vector<16x128xf32> -> vector<16x128xf32>
    %c0_19 = arith.constant 0 : index
    %c0_20 = arith.constant 0 : index
    %29 = vector.load %arg9[%c0_19, %c0_20] : memref<1x128xf32, #tpu.memory_space<vmem>>, vector<1x128xf32>
    %30 = vector.broadcast %29 : vector<1x128xf32> to vector<16x128xf32>
    %31 = arith.addf %28, %30 : vector<16x128xf32>
    %cst_21 = arith.constant 0.00999999977 : f32
    %32 = vector.broadcast %cst_21 : f32 to vector<16x128xf32>
    %33 = arith.mulf %32, %31 : vector<16x128xf32>
    %34 = arith.maximumf %31, %33 : vector<16x128xf32>
    %35 = arith.truncf %34 : vector<16x128xf32> to vector<16x128xbf16>
    %c0_22 = arith.constant 0 : index
    %c0_23 = arith.constant 0 : index
    %36 = vector.load %arg10[%c0_22, %c0_23] : memref<1x128xf32, #tpu.memory_space<vmem>>, vector<1x128xf32>
    %37 = arith.truncf %36 : vector<1x128xf32> to vector<1x128xbf16>
    %38 = vector.broadcast %37 : vector<1x128xbf16> to vector<16x128xbf16>
    %39 = arith.addf %35, %38 : vector<16x128xbf16>
    %c0_24 = arith.constant 0 : index
    %c0_25 = arith.constant 0 : index
    %40 = vector.load %arg11[%c0_24, %c0_25] : memref<128x128xbf16, #tpu.memory_space<vmem>>, vector<128x128xbf16>
    %cst_26 = arith.constant dense<0.000000e+00> : vector<16x128xf32>
    %41 = tpu.matmul %39, %40, %cst_26 {dimension_numbers = #tpu.dot_dimension_numbers<[1], [0], [0], [1], [0, 0, 1, 1], [], []>} : vector<16x128xbf16>, vector<128x128xbf16>, vector<16x128xf32> -> vector<16x128xf32>
    %c0_27 = arith.constant 0 : index
    %c0_28 = arith.constant 0 : index
    %42 = vector.load %arg12[%c0_27, %c0_28] : memref<1x128xf32, #tpu.memory_space<vmem>>, vector<1x128xf32>
    %43 = vector.broadcast %42 : vector<1x128xf32> to vector<16x128xf32>
    %44 = arith.addf %41, %43 : vector<16x128xf32>
    %c0_29 = arith.constant 0 : index
    %c0_30 = arith.constant 0 : index
    %45 = vector.load %arg13[%c0_29, %c0_30] : memref<16x128xf32, #tpu.memory_space<vmem>>, vector<16x128xf32>
    tpu.vector_store %arg13[%c0_29, %c0_30], %44 {strides = array<i32>} : memref<16x128xf32, #tpu.memory_space<vmem>>, vector<16x128xf32>,
    return
  }
  func.func @transform_0(%arg0: i32) -> (i32, i32) {
    %c0_i32 = arith.constant 0 : i32
    %c0_i32_0 = arith.constant 0 : i32
    return %arg0, %c0_i32 : i32, i32
  }
  func.func @transform_1(%arg0: i32) -> (i32, i32) {
    %c0_i32 = arith.constant 0 : i32
    %c0_i32_0 = arith.constant 0 : i32
    %c0_i32_1 = arith.constant 0 : i32
    return %c0_i32, %c0_i32_0 : i32, i32
  }
  func.func @transform_2(%arg0: i32) -> (i32, i32) {
    %c0_i32 = arith.constant 0 : i32
    %c0_i32_0 = arith.constant 0 : i32
    %c0_i32_1 = arith.constant 0 : i32
    return %c0_i32, %c0_i32_0 : i32, i32
  }
  func.func @transform_3(%arg0: i32) -> (i32, i32) {
    %c0_i32 = arith.constant 0 : i32
    %c0_i32_0 = arith.constant 0 : i32
    %c0_i32_1 = arith.constant 0 : i32
    return %c0_i32, %c0_i32_0 : i32, i32
  }
  func.func @transform_4(%arg0: i32) -> (i32, i32) {
    %c0_i32 = arith.constant 0 : i32
    %c0_i32_0 = arith.constant 0 : i32
    %c0_i32_1 = arith.constant 0 : i32
    return %c0_i32, %c0_i32_0 : i32, i32
  }
  func.func @transform_5(%arg0: i32) -> (i32, i32) {
    %c0_i32 = arith.constant 0 : i32
    %c0_i32_0 = arith.constant 0 : i32
    %c0_i32_1 = arith.constant 0 : i32
    return %c0_i32, %c0_i32_0 : i32, i32
  }
  func.func @transform_6(%arg0: i32) -> (i32, i32) {
    %c0_i32 = arith.constant 0 : i32
    %c0_i32_0 = arith.constant 0 : i32
    %c0_i32_1 = arith.constant 0 : i32
    return %c0_i32, %c0_i32_0 : i32, i32
  }
  func.func @transform_7(%arg0: i32) -> (i32, i32) {
    %c0_i32 = arith.constant 0 : i32
    %c0_i32_0 = arith.constant 0 : i32
    %c0_i32_1 = arith.constant 0 : i32
    return %c0_i32, %c0_i32_0 : i32, i32
  }
  func.func @transform_8(%arg0: i32) -> (i32, i32) {
    %c0_i32 = arith.constant 0 : i32
    %c0_i32_0 = arith.constant 0 : i32
    %c0_i32_1 = arith.constant 0 : i32
    return %c0_i32, %c0_i32_0 : i32, i32
  }
  func.func @transform_9(%arg0: i32) -> (i32, i32) {
    %c0_i32 = arith.constant 0 : i32
    %c0_i32_0 = arith.constant 0 : i32
    %c0_i32_1 = arith.constant 0 : i32
    return %c0_i32, %c0_i32_0 : i32, i32
  }
  func.func @transform_10(%arg0: i32) -> (i32, i32) {
    %c0_i32 = arith.constant 0 : i32
    %c0_i32_0 = arith.constant 0 : i32
    %c0_i32_1 = arith.constant 0 : i32
    return %c0_i32, %c0_i32_0 : i32, i32
  }
  func.func @transform_11(%arg0: i32) -> (i32, i32) {
    %c0_i32 = arith.constant 0 : i32
    %c0_i32_0 = arith.constant 0 : i32
    %c0_i32_1 = arith.constant 0 : i32
    return %c0_i32, %c0_i32_0 : i32, i32
  }
  func.func @transform_12(%arg0: i32) -> (i32, i32) {
    %c0_i32 = arith.constant 0 : i32
    %c0_i32_0 = arith.constant 0 : i32
    return %arg0, %c0_i32 : i32, i32
  }
}

</mosaic_0001>

<bundles_post_ra>
// kernel: tpu_custom_call.1
= control target key start
LH: loop header
LB: loop body
LE: loop exit
PB: predicated region body
PF: predicated region fallthrough
CT: control target
= control target key end

     0   :  { %17 = vsyncpa [#allocation3], 0  ;;  %s5188_s0 = inlined_call_operand.hbm [shape: bf16[16,256], index: 0, kind: input, shape index: {}]   ;;  %s5189_s1 = inlined_call_operand.hbm [shape: bf16[256,1024], index: 1, kind: input, shape index: {}]   ;;  %s5190_s2 = inlined_call_operand.hbm [shape: f32[1,1024], index: 2, kind: input, shape index: {}]   ;;  %s5191_s3 = inlined_call_operand.vmem [shape: f32[1,1024], index: 3, kind: input, shape index: {}]   ;;  %s5192_s4 = inlined_call_operand.hbm [shape: bf16[1024,512], index: 4, kind: input, shape index: {}]   ;;  %s5193_s5 = inlined_call_operand.vmem [shape: f32[1,512], index: 5, kind: input, shape index: {}]   ;;  %s5194_s6 = inlined_call_operand.vmem [shape: f32[1,512], index: 6, kind: input, shape index: {}]   ;;  %s5195_s7 = inlined_call_operand.hbm [shape: bf16[512,128], index: 7, kind: input, shape index: {}]   ;;  %s5196_s8 = inlined_call_operand.vmem [shape: f32[1,128], index: 8, kind: input, shape index: {}]   ;;  %s5197_s9 = inlined_call_operand.vmem [shape: f32[1,128], index: 9, kind: input, shape index: {}]   ;;  %s5198_s10 = inlined_call_operand.hbm [shape: bf16[128,128], index: 10, kind: input, shape index: {}]   ;;  %s5199_s11 = inlined_call_operand.vmem [shape: f32[1,128], index: 11, kind: input, shape index: {}]   ;;  %s5200_s12 = inlined_call_operand.hbm [shape: f32[16,128], index: 12, kind: output, shape index: {}]  }
   0x1   :  { %18 = vsyncpa [#allocation6], 0 }
   0x2   :  { %19 = vsyncpa [#allocation9], 0 }
   0x3   :  { %20 = vsyncpa [#allocation12], 0 }
   0x4   :  { %21 = vsyncpa [#allocation4], 0  ;;  %s4886_s21 = smov [#allocation5]   ;;  %s4722_s25 = scalar_lea.hbm %s5189_s1, 16384 }
   0x5   :  { %s39_s22 = sshll.u32 %s4886_s21, 4  ;;  %p4723_p0 = scmp.ne.s32.totalorder %s5189_s1, %s4722_s25  ;;  %s40_s22 = int_to_ptr.vmem [resolvable:$true] %s39_s22 }
   0x6   :  { %p4726_p1 = scmp.lt.u32.totalorder %s4722_s25, %s5189_s1 }
   0x8   :  { %p4728_p2 = pnand %p4726_p1, %p4723_p0 }
   0xa   :  { %4731 = shalt.err (!%p4728_p2)
}
   0xb   :  { %s4732_s30 = scalar_lea.vmem %s40_s22, 16384  ;;  %p4737_p4 = scmp.lt.s32.totalorder %s40_s22, %s40_s22 }
   0xc   :  { %p4733_p3 = scmp.ne.s32.totalorder %s40_s22, %s4732_s30  ;;  %p4738_p5 = scmp.lt.s32.totalorder %s4732_s30, %s4732_s30 }
   0xe   :  { %p4739_p6 = por %p4738_p5, %p4737_p4 }
  0x10   :  { %p4740_p7 = pnand %p4739_p6, %p4733_p3 }
  0x12   :  { %4743 = shalt.err (!%p4740_p7)
}
  0x13   :  { %s4887_s13 = smov 512   ;;  %s4888_s14 = smov 32  }
  0x14   :  { %45 = dma.hbm_to_vmem [thread:$0]  %s5189_s1, 16384, %s40_s22, [#allocation6], %s4887_s13, %s4887_s13, %s4888_s14  }
  0x15   :  { %s4889_s17 = smov [#allocation8]   ;;  %s4744_s21 = scalar_lea.hbm %s5192_s4, 32768 }
  0x16   :  { %s63_s18 = sshll.u32 %s4889_s17, 4  ;;  %p4745_p8 = scmp.ne.s32.totalorder %s5192_s4, %s4744_s21  ;;  %s64_s18 = int_to_ptr.vmem [resolvable:$true] %s63_s18 }
  0x17   :  { %p4748_p9 = scmp.lt.u32.totalorder %s4744_s21, %s5192_s4 }
  0x19   :  { %p4750_p10 = pnand %p4748_p9, %p4745_p8 }
  0x1b   :  { %4753 = shalt.err (!%p4750_p10)
}
  0x1c   :  { %s4754_s27 = scalar_lea.vmem %s64_s18, 32768  ;;  %p4759_p12 = scmp.lt.s32.totalorder %s64_s18, %s64_s18 }
  0x1d   :  { %p4755_p11 = scmp.ne.s32.totalorder %s64_s18, %s4754_s27  ;;  %p4760_p13 = scmp.lt.s32.totalorder %s4754_s27, %s4754_s27 }
  0x1f   :  { %p4761_p0 = por %p4760_p13, %p4759_p12 }
  0x21   :  { %p4762_p1 = pnand %p4761_p0, %p4755_p11 }
  0x23   :  { %4765 = shalt.err (!%p4762_p1)
}
  0x24   :  { %s4890_s1 = smov 256   ;;  %s4891_s22 = smov 16  }
  0x25   :  { %69 = dma.hbm_to_vmem [thread:$0]  %s5192_s4, 32768, %s64_s18, [#allocation9], %s4890_s1, %s4890_s1, %s4891_s22  }
  0x26   :  { %s4892_s30 = smov [#allocation2]   ;;  %s4766_s16 = scalar_lea.hbm %s5188_s0, 256 }
  0x27   :  { %s27_s13 = sshll.u32 %s4892_s30, 4  ;;  %p4767_p2 = scmp.ne.s32.totalorder %s5188_s0, %s4766_s16  ;;  %s28_s13 = int_to_ptr.vmem [resolvable:$true] %s27_s13 }
  0x28   :  { %p4770_p3 = scmp.lt.u32.totalorder %s4766_s16, %s5188_s0 }
  0x2a   :  { %p4772_p4 = pnand %p4770_p3, %p4767_p2 }
  0x2c   :  { %4775 = shalt.err (!%p4772_p4)
}
  0x2d   :  { %s4776_s23 = scalar_lea.vmem %s28_s13, 256  ;;  %p4781_p6 = scmp.lt.s32.totalorder %s28_s13, %s28_s13 }
  0x2e   :  { %p4777_p5 = scmp.ne.s32.totalorder %s28_s13, %s4776_s23  ;;  %p4782_p7 = scmp.lt.s32.totalorder %s4776_s23, %s4776_s23 }
  0x30   :  { %p4783_p8 = por %p4782_p7, %p4781_p6 }
  0x32   :  { %p4784_p9 = pnand %p4783_p8, %p4777_p5 }
  0x34   :  { %4787 = shalt.err (!%p4784_p9)
}
  0x35   :  { %s4893_s4 = smov 128   ;;  %s4894_s18 = smov 8  }
  0x36   :  { %33 = dma.hbm_to_vmem [thread:$0]  %s5188_s0, 256, %s28_s13, [#allocation3], %s4893_s4, %s4893_s4, %s4894_s18  }
  0x37   :  { %s4895_s26 = smov [#allocation7]   ;;  %s4896_s1 = smov [#allocation10]  }
  0x38   :  { %s52_s27 = sshll.u32 %s4895_s26, 4  ;;  %s79_s22 = sshll.u32 %s4896_s1, 4  ;;  %s53_s27 = int_to_ptr.vmem [resolvable:$true] %s52_s27  ;;  %s80_s22 = int_to_ptr.vmem [resolvable:$true] %s79_s22 }
  0x39   :  { %s4788_s30 = scalar_lea.hbm %s5190_s2, 128 }
  0x3a   :  { %p4789_p10 = scmp.ne.s32.totalorder %s5190_s2, %s4788_s30  ;;  %p4792_p11 = scmp.lt.u32.totalorder %s4788_s30, %s5190_s2 }
  0x3c   :  { %p4794_p12 = pnand %p4792_p11, %p4789_p10 }
  0x3e   :  { %4797 = shalt.err (!%p4794_p12)
}
  0x3f   :  { %s4798_s0 = scalar_lea.vmem %s53_s27, 128  ;;  %p4803_p0 = scmp.lt.s32.totalorder %s53_s27, %s53_s27 }
  0x40   :  { %p4799_p13 = scmp.ne.s32.totalorder %s53_s27, %s4798_s0  ;;  %p4804_p1 = scmp.lt.s32.totalorder %s4798_s0, %s4798_s0 }
  0x42   :  { %p4805_p2 = por %p4804_p1, %p4803_p0 }
  0x44   :  { %p4806_p3 = pnand %p4805_p2, %p4799_p13 }
  0x46   :  { %4809 = shalt.err (!%p4806_p3)
}
  0x47   :  { %55 = dma.hbm_to_vmem [thread:$0]  %s5190_s2, 128, %s53_s27, [#allocation6]  }
  0x48   :  { %s4810_s23 = scalar_lea.hbm %s5195_s7, 4096 }
  0x49   :  { %p4811_p4 = scmp.ne.s32.totalorder %s5195_s7, %s4810_s23  ;;  %p4814_p5 = scmp.lt.u32.totalorder %s4810_s23, %s5195_s7 }
  0x4b   :  { %p4816_p6 = pnand %p4814_p5, %p4811_p4 }
  0x4d   :  { %4819 = shalt.err (!%p4816_p6)
}
  0x4e   :  { %s4820_s28 = scalar_lea.vmem %s80_s22, 4096  ;;  %p4825_p8 = scmp.lt.s32.totalorder %s80_s22, %s80_s22 }
  0x4f   :  { %p4821_p7 = scmp.ne.s32.totalorder %s80_s22, %s4820_s28  ;;  %p4826_p9 = scmp.lt.s32.totalorder %s4820_s28, %s4820_s28 }
  0x51   :  { %p4827_p10 = por %p4826_p9, %p4825_p8 }
  0x53   :  { %p4828_p11 = pnand %p4827_p10, %p4821_p7 }
  0x55   :  { %4831 = shalt.err (!%p4828_p11)
}
  0x56   :  { %s4897_s2 = smov 64   ;;  %s4898_s27 = smov 4  }
  0x57   :  { %85 = dma.hbm_to_vmem [thread:$0]  %s5195_s7, 4096, %s80_s22, [#allocation9], %s4897_s2, %s4897_s2, %s4898_s27  }
  0x58   :  { %s4899_s14 = smov [#allocation11]   ;;  %s4832_s0 = scalar_lea.hbm %s5198_s10, 1024 }
  0x59   :  { %s95_s15 = sshll.u32 %s4899_s14, 4  ;;  %p4833_p12 = scmp.ne.s32.totalorder %s5198_s10, %s4832_s0  ;;  %s96_s15 = int_to_ptr.vmem [resolvable:$true] %s95_s15 }
  0x5a   :  { %p4836_p13 = scmp.lt.u32.totalorder %s4832_s0, %s5198_s10 }
  0x5c   :  { %p4838_p0 = pnand %p4836_p13, %p4833_p12 }
  0x5e   :  { %4841 = shalt.err (!%p4838_p0)
}
  0x5f   :  { %s4842_s23 = scalar_lea.vmem %s96_s15, 1024  ;;  %p4847_p2 = scmp.lt.s32.totalorder %s96_s15, %s96_s15 }
  0x60   :  { %p4843_p1 = scmp.ne.s32.totalorder %s96_s15, %s4842_s23  ;;  %p4848_p3 = scmp.lt.s32.totalorder %s4842_s23, %s4842_s23 }
  0x62   :  { %p4849_p4 = por %p4848_p3, %p4847_p2 }
  0x64   :  { %p4850_p5 = pnand %p4849_p4, %p4843_p1 }
  0x66   :  { %4853 = shalt.err (!%p4850_p5)
}
  0x67   :  { %101 = dma.hbm_to_vmem [thread:$0]  %s5198_s10, 1024, %s96_s15, [#allocation12], %s4897_s2, %s4897_s2, %s4898_s27  }
  0x68   :  { %4876 = dma.done.wait [#allocation3], 256  }
  0x69   :  { %4877 = vsyncadd [#allocation3], 4294967040 }
  0x6a   :  { %4878 = dma.done.wait [#allocation6], 16512  }
  0x6b   :  { %4879 = vsyncadd [#allocation6], 4294950784 }
  0x6c   :  { %4880 = dma.done.wait [#allocation9], 36864  }
  0x6d   :  { %4881 = vsyncadd [#allocation9], 4294930432 }
  0x6e   :  { %4882 = dma.done.wait [#allocation12], 1024  }
  0x6f   :  { %4883 = vsyncadd [#allocation12], 4294966272  ;;  %v125_v0 = vld [vmem:[#allocation5] sm:$0xff]  ;;  %v126_v17 = vld [vmem:[#allocation5 + $0x8] sm:$0xff]  ;;  %vm4901_vm0 = vmmov 0   ;;  %s4902_s27 = smov [#allocation13]  }
  0x70   :  { %v129_v1 = vld [vmem:[#allocation5 + $0x20] sm:$0xff]  ;;  %v130_v18 = vld [vmem:[#allocation5 + $0x28] sm:$0xff]  ;;  %v5043_v22 = vld [vmem:[#allocation2 + $0x4] ss:$8 sps:$4 sm:$0xff]   ;;  %s3730_s29 = sshll.u32 %s4902_s27, 4  ;;  %s3731_s29 = int_to_ptr.vmem [resolvable:$true] %s3730_s29 }
  0x71   :  { %v133_v2 = vld [vmem:[#allocation5 + $0x40] sm:$0xff]  ;;  %v3748_v3 = vcombine.high %v125_v0, %v129_v1  ;;  %v3747_v4 = vcombine.low %v125_v0, %v129_v1  ;;  %v3750_v19 = vcombine.high %v126_v17, %v130_v18  ;;  %v3749_v20 = vcombine.low %v126_v17, %v130_v18  ;;  %v134_v23 = vld [vmem:[#allocation5 + $0x48] sm:$0xff]  ;;  %977 = vmatprep.mubr.bf16.mxu0 %v5043_v22  ;;  %s4854_s30 = scalar_lea.vmem %s3731_s29, 256  ;;  %p4859_p7 = scmp.lt.s32.totalorder %s3731_s29, %s3731_s29 }
  0x72   :  { %v137_v5 = vld [vmem:[#allocation5 + $0x60] sm:$0xff]  ;;  %v138_v24 = vld [vmem:[#allocation5 + $0x68] sm:$0xff]  ;;  %1020 = vmatprep.mubr.bf16.mxu1 %v5043_v22  ;;  %p4855_p6 = scmp.ne.s32.totalorder %s3731_s29, %s4854_s30  ;;  %p4860_p8 = scmp.lt.s32.totalorder %s4854_s30, %s4854_s30 }
  0x73   :  { %v3756_v6 = vcombine.high %v133_v2, %v137_v5  ;;  %v141_v7 = vld [vmem:[#allocation5 + $0x80] sm:$0xff]  ;;  %945 = vmatprep.subr.bf16.mxu0 %v3748_v3  ;;  %v3755_v9 = vcombine.low %v133_v2, %v137_v5  ;;  %988 = vmatprep.subr.bf16.mxu1 %v3750_v19  ;;  %v3758_v26 = vcombine.high %v134_v23, %v138_v24  ;;  %v142_v27 = vld [vmem:[#allocation5 + $0x88] sm:$0xff] }
  0x74   :  { %v145_v8 = vld [vmem:[#allocation5 + $0xa0] sm:$0xff]  ;;  %946 = vmatpush1.bf16.msra.mxu0 %v3747_v4  ;;  %v146_v28 = vld [vmem:[#allocation5 + $0xa8] sm:$0xff]  ;;  %989 = vmatpush1.bf16.msra.mxu1 %v3749_v20  ;;  %v3757_v31 = vcombine.low %v134_v23, %v138_v24  ;;  %p4861_p9 = por %p4860_p8, %p4859_p7 }
  0x75   :  { %947 = vmatprep.subr.bf16.mxu0 %v3756_v6  ;;  %v3764_v10 = vcombine.high %v141_v7, %v145_v8  ;;  %v149_v11 = vld [vmem:[#allocation5 + $0xc0] sm:$0xff]  ;;  %v3763_v13 = vcombine.low %v141_v7, %v145_v8  ;;  %990 = vmatprep.subr.bf16.mxu1 %v3758_v26  ;;  %v3766_v32 = vcombine.high %v142_v27, %v146_v28  ;;  %v150_v34 = vld [vmem:[#allocation5 + $0xc8] sm:$0xff] }
  0x76   :  { %v153_v12 = vld [vmem:[#allocation5 + $0xe0] sm:$0xff]  ;;  %v154_v35 = vld [vmem:[#allocation5 + $0xe8] sm:$0xff]  ;;  %v3765_v39 = vcombine.low %v142_v27, %v146_v28  ;;  %p4862_p10 = pnand %p4861_p9, %p4855_p6 }
  0x77   :  { %v3772_v14 = vcombine.high %v149_v11, %v153_v12  ;;  %v157_v15 = vld [vmem:[#allocation5 + $0x100] sm:$0xff]  ;;  %v3771_v21 = vcombine.low %v149_v11, %v153_v12  ;;  %v3774_v40 = vcombine.high %v150_v34, %v154_v35  ;;  %v158_v42 = vld [vmem:[#allocation5 + $0x108] sm:$0xff]  ;;  %v3773_v47 = vcombine.low %v150_v34, %v154_v35 }
  0x78   :  { %948 = vmatpush1.bf16.msra.mxu0 %v3755_v9  ;;  %v161_v16 = vld [vmem:[#allocation5 + $0x120] sm:$0xff]  ;;  %991 = vmatpush1.bf16.msra.mxu1 %v3757_v31  ;;  %v162_v43 = vld [vmem:[#allocation5 + $0x128] sm:$0xff] }
  0x79   :  { %949 = vmatprep.subr.bf16.mxu0 %v3764_v10  ;;  %v3780_v25 = vcombine.high %v157_v15, %v161_v16  ;;  %v165_v29 = vld [vmem:[#allocation5 + $0x140] sm:$0xff]  ;;  %v3779_v33 = vcombine.low %v157_v15, %v161_v16  ;;  %992 = vmatprep.subr.bf16.mxu1 %v3766_v32  ;;  %v3782_v48 = vcombine.high %v158_v42, %v162_v43  ;;  %v166_v50 = vld [vmem:[#allocation5 + $0x148] sm:$0xff] }
  0x7a   :  { %v169_v30 = vld [vmem:[#allocation5 + $0x160] sm:$0xff]  ;;  %v170_v51 = vld [vmem:[#allocation5 + $0x168] sm:$0xff]  ;;  %v3781_v55 = vcombine.low %v158_v42, %v162_v43 }
  0x7b   :  { %v3788_v36 = vcombine.high %v165_v29, %v169_v30  ;;  %v173_v37 = vld [vmem:[#allocation5 + $0x180] sm:$0xff]  ;;  %v3787_v41 = vcombine.low %v165_v29, %v169_v30  ;;  %v3790_v56 = vcombine.high %v166_v50, %v170_v51  ;;  %v174_v58 = vld [vmem:[#allocation5 + $0x188] sm:$0xff]  ;;  %v3789_v63 = vcombine.low %v166_v50, %v170_v51 }
  0x7c   :  { %950 = vmatpush1.bf16.msra.mxu0 %v3763_v13  ;;  %v177_v38 = vld [vmem:[#allocation5 + $0x1a0] sm:$0xff]  ;;  %993 = vmatpush1.bf16.msra.mxu1 %v3765_v39  ;;  %v178_v59 = vld [vmem:[#allocation5 + $0x1a8] sm:$0xff] }
  0x7d   :  { %951 = vmatprep.subr.bf16.mxu0 %v3772_v14  ;;  %v3796_v44 = vcombine.high %v173_v37, %v177_v38  ;;  %v181_v45 = vld [vmem:[#allocation5 + $0x1c0] sm:$0xff]  ;;  %994 = vmatprep.subr.bf16.mxu1 %v3774_v40  ;;  %v3795_v49 = vcombine.low %v173_v37, %v177_v38  ;;  %v3798_v0 = vcombine.high %v174_v58, %v178_v59  ;;  %v182_v2 = vld [vmem:[#allocation5 + $0x1c8] sm:$0xff] }
  0x7e   :  { %v185_v46 = vld [vmem:[#allocation5 + $0x1e0] sm:$0xff]  ;;  %v186_v3 = vld [vmem:[#allocation5 + $0x1e8] sm:$0xff]  ;;  %v3797_v7 = vcombine.low %v174_v58, %v178_v59 }
  0x7f   :  { %v3804_v52 = vcombine.high %v181_v45, %v185_v46  ;;  %v189_v53 = vld [vmem:[#allocation5 + $0x200] sm:$0xff]  ;;  %v3803_v57 = vcombine.low %v181_v45, %v185_v46  ;;  %v3806_v8 = vcombine.high %v182_v2, %v186_v3  ;;  %v190_v10 = vld [vmem:[#allocation5 + $0x208] sm:$0xff]  ;;  %v3805_v15 = vcombine.low %v182_v2, %v186_v3 }
  0x80   :  { %952 = vmatpush1.bf16.msra.mxu0 %v3771_v21  ;;  %v193_v54 = vld [vmem:[#allocation5 + $0x220] sm:$0xff]  ;;  %995 = vmatpush1.bf16.msra.mxu1 %v3773_v47  ;;  %v194_v11 = vld [vmem:[#allocation5 + $0x228] sm:$0xff] }
  0x81   :  { %953 = vmatprep.subr.bf16.mxu0 %v3780_v25  ;;  %996 = vmatprep.subr.bf16.mxu1 %v3782_v48  ;;  %v3812_v60 = vcombine.high %v189_v53, %v193_v54  ;;  %v197_v61 = vld [vmem:[#allocation5 + $0x240] sm:$0xff]  ;;  %v3811_v1 = vcombine.low %v189_v53, %v193_v54  ;;  %v3814_v16 = vcombine.high %v190_v10, %v194_v11  ;;  %v198_v18 = vld [vmem:[#allocation5 + $0x248] sm:$0xff] }
  0x82   :  { %v201_v62 = vld [vmem:[#allocation5 + $0x260] sm:$0xff]  ;;  %v202_v19 = vld [vmem:[#allocation5 + $0x268] sm:$0xff]  ;;  %v3813_v24 = vcombine.low %v190_v10, %v194_v11  ;;  %v128_v11 = vld [vmem:[#allocation5 + $0x18] sm:$0xff] }
  0x83   :  { %v3820_v4 = vcombine.high %v197_v61, %v201_v62  ;;  %v205_v5 = vld [vmem:[#allocation5 + $0x280] sm:$0xff]  ;;  %v3819_v9 = vcombine.low %v197_v61, %v201_v62  ;;  %v3822_v25 = vcombine.high %v198_v18, %v202_v19  ;;  %v206_v26 = vld [vmem:[#allocation5 + $0x288] sm:$0xff]  ;;  %v3821_v32 = vcombine.low %v198_v18, %v202_v19  ;;  %v136_v19 = vld [vmem:[#allocation5 + $0x58] sm:$0xff] }
  0x84   :  { %954 = vmatpush1.bf16.msra.mxu0 %v3779_v33  ;;  %997 = vmatpush1.bf16.msra.mxu1 %v3781_v55  ;;  %v209_v6 = vld [vmem:[#allocation5 + $0x2a0] sm:$0xff]  ;;  %v210_v28 = vld [vmem:[#allocation5 + $0x2a8] sm:$0xff]  ;;  %v127_v55 = vld [vmem:[#allocation5 + $0x10] sm:$0xff] }
  0x85   :  { %955 = vmatprep.subr.bf16.mxu0 %v3788_v36  ;;  %998 = vmatprep.subr.bf16.mxu1 %v3790_v56  ;;  %v3828_v12 = vcombine.high %v205_v5, %v209_v6  ;;  %v213_v13 = vld [vmem:[#allocation5 + $0x2c0] sm:$0xff]  ;;  %v3827_v17 = vcombine.low %v205_v5, %v209_v6  ;;  %v3830_v33 = vcombine.high %v206_v26, %v210_v28  ;;  %v214_v34 = vld [vmem:[#allocation5 + $0x2c8] sm:$0xff]  ;;  %v131_v56 = vld [vmem:[#allocation5 + $0x30] sm:$0xff] }
  0x86   :  { %v217_v14 = vld [vmem:[#allocation5 + $0x2e0] sm:$0xff]  ;;  %v218_v36 = vld [vmem:[#allocation5 + $0x2e8] sm:$0xff]  ;;  %v3829_v40 = vcombine.low %v206_v26, %v210_v28  ;;  %v3752_v61 = vcombine.high %v127_v55, %v131_v56  ;;  %v3751_v5 = vcombine.low %v127_v55, %v131_v56  ;;  %v144_v28 = vld [vmem:[#allocation5 + $0x98] sm:$0xff] }
  0x87   :  { %v3836_v20 = vcombine.high %v213_v13, %v217_v14  ;;  %v221_v21 = vld [vmem:[#allocation5 + $0x300] sm:$0xff]  ;;  %v3835_v27 = vcombine.low %v213_v13, %v217_v14  ;;  %v222_v42 = vld [vmem:[#allocation5 + $0x308] sm:$0xff]  ;;  %v3837_v48 = vcombine.low %v214_v34, %v218_v36  ;;  %v132_v13 = vld [vmem:[#allocation5 + $0x38] sm:$0xff] }
  0x88   :  { %956 = vmatpush1.bf16.msra.mxu0 %v3787_v41  ;;  %999 = vmatpush1.bf16.msra.mxu1 %v3789_v63  ;;  %v225_v23 = vld [vmem:[#allocation5 + $0x320] sm:$0xff]  ;;  %v3838_v41 = vcombine.high %v214_v34, %v218_v36  ;;  %v230_v50 = vld [vmem:[#allocation5 + $0x348] sm:$0xff]  ;;  %v135_v63 = vld [vmem:[#allocation5 + $0x50] sm:$0xff]  ;;  %v3754_v18 = vcombine.high %v128_v11, %v132_v13  ;;  %v3753_v26 = vcombine.low %v128_v11, %v132_v13 }
  0x89   :  { %957 = vmatprep.subr.bf16.mxu0 %v3796_v44  ;;  %1000 = vmatprep.subr.bf16.mxu1 %v3798_v0  ;;  %v3844_v29 = vcombine.high %v221_v21, %v225_v23  ;;  %v229_v30 = vld [vmem:[#allocation5 + $0x340] sm:$0xff]  ;;  %v3843_v35 = vcombine.low %v221_v21, %v225_v23  ;;  %v226_v44 = vld [vmem:[#allocation5 + $0x328] sm:$0xff]  ;;  %v139_v0 = vld [vmem:[#allocation5 + $0x70] sm:$0xff] }
  0x8a   :  { %v233_v31 = vld [vmem:[#allocation5 + $0x360] sm:$0xff]  ;;  %v3845_v54 = vcombine.low %v222_v42, %v226_v44  ;;  %v238_v58 = vld [vmem:[#allocation5 + $0x388] sm:$0xff]  ;;  %v3760_v6 = vcombine.high %v135_v63, %v139_v0  ;;  %v140_v21 = vld [vmem:[#allocation5 + $0x78] sm:$0xff] }
  0x8b   :  { %v3852_v37 = vcombine.high %v229_v30, %v233_v31  ;;  %v237_v38 = vld [vmem:[#allocation5 + $0x380] sm:$0xff]  ;;  %v3851_v43 = vcombine.low %v229_v30, %v233_v31  ;;  %v246_v3 = vld [vmem:[#allocation5 + $0x3c8] sm:$0xff]  ;;  %v148_v30 = vld [vmem:[#allocation5 + $0xb8] sm:$0xff]  ;;  %v3761_v34 = vcombine.low %v136_v19, %v140_v21 }
  0x8c   :  { %958 = vmatpush1.bf16.msra.mxu0 %v3795_v49  ;;  %1001 = vmatpush1.bf16.msra.mxu1 %v3797_v7  ;;  %v241_v39 = vld [vmem:[#allocation5 + $0x3a0] sm:$0xff]  ;;  %v3846_v49 = vcombine.high %v222_v42, %v226_v44  ;;  %v156_v36 = vld [vmem:[#allocation5 + $0xf8] sm:$0xff]  ;;  %v3769_v42 = vcombine.low %v144_v28, %v148_v30  ;;  %v195_v55 = vld [vmem:[#allocation5 + $0x230] sm:$0xff] }
  0x8d   :  { %959 = vmatprep.subr.bf16.mxu0 %v3804_v52  ;;  %1002 = vmatprep.subr.bf16.mxu1 %v3806_v8  ;;  %v3860_v45 = vcombine.high %v237_v38, %v241_v39  ;;  %v245_v46 = vld [vmem:[#allocation5 + $0x3c0] sm:$0xff]  ;;  %v3859_v51 = vcombine.low %v237_v38, %v241_v39  ;;  %v234_v52 = vld [vmem:[#allocation5 + $0x368] sm:$0xff]  ;;  %v143_v8 = vld [vmem:[#allocation5 + $0x90] sm:$0xff] }
  0x8e   :  { %v249_v47 = vld [vmem:[#allocation5 + $0x3e0] sm:$0xff]  ;;  %v3853_v62 = vcombine.low %v230_v50, %v234_v52  ;;  %v175_v39 = vld [vmem:[#allocation5 + $0x190] sm:$0xff]  ;;  %v164_v44 = vld [vmem:[#allocation5 + $0x138] sm:$0xff] }
  0x8f   :  { %v3868_v53 = vcombine.high %v245_v46, %v249_v47  ;;  %v3867_v59 = vcombine.low %v245_v46, %v249_v47  ;;  %v183_v47 = vld [vmem:[#allocation5 + $0x1d0] sm:$0xff]  ;;  %v192_v11 = vld [vmem:[#allocation5 + $0x218] sm:$0xff] }
  0x90   :  { %960 = vmatpush1.bf16.msra.mxu0 %v3803_v57  ;;  %1003 = vmatpush1.bf16.msra.mxu1 %v3805_v15  ;;  %v3854_v57 = vcombine.high %v230_v50, %v234_v52  ;;  %v168_v50 = vld [vmem:[#allocation5 + $0x158] sm:$0xff] }
  0x91   :  { %961 = vmatprep.subr.bf16.mxu0 %v3812_v60  ;;  %1004 = vmatprep.subr.bf16.mxu1 %v3814_v16  ;;  %v242_v60 = vld [vmem:[#allocation5 + $0x3a8] sm:$0xff]  ;;  %v151_v16 = vld [vmem:[#allocation5 + $0xd0] sm:$0xff] }
  0x92   :  { %v3862_v2 = vcombine.high %v238_v58, %v242_v60  ;;  %v3861_v7 = vcombine.low %v238_v58, %v242_v60  ;;  %v176_v58 = vld [vmem:[#allocation5 + $0x198] sm:$0xff] }
  0x94   :  { %962 = vmatpush1.bf16.msra.mxu0 %v3811_v1  ;;  %1005 = vmatpush1.bf16.msra.mxu1 %v3813_v24  ;;  %v5047_v1 = vld [vmem:[#allocation2] ss:$8 sps:$4 sm:$0xff]  }
  0x95   :  { %963 = vmatprep.subr.bf16.mxu0 %v3820_v4  ;;  %1006 = vmatprep.subr.bf16.mxu1 %v3822_v25  ;;  %v250_v4 = vld [vmem:[#allocation5 + $0x3e8] sm:$0xff]  ;;  %v159_v24 = vld [vmem:[#allocation5 + $0x110] sm:$0xff] }
  0x96   :  { %v3870_v10 = vcombine.high %v246_v3, %v250_v4  ;;  %v3869_v15 = vcombine.low %v246_v3, %v250_v4  ;;  %v163_v25 = vld [vmem:[#allocation5 + $0x130] sm:$0xff]  ;;  %v184_v3 = vld [vmem:[#allocation5 + $0x1d8] sm:$0xff] }
  0x97   :  { %v3784_v31 = vcombine.high %v159_v24, %v163_v25  ;;  %v3783_v38 = vcombine.low %v159_v24, %v163_v25  ;;  %v188_v4 = vld [vmem:[#allocation5 + $0x1f8] sm:$0xff]  ;;  %v223_v24 = vld [vmem:[#allocation5 + $0x310] sm:$0xff] }
  0x98   :  { %964 = vmatpush1.bf16.msra.mxu0 %v3819_v9  ;;  %1007 = vmatpush1.bf16.msra.mxu1 %v3821_v32  ;;  %v147_v9 = vld [vmem:[#allocation5 + $0xb0] sm:$0xff]  ;;  %v3810_v13 = vcombine.high %v184_v3, %v188_v4 }
  0x99   :  { %965 = vmatprep.subr.bf16.mxu0 %v3828_v12  ;;  %1008 = vmatprep.subr.bf16.mxu1 %v3830_v33  ;;  %v3759_v12 = vcombine.low %v135_v63, %v139_v0  ;;  %v3768_v14 = vcombine.high %v143_v8, %v147_v9  ;;  %v167_v32 = vld [vmem:[#allocation5 + $0x150] sm:$0xff] }
  0x9a   :  { %v171_v33 = vld [vmem:[#allocation5 + $0x170] sm:$0xff] }
  0x9b   :  { %v3791_v46 = vcombine.low %v167_v32, %v171_v33  ;;  %v203_v63 = vld [vmem:[#allocation5 + $0x270] sm:$0xff] }
  0x9c   :  { %966 = vmatpush1.bf16.msra.mxu0 %v3827_v17  ;;  %1009 = vmatpush1.bf16.msra.mxu1 %v3829_v40  ;;  %v155_v17 = vld [vmem:[#allocation5 + $0xf0] sm:$0xff] }
  0x9d   :  { %967 = vmatprep.subr.bf16.mxu0 %v3836_v20  ;;  %1010 = vmatprep.subr.bf16.mxu1 %v3838_v41  ;;  %v3767_v20 = vcombine.low %v143_v8, %v147_v9  ;;  %v3776_v23 = vcombine.high %v151_v16, %v155_v17  ;;  %v179_v40 = vld [vmem:[#allocation5 + $0x1b0] sm:$0xff]  ;;  %v3792_v41 = vcombine.high %v167_v32, %v171_v33 }
  0x9e   :  { %v211_v8 = vld [vmem:[#allocation5 + $0x2b0] sm:$0xff] }
  0x9f   :  { %v227_v25 = vld [vmem:[#allocation5 + $0x330] sm:$0xff] }
  0xa0   :  { %968 = vmatpush1.bf16.msra.mxu0 %v3835_v27  ;;  %1011 = vmatpush1.bf16.msra.mxu1 %v3837_v48  ;;  %v3762_v27 = vcombine.high %v136_v19, %v140_v21  ;;  %v187_v48 = vld [vmem:[#allocation5 + $0x1f0] sm:$0xff]  ;;  %v200_v19 = vld [vmem:[#allocation5 + $0x258] sm:$0xff] }
  0xa1   :  { %969 = vmatprep.subr.bf16.mxu0 %v3844_v29  ;;  %1012 = vmatprep.subr.bf16.mxu1 %v3846_v49  ;;  %v3775_v29 = vcombine.low %v151_v16, %v155_v17  ;;  %v3808_v56 = vcombine.high %v183_v47, %v187_v48  ;;  %v219_v16 = vld [vmem:[#allocation5 + $0x2f0] sm:$0xff] }
  0xa2   :  { %v231_v32 = vld [vmem:[#allocation5 + $0x350] sm:$0xff] }
  0xa3   :  { %v235_v33 = vld [vmem:[#allocation5 + $0x370] sm:$0xff] }
  0xa4   :  { %970 = vmatpush1.bf16.msra.mxu0 %v3843_v35  ;;  %1013 = vmatpush1.bf16.msra.mxu1 %v3845_v54  ;;  %v152_v35 = vld [vmem:[#allocation5 + $0xd8] sm:$0xff]  ;;  %v191_v54 = vld [vmem:[#allocation5 + $0x210] sm:$0xff] }
  0xa5   :  { %971 = vmatprep.subr.bf16.mxu0 %v3852_v37  ;;  %1014 = vmatprep.subr.bf16.mxu1 %v3854_v57  ;;  %v3770_v37 = vcombine.high %v144_v28, %v148_v30  ;;  %v3777_v49 = vcombine.low %v152_v35, %v156_v36  ;;  %v3816_v0 = vcombine.high %v191_v54, %v195_v55  ;;  %v208_v28 = vld [vmem:[#allocation5 + $0x298] sm:$0xff] }
  0xa8   :  { %972 = vmatpush1.bf16.msra.mxu0 %v3851_v43  ;;  %1015 = vmatpush1.bf16.msra.mxu1 %v3853_v62  ;;  %v160_v43 = vld [vmem:[#allocation5 + $0x118] sm:$0xff]  ;;  %v199_v62 = vld [vmem:[#allocation5 + $0x250] sm:$0xff] }
  0xa9   :  { %973 = vmatprep.subr.bf16.mxu0 %v3860_v45  ;;  %1016 = vmatprep.subr.bf16.mxu1 %v3862_v2  ;;  %v3778_v45 = vcombine.high %v152_v35, %v156_v36  ;;  %v3786_v52 = vcombine.high %v160_v43, %v164_v44  ;;  %v3785_v57 = vcombine.low %v160_v43, %v164_v44  ;;  %v216_v36 = vld [vmem:[#allocation5 + $0x2d8] sm:$0xff] }
  0xaa   :  { %v3824_v9 = vcombine.high %v199_v62, %v203_v63  ;;  %v224_v44 = vld [vmem:[#allocation5 + $0x318] sm:$0xff] }
  0xac   :  { %974 = vmatpush1.bf16.msra.mxu0 %v3859_v51  ;;  %1017 = vmatpush1.bf16.msra.mxu1 %v3861_v7  ;;  %v172_v51 = vld [vmem:[#allocation5 + $0x178] sm:$0xff]  ;;  %v207_v7 = vld [vmem:[#allocation5 + $0x290] sm:$0xff] }
  0xad   :  { %975 = vmatprep.subr.bf16.mxu0 %v3868_v53  ;;  %1018 = vmatprep.subr.bf16.mxu1 %v3870_v10  ;;  %v3799_v53 = vcombine.low %v175_v39, %v179_v40  ;;  %v3794_v60 = vcombine.high %v168_v50, %v172_v51  ;;  %v3793_v2 = vcombine.low %v168_v50, %v172_v51  ;;  %v232_v51 = vld [vmem:[#allocation5 + $0x358] sm:$0xff] }
  0xae   :  { %v3832_v17 = vcombine.high %v207_v7, %v211_v8 }
  0xb0   :  { %976 = vmatpush1.bf16.msra.mxu0 %v3867_v59  ;;  %1019 = vmatpush1.bf16.msra.mxu1 %v3869_v15  ;;  %v180_v59 = vld [vmem:[#allocation5 + $0x1b8] sm:$0xff]  ;;  %v215_v15 = vld [vmem:[#allocation5 + $0x2d0] sm:$0xff] }
  0xb1   :  { %1031 = vmatprep.subr.bf16.mxu0 %v3752_v61  ;;  %1074 = vmatprep.subr.bf16.mxu1 %v3754_v18  ;;  %v3807_v61 = vcombine.low %v183_v47, %v187_v48  ;;  %v3801_v10 = vcombine.low %v176_v58, %v180_v59  ;;  %v3809_v18 = vcombine.low %v184_v3, %v188_v4  ;;  %v247_v48 = vld [vmem:[#allocation5 + $0x3d0] sm:$0xff]  ;;  %v4306_v4 = vld [vmem:[#allocation8 + $0x24] ss:$16 sps:$4 sm:$0xff]  }
  0xb2   :  { %v3855_v47 = vcombine.low %v231_v32, %v235_v33 }
  0xb3   :  { %978 = vmatmul.mubr.bf16.vlgmr.msra.gmra.mrb[0].mxu0 %v5047_v1  ;;  %1021 = vmatmul.mubr.bf16.vlgmr.msra.gmra.mrb[0].mxu1 %v5047_v1 }
  0xb4   :  { %1032 = vmatpush1.bf16.msra.mxu0 %v3751_v5  ;;  %1063 = vmatprep.mubr.bf16.mxu0 %v5043_v22  ;;  %v3802_v5 = vcombine.high %v176_v58, %v180_v59  ;;  %v244_v58 = vld [vmem:[#allocation5 + $0x3b8] sm:$0xff] }
  0xb5   :  { %1033 = vmatprep.subr.bf16.mxu0 %v3760_v6  ;;  %1075 = vmatpush1.bf16.msra.mxu1 %v3753_v26  ;;  %v3815_v6 = vcombine.low %v191_v54, %v195_v55  ;;  %v3840_v26 = vcombine.high %v215_v15, %v219_v16 }
  0xb6   :  { %1106 = vmatprep.mubr.bf16.mxu1 %v5043_v22  ;;  %1076 = vmatprep.subr.bf16.mxu1 %v3762_v27  ;;  %v3800_v22 = vcombine.high %v175_v39, %v179_v40  ;;  %v3847_v39 = vcombine.low %v223_v24, %v227_v25  ;;  %v239_v40 = vld [vmem:[#allocation5 + $0x390] sm:$0xff] }
  0xb8   :  { %1034 = vmatpush1.bf16.msra.mxu0 %v3759_v12  ;;  %v196_v12 = vld [vmem:[#allocation5 + $0x238] sm:$0xff] }
  0xb9   :  { %1035 = vmatprep.subr.bf16.mxu0 %v3768_v14  ;;  %1077 = vmatpush1.bf16.msra.mxu1 %v3761_v34  ;;  %v3823_v14 = vcombine.low %v199_v62, %v203_v63  ;;  %v3818_v21 = vcombine.high %v192_v11, %v196_v12  ;;  %v3817_v27 = vcombine.low %v192_v11, %v196_v12  ;;  %v248_v63 = vld [vmem:[#allocation5 + $0x3d8] sm:$0xff] }
  0xba   :  { %1078 = vmatprep.subr.bf16.mxu1 %v3770_v37  ;;  %v3848_v34 = vcombine.high %v223_v24, %v227_v25  ;;  %v220_v37 = vld [vmem:[#allocation5 + $0x2f8] sm:$0xff] }
  0xbb   :  { %v3841_v50 = vcombine.low %v216_v36, %v220_v37  ;;  %v4310_v11 = vld [vmem:[#allocation8 + $0x40] ss:$16 sps:$4 sm:$0xff]   ;;  %v4318_v12 = vld [vmem:[#allocation8 + $0x64] ss:$16 sps:$4 sm:$0xff]  }
  0xbc   :  { %1036 = vmatpush1.bf16.msra.mxu0 %v3767_v20  ;;  %v204_v20 = vld [vmem:[#allocation5 + $0x278] sm:$0xff] }
  0xbd   :  { %1037 = vmatprep.subr.bf16.mxu0 %v3776_v23  ;;  %1079 = vmatpush1.bf16.msra.mxu1 %v3769_v42  ;;  %v3831_v23 = vcombine.low %v207_v7, %v211_v8  ;;  %v3826_v30 = vcombine.high %v200_v19, %v204_v20  ;;  %v3825_v35 = vcombine.low %v200_v19, %v204_v20  ;;  %v4312_v8 = vld [vmem:[#allocation8 + $0x44] ss:$16 sps:$4 sm:$0xff]   ;;  %v4322_v19 = vld [vmem:[#allocation8 + $0x80] ss:$16 sps:$4 sm:$0xff]  }
  0xbe   :  { %1080 = vmatprep.subr.bf16.mxu1 %v3778_v45  ;;  %v3856_v42 = vcombine.high %v231_v32, %v235_v33  ;;  %v228_v45 = vld [vmem:[#allocation5 + $0x338] sm:$0xff]  ;;  %v4331_v33 = vld [vmem:[#allocation8 + $0xa8] ss:$16 sps:$4 sm:$0xff]  }
  0xbf   :  { %v4330_v20 = vld [vmem:[#allocation8 + $0xa4] ss:$16 sps:$4 sm:$0xff]   ;;  %v4328_v24 = vld [vmem:[#allocation8 + $0xa0] ss:$16 sps:$4 sm:$0xff]  }
  0xc0   :  { %1038 = vmatpush1.bf16.msra.mxu0 %v3775_v29  ;;  %v212_v29 = vld [vmem:[#allocation5 + $0x2b8] sm:$0xff] }
  0xc1   :  { %1039 = vmatprep.subr.bf16.mxu0 %v3784_v31  ;;  %1081 = vmatpush1.bf16.msra.mxu1 %v3777_v49  ;;  %v3839_v31 = vcombine.low %v215_v15, %v219_v16  ;;  %v3833_v43 = vcombine.low %v208_v28, %v212_v29  ;;  %v4316_v15 = vld [vmem:[#allocation8 + $0x60] ss:$16 sps:$4 sm:$0xff]   ;;  %v4324_v16 = vld [vmem:[#allocation8 + $0x84] ss:$16 sps:$4 sm:$0xff]  }
  0xc2   :  { %1082 = vmatprep.subr.bf16.mxu1 %v3786_v52  ;;  %v236_v52 = vld [vmem:[#allocation5 + $0x378] sm:$0xff] }
  0xc3   :  { %v3858_v59 = vcombine.high %v232_v51, %v236_v52  ;;  %v3857_v62 = vcombine.low %v232_v51, %v236_v52  ;;  %v4336_v25 = vld [vmem:[#allocation8 + $0xc4] ss:$16 sps:$4 sm:$0xff]   ;;  %v4361_v52 = vld [vmem:[#allocation8 + $0x148] ss:$16 sps:$4 sm:$0xff]  }
  0xc4   :  { %1040 = vmatpush1.bf16.msra.mxu0 %v3783_v38  ;;  %v3834_v38 = vcombine.high %v208_v28, %v212_v29  ;;  %v4342_v28 = vld [vmem:[#allocation8 + $0xe4] ss:$16 sps:$4 sm:$0xff]   ;;  %v4325_v29 = vld [vmem:[#allocation8 + $0x88] ss:$16 sps:$4 sm:$0xff]  }
  0xc5   :  { %1041 = vmatprep.subr.bf16.mxu0 %v3792_v41  ;;  %1083 = vmatpush1.bf16.msra.mxu1 %v3785_v57  ;;  %v243_v41 = vld [vmem:[#allocation5 + $0x3b0] sm:$0xff]  ;;  %v240_v57 = vld [vmem:[#allocation5 + $0x398] sm:$0xff] }
  0xc6   :  { %1084 = vmatprep.subr.bf16.mxu1 %v3794_v60  ;;  %v3864_v49 = vcombine.high %v239_v40, %v243_v41  ;;  %v3863_v54 = vcombine.low %v239_v40, %v243_v41  ;;  %v4300_v60 = vld [vmem:[#allocation8 + $0x4] ss:$16 sps:$4 sm:$0xff]   ;;  %v3866_v3 = vcombine.high %v240_v57, %v244_v58  ;;  %v4343_v41 = vld [vmem:[#allocation8 + $0xe8] ss:$16 sps:$4 sm:$0xff]  }
  0xc7   :  { %v4348_v32 = vld [vmem:[#allocation8 + $0x104] ss:$16 sps:$4 sm:$0xff]  }
  0xc8   :  { %1042 = vmatpush1.bf16.msra.mxu0 %v3791_v46  ;;  %v3842_v46 = vcombine.high %v216_v36, %v220_v37  ;;  %v4354_v36 = vld [vmem:[#allocation8 + $0x124] ss:$16 sps:$4 sm:$0xff]   ;;  %v4337_v37 = vld [vmem:[#allocation8 + $0xc8] ss:$16 sps:$4 sm:$0xff]  }
  0xc9   :  { %1043 = vmatprep.subr.bf16.mxu0 %v3800_v22  ;;  %1085 = vmatpush1.bf16.msra.mxu1 %v3793_v2  ;;  %v251_v22 = vld [vmem:[#allocation5 + $0x3f0] sm:$0xff]  ;;  %v4298_v2 = vld [vmem:[#allocation8] ss:$16 sps:$4 sm:$0xff]   ;;  %v4360_v40 = vld [vmem:[#allocation8 + $0x144] ss:$16 sps:$4 sm:$0xff]  }
  0xca   :  { %1086 = vmatprep.subr.bf16.mxu1 %v3802_v5  ;;  %v3872_v55 = vcombine.high %v247_v48, %v251_v22  ;;  %v3865_v5 = vcombine.low %v240_v57, %v244_v58  ;;  %v4378_v51 = vld [vmem:[#allocation8 + $0x1a4] ss:$16 sps:$4 sm:$0xff]   ;;  %v4375_v57 = vld [vmem:[#allocation8 + $0x18c] ss:$16 sps:$4 sm:$0xff]   ;;  %v4382_v58 = vld [vmem:[#allocation8 + $0x1c0] ss:$16 sps:$4 sm:$0xff]  }
  0xcc   :  { %1044 = vmatpush1.bf16.msra.mxu0 %v3799_v53  ;;  %v3850_v53 = vcombine.high %v224_v44, %v228_v45 }
  0xcd   :  { %1045 = vmatprep.subr.bf16.mxu0 %v3808_v56  ;;  %1087 = vmatpush1.bf16.msra.mxu1 %v3801_v10  ;;  %v3849_v56 = vcombine.low %v224_v44, %v228_v45  ;;  %v4366_v44 = vld [vmem:[#allocation8 + $0x164] ss:$16 sps:$4 sm:$0xff]   ;;  %v4349_v45 = vld [vmem:[#allocation8 + $0x108] ss:$16 sps:$4 sm:$0xff]  }
  0xce   :  { %1088 = vmatprep.subr.bf16.mxu1 %v3810_v13  ;;  %v4301_v13 = vld [vmem:[#allocation8 + $0x8] ss:$16 sps:$4 sm:$0xff]  }
  0xd0   :  { %1046 = vmatpush1.bf16.msra.mxu0 %v3807_v61  ;;  %v3871_v61 = vcombine.low %v247_v48, %v251_v22  ;;  %v4372_v48 = vld [vmem:[#allocation8 + $0x184] ss:$16 sps:$4 sm:$0xff]   ;;  %v4355_v22 = vld [vmem:[#allocation8 + $0x128] ss:$16 sps:$4 sm:$0xff]  }
  0xd1   :  { %1047 = vmatprep.subr.bf16.mxu0 %v3816_v0  ;;  %1089 = vmatpush1.bf16.msra.mxu1 %v3809_v18  ;;  %v252_v0 = vld [vmem:[#allocation5 + $0x3f8] sm:$0xff]  ;;  %v4315_v18 = vld [vmem:[#allocation8 + $0x4c] ss:$16 sps:$4 sm:$0xff]  }
  0xd2   :  { %1090 = vmatprep.subr.bf16.mxu1 %v3818_v21  ;;  %v3874_v7 = vcombine.high %v248_v63, %v252_v0  ;;  %v3873_v10 = vcombine.low %v248_v63, %v252_v0  ;;  %v4313_v21 = vld [vmem:[#allocation8 + $0x48] ss:$16 sps:$4 sm:$0xff]   ;;  %v4396_v63 = vld [vmem:[#allocation8 + $0x204] ss:$16 sps:$4 sm:$0xff]  }
  0xd3   :  { %v4379_v0 = vld [vmem:[#allocation8 + $0x1a8] ss:$16 sps:$4 sm:$0xff]  }
  0xd4   :  { %1048 = vmatpush1.bf16.msra.mxu0 %v3815_v6  ;;  %v4304_v6 = vld [vmem:[#allocation8 + $0x20] ss:$16 sps:$4 sm:$0xff]  }
  0xd5   :  { %1049 = vmatprep.subr.bf16.mxu0 %v3824_v9  ;;  %1091 = vmatpush1.bf16.msra.mxu1 %v3817_v27  ;;  %v4303_v9 = vld [vmem:[#allocation8 + $0xc] ss:$16 sps:$4 sm:$0xff]   ;;  %v4334_v27 = vld [vmem:[#allocation8 + $0xc0] ss:$16 sps:$4 sm:$0xff]  }
  0xd6   :  { %1092 = vmatprep.subr.bf16.mxu1 %v3826_v30  ;;  %v4333_v30 = vld [vmem:[#allocation8 + $0xac] ss:$16 sps:$4 sm:$0xff]  }
  0xd8   :  { %1050 = vmatpush1.bf16.msra.mxu0 %v3823_v14  ;;  %v4309_v14 = vld [vmem:[#allocation8 + $0x2c] ss:$16 sps:$4 sm:$0xff]  }
  0xd9   :  { %1051 = vmatprep.subr.bf16.mxu0 %v3832_v17  ;;  %1093 = vmatpush1.bf16.msra.mxu1 %v3825_v35  ;;  %v4307_v17 = vld [vmem:[#allocation8 + $0x28] ss:$16 sps:$4 sm:$0xff]   ;;  %v4346_v35 = vld [vmem:[#allocation8 + $0x100] ss:$16 sps:$4 sm:$0xff]  }
  0xda   :  { %1094 = vmatprep.subr.bf16.mxu1 %v3834_v38  ;;  %v4345_v38 = vld [vmem:[#allocation8 + $0xec] ss:$16 sps:$4 sm:$0xff]  }
  0xdc   :  { %1052 = vmatpush1.bf16.msra.mxu0 %v3831_v23  ;;  %v4321_v23 = vld [vmem:[#allocation8 + $0x6c] ss:$16 sps:$4 sm:$0xff]  }
  0xdd   :  { %1053 = vmatprep.subr.bf16.mxu0 %v3840_v26  ;;  %1095 = vmatpush1.bf16.msra.mxu1 %v3833_v43  ;;  %v4319_v26 = vld [vmem:[#allocation8 + $0x68] ss:$16 sps:$4 sm:$0xff]   ;;  %v4358_v43 = vld [vmem:[#allocation8 + $0x140] ss:$16 sps:$4 sm:$0xff]  }
  0xde   :  { %1096 = vmatprep.subr.bf16.mxu1 %v3842_v46  ;;  %v4357_v46 = vld [vmem:[#allocation8 + $0x12c] ss:$16 sps:$4 sm:$0xff]  }
  0xe0   :  { %1054 = vmatpush1.bf16.msra.mxu0 %v3839_v31  ;;  %v4340_v31 = vld [vmem:[#allocation8 + $0xe0] ss:$16 sps:$4 sm:$0xff]  }
  0xe1   :  { %1055 = vmatprep.subr.bf16.mxu0 %v3848_v34  ;;  %1097 = vmatpush1.bf16.msra.mxu1 %v3841_v50  ;;  %v4339_v34 = vld [vmem:[#allocation8 + $0xcc] ss:$16 sps:$4 sm:$0xff]   ;;  %v4370_v50 = vld [vmem:[#allocation8 + $0x180] ss:$16 sps:$4 sm:$0xff]  }
  0xe2   :  { %1098 = vmatprep.subr.bf16.mxu1 %v3850_v53  ;;  %v4369_v53 = vld [vmem:[#allocation8 + $0x16c] ss:$16 sps:$4 sm:$0xff]  }
  0xe4   :  { %1056 = vmatpush1.bf16.msra.mxu0 %v3847_v39  ;;  %v4352_v39 = vld [vmem:[#allocation8 + $0x120] ss:$16 sps:$4 sm:$0xff]  }
  0xe5   :  { %1057 = vmatprep.subr.bf16.mxu0 %v3856_v42  ;;  %1099 = vmatpush1.bf16.msra.mxu1 %v3849_v56  ;;  %v4351_v42 = vld [vmem:[#allocation8 + $0x10c] ss:$16 sps:$4 sm:$0xff]   ;;  %v4367_v56 = vld [vmem:[#allocation8 + $0x168] ss:$16 sps:$4 sm:$0xff]  }
  0xe6   :  { %1100 = vmatprep.subr.bf16.mxu1 %v3858_v59  ;;  %v4390_v59 = vld [vmem:[#allocation8 + $0x1e4] ss:$16 sps:$4 sm:$0xff]  }
  0xe8   :  { %1058 = vmatpush1.bf16.msra.mxu0 %v3855_v47  ;;  %v4364_v47 = vld [vmem:[#allocation8 + $0x160] ss:$16 sps:$4 sm:$0xff]  }
  0xe9   :  { %1059 = vmatprep.subr.bf16.mxu0 %v3864_v49  ;;  %1101 = vmatpush1.bf16.msra.mxu1 %v3857_v62  ;;  %v4363_v49 = vld [vmem:[#allocation8 + $0x14c] ss:$16 sps:$4 sm:$0xff]   ;;  %v4388_v62 = vld [vmem:[#allocation8 + $0x1e0] ss:$16 sps:$4 sm:$0xff]  }
  0xea   :  { %1102 = vmatprep.subr.bf16.mxu1 %v3866_v3  ;;  %v4385_v3 = vld [vmem:[#allocation8 + $0x1c8] ss:$16 sps:$4 sm:$0xff]  }
  0xec   :  { %1060 = vmatpush1.bf16.msra.mxu0 %v3863_v54  ;;  %v4376_v54 = vld [vmem:[#allocation8 + $0x1a0] ss:$16 sps:$4 sm:$0xff]  }
  0xed   :  { %1061 = vmatprep.subr.bf16.mxu0 %v3872_v55  ;;  %1103 = vmatpush1.bf16.msra.mxu1 %v3865_v5  ;;  %v4384_v55 = vld [vmem:[#allocation8 + $0x1c4] ss:$16 sps:$4 sm:$0xff]   ;;  %v4391_v5 = vld [vmem:[#allocation8 + $0x1e8] ss:$16 sps:$4 sm:$0xff]  }
  0xee   :  { %1104 = vmatprep.subr.bf16.mxu1 %v3874_v7  ;;  %v255_v7 = vlaneseq }
  0xf0   :  { %1062 = vmatpush1.bf16.msra.mxu0 %v3871_v61  ;;  %v4381_v61 = vld [vmem:[#allocation8 + $0x1ac] ss:$16 sps:$4 sm:$0xff]  }
  0xf1   :  { %2829 = vmatprep.subr.bf16.mxu0 %v4300_v60  ;;  %1105 = vmatpush1.bf16.msra.mxu1 %v3873_v10  ;;  %v4373_v60 = vld [vmem:[#allocation8 + $0x188] ss:$16 sps:$4 sm:$0xff]  }
  0xf2   :  { %3001 = vmatprep.subr.bf16.mxu1 %v4303_v9  ;;  %v5063_v10 = vld [vmem:[%s5191_s3] sm:$0xff] }
  0xf3   :  { %1064 = vmatmul.mubr.bf16.vlgmr.msra.gmra.mrb[4].mxu0 %v5047_v1 }
  0xf4   :  { %2830 = vmatpush1.bf16.msra.mxu0 %v4298_v2  ;;  %1107 = vmatmul.mubr.bf16.vlgmr.msra.gmra.mrb[4].mxu1 %v5047_v1  ;;  %v4327_v1 = vld [vmem:[#allocation8 + $0x8c] ss:$16 sps:$4 sm:$0xff]  }
  0xf5   :  { %2831 = vmatprep.subr.bf16.mxu0 %v4306_v4  ;;  %3002 = vmatpush1.bf16.msra.mxu1 %v4301_v13  ;;  %v4387_v2 = vld [vmem:[#allocation8 + $0x1cc] ss:$16 sps:$4 sm:$0xff]  }
  0xf6   :  { %3003 = vmatprep.subr.bf16.mxu1 %v4309_v14  ;;  %v4393_v4 = vld [vmem:[#allocation8 + $0x1ec] ss:$16 sps:$4 sm:$0xff]  }
  0xf8   :  { %2832 = vmatpush1.bf16.msra.mxu0 %v4304_v6  ;;  %v4399_v6 = vld [vmem:[#allocation8 + $0x20c] ss:$16 sps:$4 sm:$0xff]  }
  0xf9   :  { %2833 = vmatprep.subr.bf16.mxu0 %v4312_v8  ;;  %3004 = vmatpush1.bf16.msra.mxu1 %v4307_v17  ;;  %v5055_v8 = vshrl.u32 %v255_v7, 7  ;;  %v4411_v7 = vld [vmem:[#allocation8 + $0x24c] ss:$16 sps:$4 sm:$0xff]  }
  0xfa   :  { %3005 = vmatprep.subr.bf16.mxu1 %v4315_v18 }
  0xfb   :  { %v5058_v9 = vsub.s32 0, %v5055_v8 }
  0xfc   :  { %2834 = vmatpush1.bf16.msra.mxu0 %v4310_v11  ;;  %v5065_v11 = vld [vmem:[#allocation7] sm:$0xff] }
  0xfd   :  { %2835 = vmatprep.subr.bf16.mxu0 %v4318_v12  ;;  %3006 = vmatpush1.bf16.msra.mxu1 %v4313_v21  ;;  %v5068_v12 = vsub.s32 1, %v5055_v8  ;;  %v258_v14 = vrot.slane %v5065_v11, %v5058_v9 }
  0xfe   :  { %3007 = vmatprep.subr.bf16.mxu1 %v4321_v23 }
  0xff   :  { %v1166_v13 = vrot.slane %v5063_v10, %v5068_v12 }
 0x100   :  { %2836 = vmatpush1.bf16.msra.mxu0 %v4316_v15  ;;  %v1162_v15 = vrot.slane %v5063_v10, %v5058_v9 }
 0x101   :  { %2837 = vmatprep.subr.bf16.mxu0 %v4324_v16  ;;  %3008 = vmatpush1.bf16.msra.mxu1 %v4319_v26  ;;  %v262_v16 = vrot.slane %v5065_v11, %v5068_v12  ;;  %v1200_v18 = vpack.c.bf16 %v1166_v13, %v1166_v13 }
 0x102   :  { %3009 = vmatprep.subr.bf16.mxu1 %v4327_v1  ;;  %v1199_v21 = vpack.c.bf16 %v1162_v15, %v1162_v15 }
 0x104   :  { %2838 = vmatpush1.bf16.msra.mxu0 %v4322_v19 }
 0x105   :  { %2839 = vmatprep.subr.bf16.mxu0 %v4330_v20  ;;  %3010 = vmatpush1.bf16.msra.mxu1 %v4325_v29 }
 0x106   :  { %3011 = vmatprep.subr.bf16.mxu1 %v4333_v30  ;;  %v1215_v30 = vpack.i.b16 %v1200_v18, %v1200_v18  ;;  %v4409_v18 = vld [vmem:[#allocation8 + $0x248] ss:$16 sps:$4 sm:$0xff]  }
 0x108   :  { %2840 = vmatpush1.bf16.msra.mxu0 %v4328_v24 }
 0x109   :  { %2841 = vmatprep.subr.bf16.mxu0 %v4336_v25  ;;  %3012 = vmatpush1.bf16.msra.mxu1 %v4331_v33  ;;  %v1208_v33 = vpack.i.b16 %v1199_v21, %v1199_v21  ;;  %v4417_v21 = vld [vmem:[#allocation8 + $0x26c] ss:$16 sps:$4 sm:$0xff]  }
 0x10a   :  { %3013 = vmatprep.subr.bf16.mxu1 %v4339_v34 }
 0x10c   :  { %2842 = vmatpush1.bf16.msra.mxu0 %v4334_v27  ;;  %v5079_v27 = vsub.s32 2, %v5055_v8 }
 0x10d   :  { %2843 = vmatprep.subr.bf16.mxu0 %v4342_v28  ;;  %3014 = vmatpush1.bf16.msra.mxu1 %v4337_v37 }
 0x10e   :  { %3015 = vmatprep.subr.bf16.mxu1 %v4345_v38  ;;  %v266_v38 = vrot.slane %v5065_v11, %v5079_v27 }
 0x110   :  { %2844 = vmatpush1.bf16.msra.mxu0 %v4340_v31  ;;  %v5082_v31 = vsub.s32 3, %v5055_v8 }
 0x111   :  { %2845 = vmatprep.subr.bf16.mxu0 %v4348_v32  ;;  %3016 = vmatpush1.bf16.msra.mxu1 %v4343_v41  ;;  %v1220_v41 = vrot.slane %v1215_v30, %v5058_v9  ;;  %v4426_v30 = vld [vmem:[#allocation8 + $0x2a4] ss:$16 sps:$4 sm:$0xff]  }
 0x112   :  { %3017 = vmatprep.subr.bf16.mxu1 %v4351_v42  ;;  %v270_v42 = vrot.slane %v5065_v11, %v5082_v31 }
 0x114   :  { %2846 = vmatpush1.bf16.msra.mxu0 %v4346_v35  ;;  %v1174_v35 = vrot.slane %v5063_v10, %v5082_v31 }
 0x115   :  { %2847 = vmatprep.subr.bf16.mxu0 %v4354_v36  ;;  %3018 = vmatpush1.bf16.msra.mxu1 %v4349_v45 }
 0x116   :  { %3019 = vmatprep.subr.bf16.mxu1 %v4357_v46 }
 0x118   :  { %2848 = vmatpush1.bf16.msra.mxu0 %v4352_v39 }
 0x119   :  { %2849 = vmatprep.subr.bf16.mxu0 %v4360_v40  ;;  %3020 = vmatpush1.bf16.msra.mxu1 %v4355_v22 }
 0x11a   :  { %3021 = vmatprep.subr.bf16.mxu1 %v4363_v49 }
 0x11c   :  { %2850 = vmatpush1.bf16.msra.mxu0 %v4358_v43 }
 0x11d   :  { %2851 = vmatprep.subr.bf16.mxu0 %v4366_v44  ;;  %3022 = vmatpush1.bf16.msra.mxu1 %v4361_v52  ;;  %v1213_v44 = vrot.slane %v1208_v33, %v5058_v9  ;;  %v4402_v52 = vld [vmem:[#allocation8 + $0x224] ss:$16 sps:$4 sm:$0xff]   ;;  %v4424_v33 = vld [vmem:[#allocation8 + $0x2a0] ss:$16 sps:$4 sm:$0xff]  }
 0x11e   :  { %3023 = vmatprep.subr.bf16.mxu1 %v4369_v53 }
 0x120   :  { %2852 = vmatpush1.bf16.msra.mxu0 %v4364_v47  ;;  %v1202_v47 = vpack.c.bf16 %v1174_v35, %v1174_v35  ;;  %v4432_v35 = vld [vmem:[#allocation8 + $0x2c4] ss:$16 sps:$4 sm:$0xff]  }
 0x121   :  { %2853 = vmatprep.subr.bf16.mxu0 %v4372_v48  ;;  %3024 = vmatpush1.bf16.msra.mxu1 %v4367_v56  ;;  %v4394_v48 = vld [vmem:[#allocation8 + $0x200] ss:$16 sps:$4 sm:$0xff]   ;;  %v4405_v56 = vld [vmem:[#allocation8 + $0x22c] ss:$16 sps:$4 sm:$0xff]  }
 0x122   :  { %3025 = vmatprep.subr.bf16.mxu1 %v4375_v57 }
 0x124   :  { %2854 = vmatpush1.bf16.msra.mxu0 %v4370_v50 }
 0x125   :  { %2855 = vmatprep.subr.bf16.mxu0 %v4378_v51  ;;  %3026 = vmatpush1.bf16.msra.mxu1 %v4373_v60  ;;  %v4397_v51 = vld [vmem:[#allocation8 + $0x208] ss:$16 sps:$4 sm:$0xff]  }
 0x126   :  { %3027 = vmatprep.subr.bf16.mxu1 %v4381_v61 }
 0x128   :  { %2856 = vmatpush1.bf16.msra.mxu0 %v4376_v54 }
 0x129   :  { %2857 = vmatprep.subr.bf16.mxu0 %v4384_v55  ;;  %3028 = vmatpush1.bf16.msra.mxu1 %v4379_v0 }
 0x12a   :  { %3029 = vmatprep.subr.bf16.mxu1 %v4387_v2  ;;  %v4400_v2 = vld [vmem:[#allocation8 + $0x220] ss:$16 sps:$4 sm:$0xff]  }
 0x12c   :  { %2858 = vmatpush1.bf16.msra.mxu0 %v4382_v58 }
 0x12d   :  { %2859 = vmatprep.subr.bf16.mxu0 %v4390_v59  ;;  %3030 = vmatpush1.bf16.msra.mxu1 %v4385_v3  ;;  %v4403_v3 = vld [vmem:[#allocation8 + $0x228] ss:$16 sps:$4 sm:$0xff]  }
 0x12e   :  { %3031 = vmatprep.subr.bf16.mxu1 %v4393_v4 }
 0x130   :  { %2860 = vmatpush1.bf16.msra.mxu0 %v4388_v62  ;;  %v1229_v62 = vpack.i.b16 %v1202_v47, %v1202_v47  ;;  %v4450_v47 = vld [vmem:[#allocation8 + $0x324] ss:$16 sps:$4 sm:$0xff]  }
 0x131   :  { %2872 = vmatprep.subr.bf16.mxu0 %v4396_v63  ;;  %3032 = vmatpush1.bf16.msra.mxu1 %v4391_v5 }
 0x132   :  { %3044 = vmatprep.subr.bf16.mxu1 %v4399_v6  ;;  %v4408_v6 = vld [vmem:[#allocation8 + $0x244] ss:$16 sps:$4 sm:$0xff]   ;;  %v1234_v15 = vrot.slane %v1229_v62, %v5058_v9  ;;  %v4466_v62 = vld [vmem:[#allocation8 + $0x380] ss:$16 sps:$4 sm:$0xff]  }
 0x186   :  { %v979_v17 = vpop.f32.mrb[0].mxu0  ;;  %v1022_v46 = vpop.f32.mrb[0].mxu1 }
 0x187   :  { %v980_v19 = vadd.f32 %v979_v17, %v258_v14  ;;  %v981_v20 = vpop.f32.mrb[1].mxu0  ;;  %v1023_v22 = vadd.f32 %v1022_v46, %v266_v38  ;;  %v1024_v49 = vpop.f32.mrb[1].mxu1  ;;  %v4406_v17 = vld [vmem:[#allocation8 + $0x240] ss:$16 sps:$4 sm:$0xff]   ;;  %v4445_v46 = vld [vmem:[#allocation8 + $0x308] ss:$16 sps:$4 sm:$0xff]  }
 0x188   :  { %v982_v23 = vadd.f32 %v981_v20, %v262_v16  ;;  %v983_v24 = vpop.f32.mrb[2].mxu0  ;;  %v1025_v53 = vadd.f32 %v1024_v49, %v270_v42  ;;  %v1026_v54 = vpop.f32.mrb[2].mxu1  ;;  %v4414_v20 = vld [vmem:[#allocation8 + $0x264] ss:$16 sps:$4 sm:$0xff]   ;;  %v4451_v49 = vld [vmem:[#allocation8 + $0x328] ss:$16 sps:$4 sm:$0xff]  }
 0x189   :  { %v1117_v25 = vmul.f32 0.01, %v980_v19  ;;  %v984_v26 = vadd.f32 %v983_v24, %v258_v14  ;;  %v985_v1 = vpop.f32.mrb[3].mxu0  ;;  %v1119_v57 = vmul.f32 0.01, %v1023_v22  ;;  %v1027_v58 = vadd.f32 %v1026_v54, %v266_v38  ;;  %v1028_v59 = vpop.f32.mrb[3].mxu1 }
 0x18a   :  { %v1118_v28 = vmul.f32 0.01, %v982_v23  ;;  %v986_v29 = vadd.f32 %v985_v1, %v262_v16  ;;  %v1120_v60 = vmul.f32 0.01, %v1025_v53  ;;  %v1029_v61 = vadd.f32 %v1028_v59, %v270_v42  ;;  %v4412_v24 = vld [vmem:[#allocation8 + $0x260] ss:$16 sps:$4 sm:$0xff]  }
 0x18b   :  { %v1125_v32 = vmul.f32 0.01, %v984_v26  ;;  %v1133_v36 = vmax.f32 %v980_v19, %v1117_v25  ;;  %v1135_v63 = vmax.f32 %v1023_v22, %v1119_v57  ;;  %v1127_v0 = vmul.f32 0.01, %v1027_v58  ;;  %v4415_v25 = vld [vmem:[#allocation8 + $0x268] ss:$16 sps:$4 sm:$0xff]  }
 0x18c   :  { %v1126_v34 = vmul.f32 0.01, %v986_v29  ;;  %v1134_v39 = vmax.f32 %v982_v23, %v1118_v28  ;;  %v1136_v4 = vmax.f32 %v1025_v53, %v1120_v60  ;;  %v1128_v5 = vmul.f32 0.01, %v1029_v61  ;;  %v4423_v1 = vld [vmem:[#allocation8 + $0x28c] ss:$16 sps:$4 sm:$0xff]  }
 0x18d   :  { %v1141_v37 = vmax.f32 %v984_v26, %v1125_v32  ;;  %v1143_v13 = vmax.f32 %v1027_v58, %v1127_v0  ;;  %v4420_v26 = vld [vmem:[#allocation8 + $0x284] ss:$16 sps:$4 sm:$0xff]   ;;  %v4418_v28 = vld [vmem:[#allocation8 + $0x280] ss:$16 sps:$4 sm:$0xff]   ;;  %v4429_v32 = vld [vmem:[#allocation8 + $0x2ac] ss:$16 sps:$4 sm:$0xff]   ;;  %v1170_v0 = vrot.slane %v5063_v10, %v5079_v27 }
 0x18e   :  { %v1142_v40 = vmax.f32 %v986_v29, %v1126_v34  ;;  %v1144_v14 = vmax.f32 %v1029_v61, %v1128_v5  ;;  %v4421_v29 = vld [vmem:[#allocation8 + $0x288] ss:$16 sps:$4 sm:$0xff]   ;;  %v4448_v22 = vld [vmem:[#allocation8 + $0x320] ss:$16 sps:$4 sm:$0xff]   ;;  %v4462_v54 = vld [vmem:[#allocation8 + $0x364] ss:$16 sps:$4 sm:$0xff]  }
 0x18f   :  { %v1149_v43 = vpack.c.bf16 %v1141_v37, %v1133_v36  ;;  %v5093_v16 = vpack.c.bf16 %v1143_v13, %v1135_v63  ;;  %v4427_v34 = vld [vmem:[#allocation8 + $0x2a8] ss:$16 sps:$4 sm:$0xff]   ;;  %v4435_v36 = vld [vmem:[#allocation8 + $0x2cc] ss:$16 sps:$4 sm:$0xff]   ;;  %v4430_v37 = vld [vmem:[#allocation8 + $0x2c0] ss:$16 sps:$4 sm:$0xff]  }
 0x190   :  { %v1150_v45 = vpack.c.bf16 %v1142_v40, %v1134_v39  ;;  %v1152_v19 = vpack.c.bf16 %v1144_v14, %v1136_v4  ;;  %v4433_v38 = vld [vmem:[#allocation8 + $0x2c8] ss:$16 sps:$4 sm:$0xff]   ;;  %v4438_v39 = vld [vmem:[#allocation8 + $0x2e4] ss:$16 sps:$4 sm:$0xff]   ;;  %v4441_v40 = vld [vmem:[#allocation8 + $0x2ec] ss:$16 sps:$4 sm:$0xff]  }
 0x191   :  { %v1263_v55 = vadd.bf16 %v1213_v44, %v1149_v43  ;;  %v4439_v42 = vld [vmem:[#allocation8 + $0x2e8] ss:$16 sps:$4 sm:$0xff]   ;;  %v4444_v43 = vld [vmem:[#allocation8 + $0x304] ss:$16 sps:$4 sm:$0xff]   ;;  %v4447_v44 = vld [vmem:[#allocation8 + $0x30c] ss:$16 sps:$4 sm:$0xff]  }
 0x192   :  { %v1264_v50 = vadd.bf16 %v1220_v41, %v1150_v45  ;;  %v1266_v23 = vadd.bf16 %v1234_v15, %v1152_v19  ;;  %v4436_v41 = vld [vmem:[#allocation8 + $0x2e0] ss:$16 sps:$4 sm:$0xff]   ;;  %v4457_v53 = vld [vmem:[#allocation8 + $0x348] ss:$16 sps:$4 sm:$0xff]   ;;  %v4468_v58 = vld [vmem:[#allocation8 + $0x384] ss:$16 sps:$4 sm:$0xff]   ;;  %v1201_v15 = vpack.c.bf16 %v1170_v0, %v1170_v0 }
 0x193   :  { %v4442_v45 = vld [vmem:[#allocation8 + $0x300] ss:$16 sps:$4 sm:$0xff]   ;;  %v4463_v57 = vld [vmem:[#allocation8 + $0x368] ss:$16 sps:$4 sm:$0xff]   ;;  %v4471_v59 = vld [vmem:[#allocation8 + $0x38c] ss:$16 sps:$4 sm:$0xff]  }
 0x194   :  { %2861 = vmatprep.mubr.bf16.mxu0 %v1264_v50  ;;  %3033 = vmatprep.mubr.bf16.mxu1 %v1264_v50  ;;  %v4456_v50 = vld [vmem:[#allocation8 + $0x344] ss:$16 sps:$4 sm:$0xff]   ;;  %v273_v60 = vsub.s32 4, %v5055_v8  ;;  %v277_v61 = vsub.s32 5, %v5055_v8  ;;  %v4469_v63 = vld [vmem:[#allocation8 + $0x388] ss:$16 sps:$4 sm:$0xff]  }
 0x195   :  { %2862 = vmatmul.mubr.bf16.vlgmr.msra.gmra.mrb[8].mxu0 %v1263_v55  ;;  %3034 = vmatmul.mubr.bf16.vlgmr.msra.gmra.mrb[8].mxu1 %v1263_v55  ;;  %v4465_v55 = vld [vmem:[#allocation8 + $0x36c] ss:$16 sps:$4 sm:$0xff]   ;;  %v4475_v13 = vld [vmem:[#allocation8 + $0x3a8] ss:$16 sps:$4 sm:$0xff]  }
 0x196   :  { %2873 = vmatpush1.bf16.msra.mxu0 %v4394_v48  ;;  %3045 = vmatpush1.bf16.msra.mxu1 %v4397_v51  ;;  %v4453_v48 = vld [vmem:[#allocation8 + $0x32c] ss:$16 sps:$4 sm:$0xff]   ;;  %v274_v4 = vrot.slane %v5065_v11, %v273_v60  ;;  %v278_v5 = vrot.slane %v5065_v11, %v277_v61 }
 0x197   :  { %2874 = vmatprep.subr.bf16.mxu0 %v4402_v52  ;;  %3046 = vmatprep.subr.bf16.mxu1 %v4405_v56  ;;  %v4459_v51 = vld [vmem:[#allocation8 + $0x34c] ss:$16 sps:$4 sm:$0xff]   ;;  %v4454_v52 = vld [vmem:[#allocation8 + $0x340] ss:$16 sps:$4 sm:$0xff]  }
 0x198   :  { %2904 = vmatprep.mubr.bf16.mxu0 %v1266_v23  ;;  %3076 = vmatprep.mubr.bf16.mxu1 %v1266_v23  ;;  %v4460_v56 = vld [vmem:[#allocation8 + $0x360] ss:$16 sps:$4 sm:$0xff]  }
 0x19a   :  { %2875 = vmatpush1.bf16.msra.mxu0 %v4400_v2  ;;  %3047 = vmatpush1.bf16.msra.mxu1 %v4403_v3  ;;  %v4474_v2 = vld [vmem:[#allocation8 + $0x3a4] ss:$16 sps:$4 sm:$0xff]   ;;  %v4477_v3 = vld [vmem:[#allocation8 + $0x3ac] ss:$16 sps:$4 sm:$0xff]  }
 0x19b   :  { %2876 = vmatprep.subr.bf16.mxu0 %v4408_v6  ;;  %3048 = vmatprep.subr.bf16.mxu1 %v4411_v7  ;;  %v1182_v6 = vrot.slane %v5063_v10, %v277_v61  ;;  %v4472_v7 = vld [vmem:[#allocation8 + $0x3a0] ss:$16 sps:$4 sm:$0xff]  }
 0x19d   :  { %v1204_v23 = vpack.c.bf16 %v1182_v6, %v1182_v6 }
 0x19e   :  { %2877 = vmatpush1.bf16.msra.mxu0 %v4406_v17  ;;  %3049 = vmatpush1.bf16.msra.mxu1 %v4409_v18  ;;  %v4480_v17 = vld [vmem:[#allocation8 + $0x3c4] ss:$16 sps:$4 sm:$0xff]   ;;  %v4483_v18 = vld [vmem:[#allocation8 + $0x3cc] ss:$16 sps:$4 sm:$0xff]  }
 0x19f   :  { %2878 = vmatprep.subr.bf16.mxu0 %v4414_v20  ;;  %3050 = vmatprep.subr.bf16.mxu1 %v4417_v21 }
 0x1a2   :  { %2879 = vmatpush1.bf16.msra.mxu0 %v4412_v24  ;;  %3051 = vmatpush1.bf16.msra.mxu1 %v4415_v25  ;;  %v4478_v25 = vld [vmem:[#allocation8 + $0x3c0] ss:$16 sps:$4 sm:$0xff]  }
 0x1a3   :  { %2880 = vmatprep.subr.bf16.mxu0 %v4420_v26  ;;  %3052 = vmatprep.subr.bf16.mxu1 %v4423_v1 }
 0x1a6   :  { %2881 = vmatpush1.bf16.msra.mxu0 %v4418_v28  ;;  %3053 = vmatpush1.bf16.msra.mxu1 %v4421_v29  ;;  %v281_v29 = vsub.s32 6, %v5055_v8 }
 0x1a7   :  { %2882 = vmatprep.subr.bf16.mxu0 %v4426_v30  ;;  %3054 = vmatprep.subr.bf16.mxu1 %v4429_v32  ;;  %v4481_v30 = vld [vmem:[#allocation8 + $0x3c8] ss:$16 sps:$4 sm:$0xff]  }
 0x1aa   :  { %2883 = vmatpush1.bf16.msra.mxu0 %v4424_v33  ;;  %3055 = vmatpush1.bf16.msra.mxu1 %v4427_v34  ;;  %v285_v34 = vsub.s32 7, %v5055_v8 }
 0x1ab   :  { %2884 = vmatprep.subr.bf16.mxu0 %v4432_v35  ;;  %3056 = vmatprep.subr.bf16.mxu1 %v4435_v36  ;;  %v1222_v35 = vpack.i.b16 %v1201_v15, %v1201_v15  ;;  %v4486_v36 = vld [vmem:[#allocation8 + $0x3e4] ss:$16 sps:$4 sm:$0xff]   ;;  %v4499_v15 = vld [vmem:[#allocation8 + $0x428] ss:$16 sps:$4 sm:$0xff]  }
 0x1ae   :  { %2885 = vmatpush1.bf16.msra.mxu0 %v4430_v37  ;;  %3057 = vmatpush1.bf16.msra.mxu1 %v4433_v38  ;;  %v4489_v37 = vld [vmem:[#allocation8 + $0x3ec] ss:$16 sps:$4 sm:$0xff]  }
 0x1af   :  { %2886 = vmatprep.subr.bf16.mxu0 %v4438_v39  ;;  %3058 = vmatprep.subr.bf16.mxu1 %v4441_v40 }
 0x1b2   :  { %2887 = vmatpush1.bf16.msra.mxu0 %v4436_v41  ;;  %3059 = vmatpush1.bf16.msra.mxu1 %v4439_v42  ;;  %v1243_v41 = vpack.i.b16 %v1204_v23, %v1204_v23 }
 0x1b3   :  { %2888 = vmatprep.subr.bf16.mxu0 %v4444_v43  ;;  %3060 = vmatprep.subr.bf16.mxu1 %v4447_v44  ;;  %v282_v44 = vrot.slane %v5065_v11, %v281_v29 }
 0x1b6   :  { %2889 = vmatpush1.bf16.msra.mxu0 %v4442_v45  ;;  %3061 = vmatpush1.bf16.msra.mxu1 %v4445_v46  ;;  %v4484_v45 = vld [vmem:[#allocation8 + $0x3e0] ss:$16 sps:$4 sm:$0xff]   ;;  %v4487_v46 = vld [vmem:[#allocation8 + $0x3e8] ss:$16 sps:$4 sm:$0xff]  }
 0x1b7   :  { %2890 = vmatprep.subr.bf16.mxu0 %v4450_v47  ;;  %3062 = vmatprep.subr.bf16.mxu1 %v4453_v48  ;;  %v286_v48 = vrot.slane %v5065_v11, %v285_v34 }
 0x1ba   :  { %2891 = vmatpush1.bf16.msra.mxu0 %v4448_v22  ;;  %3063 = vmatpush1.bf16.msra.mxu1 %v4451_v49  ;;  %v1227_v22 = vrot.slane %v1222_v35, %v5058_v9  ;;  %v4492_v49 = vld [vmem:[#allocation8 + $0x404] ss:$16 sps:$4 sm:$0xff]   ;;  %v4519_v35 = vld [vmem:[#allocation8 + $0x48c] ss:$16 sps:$4 sm:$0xff]  }
 0x1bb   :  { %2892 = vmatprep.subr.bf16.mxu0 %v4456_v50  ;;  %3064 = vmatprep.subr.bf16.mxu1 %v4459_v51  ;;  %v4495_v50 = vld [vmem:[#allocation8 + $0x40c] ss:$16 sps:$4 sm:$0xff]  }
 0x1be   :  { %2893 = vmatpush1.bf16.msra.mxu0 %v4454_v52  ;;  %3065 = vmatpush1.bf16.msra.mxu1 %v4457_v53  ;;  %v1248_v53 = vrot.slane %v1243_v41, %v5058_v9  ;;  %v4523_v41 = vld [vmem:[#allocation8 + $0x4a8] ss:$16 sps:$4 sm:$0xff]  }
 0x1bf   :  { %2894 = vmatprep.subr.bf16.mxu0 %v4462_v54  ;;  %3066 = vmatprep.subr.bf16.mxu1 %v4465_v55  ;;  %v4490_v55 = vld [vmem:[#allocation8 + $0x400] ss:$16 sps:$4 sm:$0xff]  }
 0x1c2   :  { %2895 = vmatpush1.bf16.msra.mxu0 %v4460_v56  ;;  %3067 = vmatpush1.bf16.msra.mxu1 %v4463_v57 }
 0x1c3   :  { %2896 = vmatprep.subr.bf16.mxu0 %v4468_v58  ;;  %3068 = vmatprep.subr.bf16.mxu1 %v4471_v59  ;;  %v4493_v58 = vld [vmem:[#allocation8 + $0x408] ss:$16 sps:$4 sm:$0xff]   ;;  %v4498_v59 = vld [vmem:[#allocation8 + $0x424] ss:$16 sps:$4 sm:$0xff]  }
 0x1c6   :  { %2897 = vmatpush1.bf16.msra.mxu0 %v4466_v62  ;;  %3069 = vmatpush1.bf16.msra.mxu1 %v4469_v63  ;;  %v1065_v14 = vpop.f32.mrb[4].mxu0  ;;  %v1265_v62 = vadd.bf16 %v1227_v22, %v5093_v16  ;;  %v4501_v63 = vld [vmem:[#allocation8 + $0x42c] ss:$16 sps:$4 sm:$0xff]   ;;  %v4504_v16 = vld [vmem:[#allocation8 + $0x444] ss:$16 sps:$4 sm:$0xff]  }
 0x1c7   :  { %2898 = vmatprep.subr.bf16.mxu0 %v4474_v2  ;;  %3070 = vmatprep.subr.bf16.mxu1 %v4477_v3  ;;  %v1066_v19 = vadd.f32 %v1065_v14, %v274_v4  ;;  %v1067_v20 = vpop.f32.mrb[5].mxu0  ;;  %v1108_v54 = vpop.f32.mrb[4].mxu1  ;;  %v4496_v14 = vld [vmem:[#allocation8 + $0x420] ss:$16 sps:$4 sm:$0xff]   ;;  %v4535_v22 = vld [vmem:[#allocation8 + $0x4e8] ss:$16 sps:$4 sm:$0xff]  }
 0x1c8   :  { %v1068_v21 = vadd.f32 %v1067_v20, %v278_v5  ;;  %v1069_v24 = vpop.f32.mrb[6].mxu0  ;;  %v1109_v56 = vadd.f32 %v1108_v54, %v282_v44  ;;  %v1110_v57 = vpop.f32.mrb[5].mxu1  ;;  %v4546_v54 = vld [vmem:[#allocation8 + $0x524] ss:$16 sps:$4 sm:$0xff]  }
 0x1c9   :  { %v1121_v26 = vmul.f32 0.01, %v1066_v19  ;;  %v1070_v1 = vadd.f32 %v1069_v24, %v274_v4  ;;  %v1071_v28 = vpop.f32.mrb[7].mxu0  ;;  %v1111_v11 = vadd.f32 %v1110_v57, %v286_v48  ;;  %v1112_v61 = vpop.f32.mrb[6].mxu1  ;;  %v4502_v24 = vld [vmem:[#allocation8 + $0x440] ss:$16 sps:$4 sm:$0xff]  }
 0x1ca   :  { %2899 = vmatpush1.bf16.msra.mxu0 %v4472_v7  ;;  %3071 = vmatpush1.bf16.msra.mxu1 %v4475_v13  ;;  %v1122_v32 = vmul.f32 0.01, %v1068_v21  ;;  %v1072_v33 = vadd.f32 %v1071_v28, %v278_v5  ;;  %v1123_v0 = vmul.f32 0.01, %v1109_v56  ;;  %v1113_v2 = vadd.f32 %v1112_v61, %v282_v44  ;;  %v1114_v3 = vpop.f32.mrb[7].mxu1 }
 0x1cb   :  { %2900 = vmatprep.subr.bf16.mxu0 %v4480_v17  ;;  %3072 = vmatprep.subr.bf16.mxu1 %v4483_v18  ;;  %v1137_v38 = vmax.f32 %v1066_v19, %v1121_v26  ;;  %v1129_v39 = vmul.f32 0.01, %v1070_v1  ;;  %v1124_v5 = vmul.f32 0.01, %v1111_v11  ;;  %v1115_v6 = vadd.f32 %v1114_v3, %v286_v48  ;;  %v4507_v19 = vld [vmem:[#allocation8 + $0x44c] ss:$16 sps:$4 sm:$0xff]  }
 0x1cc   :  { %v1138_v40 = vmax.f32 %v1068_v21, %v1122_v32  ;;  %v1130_v42 = vmul.f32 0.01, %v1072_v33  ;;  %v1139_v7 = vmax.f32 %v1109_v56, %v1123_v0  ;;  %v1131_v13 = vmul.f32 0.01, %v1113_v2  ;;  %v4513_v28 = vld [vmem:[#allocation8 + $0x46c] ss:$16 sps:$4 sm:$0xff]  }
 0x1cd   :  { %v1145_v43 = vmax.f32 %v1070_v1, %v1129_v39  ;;  %v1140_v17 = vmax.f32 %v1111_v11, %v1124_v5  ;;  %v1132_v18 = vmul.f32 0.01, %v1115_v6  ;;  %v4510_v1 = vld [vmem:[#allocation8 + $0x464] ss:$16 sps:$4 sm:$0xff]   ;;  %v4511_v32 = vld [vmem:[#allocation8 + $0x468] ss:$16 sps:$4 sm:$0xff]  }
 0x1ce   :  { %2901 = vmatpush1.bf16.msra.mxu0 %v4478_v25  ;;  %3073 = vmatpush1.bf16.msra.mxu1 %v4481_v30  ;;  %v1146_v47 = vmax.f32 %v1072_v33, %v1130_v42  ;;  %v1147_v20 = vmax.f32 %v1113_v2, %v1131_v13  ;;  %v4505_v25 = vld [vmem:[#allocation8 + $0x448] ss:$16 sps:$4 sm:$0xff]   ;;  %v4508_v30 = vld [vmem:[#allocation8 + $0x460] ss:$16 sps:$4 sm:$0xff]   ;;  %v4516_v33 = vld [vmem:[#allocation8 + $0x484] ss:$16 sps:$4 sm:$0xff]  }
 0x1cf   :  { %2902 = vmatprep.subr.bf16.mxu0 %v4486_v36  ;;  %3074 = vmatprep.subr.bf16.mxu1 %v4489_v37  ;;  %v5113_v51 = vpack.c.bf16 %v1145_v43, %v1137_v38  ;;  %v1148_v21 = vmax.f32 %v1115_v6, %v1132_v18  ;;  %v4514_v36 = vld [vmem:[#allocation8 + $0x480] ss:$16 sps:$4 sm:$0xff]   ;;  %v4517_v37 = vld [vmem:[#allocation8 + $0x488] ss:$16 sps:$4 sm:$0xff]   ;;  %v4522_v38 = vld [vmem:[#allocation8 + $0x4a4] ss:$16 sps:$4 sm:$0xff]  }
 0x1d0   :  { %v1154_v52 = vpack.c.bf16 %v1146_v47, %v1138_v40  ;;  %v5117_v23 = vpack.c.bf16 %v1147_v20, %v1139_v7  ;;  %v4525_v39 = vld [vmem:[#allocation8 + $0x4ac] ss:$16 sps:$4 sm:$0xff]   ;;  %v4520_v40 = vld [vmem:[#allocation8 + $0x4a0] ss:$16 sps:$4 sm:$0xff]   ;;  %v4528_v42 = vld [vmem:[#allocation8 + $0x4c4] ss:$16 sps:$4 sm:$0xff]   ;;  %v1178_v7 = vrot.slane %v5063_v10, %v273_v60 }
 0x1d1   :  { %v5119_v26 = vpack.c.bf16 %v1148_v21, %v1140_v17  ;;  %v4531_v43 = vld [vmem:[#allocation8 + $0x4cc] ss:$16 sps:$4 sm:$0xff]   ;;  %v4526_v44 = vld [vmem:[#allocation8 + $0x4c0] ss:$16 sps:$4 sm:$0xff]   ;;  %v4547_v57 = vld [vmem:[#allocation8 + $0x528] ss:$16 sps:$4 sm:$0xff]  }
 0x1d2   :  { %2903 = vmatpush1.bf16.msra.mxu0 %v4484_v45  ;;  %3075 = vmatpush1.bf16.msra.mxu1 %v4487_v46  ;;  %v1268_v4 = vadd.bf16 %v1248_v53, %v1154_v52  ;;  %v4529_v45 = vld [vmem:[#allocation8 + $0x4c8] ss:$16 sps:$4 sm:$0xff]   ;;  %v4534_v46 = vld [vmem:[#allocation8 + $0x4e4] ss:$16 sps:$4 sm:$0xff]   ;;  %v4537_v47 = vld [vmem:[#allocation8 + $0x4ec] ss:$16 sps:$4 sm:$0xff]  }
 0x1d3   :  { %2915 = vmatprep.subr.bf16.mxu0 %v4492_v49  ;;  %3087 = vmatprep.subr.bf16.mxu1 %v4495_v50  ;;  %v4532_v48 = vld [vmem:[#allocation8 + $0x4e0] ss:$16 sps:$4 sm:$0xff]   ;;  %v4540_v49 = vld [vmem:[#allocation8 + $0x504] ss:$16 sps:$4 sm:$0xff]   ;;  %v4543_v50 = vld [vmem:[#allocation8 + $0x50c] ss:$16 sps:$4 sm:$0xff]  }
 0x1d4   :  { %v4538_v52 = vld [vmem:[#allocation8 + $0x500] ss:$16 sps:$4 sm:$0xff]   ;;  %v4541_v53 = vld [vmem:[#allocation8 + $0x508] ss:$16 sps:$4 sm:$0xff]   ;;  %v4564_v3 = vld [vmem:[#allocation8 + $0x584] ss:$16 sps:$4 sm:$0xff]  }
 0x1d5   :  { %2905 = vmatmul.mubr.bf16.vlgmr.msra.gmra.mrb[8].mxu0 %v1265_v62  ;;  %3077 = vmatmul.mubr.bf16.vlgmr.msra.gmra.mrb[8].mxu1 %v1265_v62  ;;  %v4544_v56 = vld [vmem:[#allocation8 + $0x520] ss:$16 sps:$4 sm:$0xff]   ;;  %v4553_v61 = vld [vmem:[#allocation8 + $0x548] ss:$16 sps:$4 sm:$0xff]   ;;  %v4558_v62 = vld [vmem:[#allocation8 + $0x564] ss:$16 sps:$4 sm:$0xff]  }
 0x1d6   :  { %2916 = vmatpush1.bf16.msra.mxu0 %v4490_v55  ;;  %3088 = vmatpush1.bf16.msra.mxu1 %v4493_v58  ;;  %v4549_v55 = vld [vmem:[#allocation8 + $0x52c] ss:$16 sps:$4 sm:$0xff]   ;;  %v4552_v58 = vld [vmem:[#allocation8 + $0x544] ss:$16 sps:$4 sm:$0xff]   ;;  %v4550_v11 = vld [vmem:[#allocation8 + $0x540] ss:$16 sps:$4 sm:$0xff]  }
 0x1d7   :  { %2917 = vmatprep.subr.bf16.mxu0 %v4498_v59  ;;  %3089 = vmatprep.subr.bf16.mxu1 %v4501_v63  ;;  %v4555_v59 = vld [vmem:[#allocation8 + $0x54c] ss:$16 sps:$4 sm:$0xff]   ;;  %v4556_v0 = vld [vmem:[#allocation8 + $0x560] ss:$16 sps:$4 sm:$0xff]   ;;  %v4559_v2 = vld [vmem:[#allocation8 + $0x568] ss:$16 sps:$4 sm:$0xff]  }
 0x1d8   :  { %2947 = vmatprep.mubr.bf16.mxu0 %v1268_v4  ;;  %3119 = vmatprep.mubr.bf16.mxu1 %v1268_v4  ;;  %v4561_v63 = vld [vmem:[#allocation8 + $0x56c] ss:$16 sps:$4 sm:$0xff]   ;;  %v4562_v5 = vld [vmem:[#allocation8 + $0x580] ss:$16 sps:$4 sm:$0xff]   ;;  %v4565_v6 = vld [vmem:[#allocation8 + $0x588] ss:$16 sps:$4 sm:$0xff]  }
 0x1d9   :  { %v4567_v4 = vld [vmem:[#allocation8 + $0x58c] ss:$16 sps:$4 sm:$0xff]   ;;  %v4570_v13 = vld [vmem:[#allocation8 + $0x5a4] ss:$16 sps:$4 sm:$0xff]   ;;  %v4568_v17 = vld [vmem:[#allocation8 + $0x5a0] ss:$16 sps:$4 sm:$0xff]  }
 0x1da   :  { %2918 = vmatpush1.bf16.msra.mxu0 %v4496_v14  ;;  %3090 = vmatpush1.bf16.msra.mxu1 %v4499_v15  ;;  %v4573_v14 = vld [vmem:[#allocation8 + $0x5ac] ss:$16 sps:$4 sm:$0xff]   ;;  %v1190_v15 = vrot.slane %v5063_v10, %v285_v34  ;;  %v4571_v18 = vld [vmem:[#allocation8 + $0x5a8] ss:$16 sps:$4 sm:$0xff]   ;;  %v4574_v60 = vld [vmem:[#allocation8 + $0x5c0] ss:$16 sps:$4 sm:$0xff]  }
 0x1db   :  { %2919 = vmatprep.subr.bf16.mxu0 %v4504_v16  ;;  %3091 = vmatprep.subr.bf16.mxu1 %v4507_v19  ;;  %v1203_v16 = vpack.c.bf16 %v1178_v7, %v1178_v7  ;;  %v4576_v19 = vld [vmem:[#allocation8 + $0x5c4] ss:$16 sps:$4 sm:$0xff]   ;;  %v4579_v20 = vld [vmem:[#allocation8 + $0x5cc] ss:$16 sps:$4 sm:$0xff]   ;;  %v4634_v7 = vld [vmem:[#allocation8 + $0x700] ss:$16 sps:$4 sm:$0xff]  }
 0x1dc   :  { %v1206_v21 = vpack.c.bf16 %v1190_v15, %v1190_v15  ;;  %v4645_v15 = vld [vmem:[#allocation8 + $0x72c] ss:$16 sps:$4 sm:$0xff]  }
 0x1de   :  { %2920 = vmatpush1.bf16.msra.mxu0 %v4502_v24  ;;  %3092 = vmatpush1.bf16.msra.mxu1 %v4505_v25  ;;  %v4577_v24 = vld [vmem:[#allocation8 + $0x5c8] ss:$16 sps:$4 sm:$0xff]   ;;  %v1236_v25 = vpack.i.b16 %v1203_v16, %v1203_v16  ;;  %v1257_v34 = vpack.i.b16 %v1206_v21, %v1206_v21  ;;  %v4648_v16 = vld [vmem:[#allocation8 + $0x744] ss:$16 sps:$4 sm:$0xff]  }
 0x1df   :  { %2921 = vmatprep.subr.bf16.mxu0 %v4510_v1  ;;  %3093 = vmatprep.subr.bf16.mxu1 %v4513_v28  ;;  %v4582_v1 = vld [vmem:[#allocation8 + $0x5e4] ss:$16 sps:$4 sm:$0xff]   ;;  %v4585_v28 = vld [vmem:[#allocation8 + $0x5ec] ss:$16 sps:$4 sm:$0xff]   ;;  %v4649_v21 = vld [vmem:[#allocation8 + $0x748] ss:$16 sps:$4 sm:$0xff]  }
 0x1e2   :  { %2922 = vmatpush1.bf16.msra.mxu0 %v4508_v30  ;;  %3094 = vmatpush1.bf16.msra.mxu1 %v4511_v32  ;;  %v4580_v30 = vld [vmem:[#allocation8 + $0x5e0] ss:$16 sps:$4 sm:$0xff]   ;;  %v4583_v32 = vld [vmem:[#allocation8 + $0x5e8] ss:$16 sps:$4 sm:$0xff]  }
 0x1e3   :  { %2923 = vmatprep.subr.bf16.mxu0 %v4516_v33  ;;  %3095 = vmatprep.subr.bf16.mxu1 %v4519_v35  ;;  %v1241_v33 = vrot.slane %v1236_v25, %v5058_v9  ;;  %v4588_v35 = vld [vmem:[#allocation8 + $0x604] ss:$16 sps:$4 sm:$0xff]   ;;  %v4652_v25 = vld [vmem:[#allocation8 + $0x760] ss:$16 sps:$4 sm:$0xff]  }
 0x1e6   :  { %2924 = vmatpush1.bf16.msra.mxu0 %v4514_v36  ;;  %3096 = vmatpush1.bf16.msra.mxu1 %v4517_v37  ;;  %v4591_v36 = vld [vmem:[#allocation8 + $0x60c] ss:$16 sps:$4 sm:$0xff]   ;;  %v1262_v37 = vrot.slane %v1257_v34, %v5058_v9 }
 0x1e7   :  { %2925 = vmatprep.subr.bf16.mxu0 %v4522_v38  ;;  %3097 = vmatprep.subr.bf16.mxu1 %v4525_v39  ;;  %v4586_v38 = vld [vmem:[#allocation8 + $0x600] ss:$16 sps:$4 sm:$0xff]   ;;  %v4589_v39 = vld [vmem:[#allocation8 + $0x608] ss:$16 sps:$4 sm:$0xff]   ;;  %v4663_v34 = vld [vmem:[#allocation8 + $0x78c] ss:$16 sps:$4 sm:$0xff]  }
 0x1ea   :  { %2926 = vmatpush1.bf16.msra.mxu0 %v4520_v40  ;;  %3098 = vmatpush1.bf16.msra.mxu1 %v4523_v41  ;;  %v1267_v40 = vadd.bf16 %v1241_v33, %v5113_v51  ;;  %v4594_v41 = vld [vmem:[#allocation8 + $0x624] ss:$16 sps:$4 sm:$0xff]   ;;  %v4598_v51 = vld [vmem:[#allocation8 + $0x640] ss:$16 sps:$4 sm:$0xff]   ;;  %v1186_v33 = vrot.slane %v5063_v10, %v281_v29  ;;  %v4681_v29 = vld [vmem:[#allocation8 + $0x7ec] ss:$16 sps:$4 sm:$0xff]  }
 0x1eb   :  { %2927 = vmatprep.subr.bf16.mxu0 %v4528_v42  ;;  %3099 = vmatprep.subr.bf16.mxu1 %v4531_v43  ;;  %v4597_v42 = vld [vmem:[#allocation8 + $0x62c] ss:$16 sps:$4 sm:$0xff]   ;;  %v1270_v43 = vadd.bf16 %v1262_v37, %v5119_v26  ;;  %v4664_v37 = vld [vmem:[#allocation8 + $0x7a0] ss:$16 sps:$4 sm:$0xff]   ;;  %v4678_v10 = vld [vmem:[#allocation8 + $0x7e4] ss:$16 sps:$4 sm:$0xff]  }
 0x1ec   :  { %v4609_v26 = vld [vmem:[#allocation8 + $0x66c] ss:$16 sps:$4 sm:$0xff]  }
 0x1ee   :  { %2928 = vmatpush1.bf16.msra.mxu0 %v4526_v44  ;;  %3100 = vmatpush1.bf16.msra.mxu1 %v4529_v45  ;;  %v4592_v44 = vld [vmem:[#allocation8 + $0x620] ss:$16 sps:$4 sm:$0xff]   ;;  %v4595_v45 = vld [vmem:[#allocation8 + $0x628] ss:$16 sps:$4 sm:$0xff]  }
 0x1ef   :  { %2929 = vmatprep.subr.bf16.mxu0 %v4534_v46  ;;  %3101 = vmatprep.subr.bf16.mxu1 %v4537_v47  ;;  %v4600_v46 = vld [vmem:[#allocation8 + $0x644] ss:$16 sps:$4 sm:$0xff]   ;;  %v4603_v47 = vld [vmem:[#allocation8 + $0x64c] ss:$16 sps:$4 sm:$0xff]  }
 0x1f2   :  { %2930 = vmatpush1.bf16.msra.mxu0 %v4532_v48  ;;  %3102 = vmatpush1.bf16.msra.mxu1 %v4535_v22  ;;  %v4601_v48 = vld [vmem:[#allocation8 + $0x648] ss:$16 sps:$4 sm:$0xff]   ;;  %v4606_v22 = vld [vmem:[#allocation8 + $0x664] ss:$16 sps:$4 sm:$0xff]  }
 0x1f3   :  { %2931 = vmatprep.subr.bf16.mxu0 %v4540_v49  ;;  %3103 = vmatprep.subr.bf16.mxu1 %v4543_v50  ;;  %v4604_v49 = vld [vmem:[#allocation8 + $0x660] ss:$16 sps:$4 sm:$0xff]   ;;  %v4607_v50 = vld [vmem:[#allocation8 + $0x668] ss:$16 sps:$4 sm:$0xff]  }
 0x1f6   :  { %2932 = vmatpush1.bf16.msra.mxu0 %v4538_v52  ;;  %3104 = vmatpush1.bf16.msra.mxu1 %v4541_v53  ;;  %v4612_v52 = vld [vmem:[#allocation8 + $0x684] ss:$16 sps:$4 sm:$0xff]   ;;  %v4615_v53 = vld [vmem:[#allocation8 + $0x68c] ss:$16 sps:$4 sm:$0xff]  }
 0x1f7   :  { %2933 = vmatprep.subr.bf16.mxu0 %v4546_v54  ;;  %3105 = vmatprep.subr.bf16.mxu1 %v4549_v55  ;;  %v4610_v54 = vld [vmem:[#allocation8 + $0x680] ss:$16 sps:$4 sm:$0xff]   ;;  %v4613_v55 = vld [vmem:[#allocation8 + $0x688] ss:$16 sps:$4 sm:$0xff]  }
 0x1fa   :  { %2934 = vmatpush1.bf16.msra.mxu0 %v4544_v56  ;;  %3106 = vmatpush1.bf16.msra.mxu1 %v4547_v57  ;;  %v4618_v56 = vld [vmem:[#allocation8 + $0x6a4] ss:$16 sps:$4 sm:$0xff]   ;;  %v4621_v57 = vld [vmem:[#allocation8 + $0x6ac] ss:$16 sps:$4 sm:$0xff]  }
 0x1fb   :  { %2935 = vmatprep.subr.bf16.mxu0 %v4552_v58  ;;  %3107 = vmatprep.subr.bf16.mxu1 %v4555_v59  ;;  %v4616_v58 = vld [vmem:[#allocation8 + $0x6a0] ss:$16 sps:$4 sm:$0xff]   ;;  %v4619_v59 = vld [vmem:[#allocation8 + $0x6a8] ss:$16 sps:$4 sm:$0xff]  }
 0x1fe   :  { %2936 = vmatpush1.bf16.msra.mxu0 %v4550_v11  ;;  %3108 = vmatpush1.bf16.msra.mxu1 %v4553_v61  ;;  %v4624_v11 = vld [vmem:[#allocation8 + $0x6c4] ss:$16 sps:$4 sm:$0xff]   ;;  %v4627_v61 = vld [vmem:[#allocation8 + $0x6cc] ss:$16 sps:$4 sm:$0xff]  }
 0x1ff   :  { %2937 = vmatprep.subr.bf16.mxu0 %v4558_v62  ;;  %3109 = vmatprep.subr.bf16.mxu1 %v4561_v63  ;;  %v4622_v62 = vld [vmem:[#allocation8 + $0x6c0] ss:$16 sps:$4 sm:$0xff]   ;;  %v4625_v63 = vld [vmem:[#allocation8 + $0x6c8] ss:$16 sps:$4 sm:$0xff]  }
 0x202   :  { %2938 = vmatpush1.bf16.msra.mxu0 %v4556_v0  ;;  %3110 = vmatpush1.bf16.msra.mxu1 %v4559_v2  ;;  %v4630_v0 = vld [vmem:[#allocation8 + $0x6e4] ss:$16 sps:$4 sm:$0xff]   ;;  %v4633_v2 = vld [vmem:[#allocation8 + $0x6ec] ss:$16 sps:$4 sm:$0xff]  }
 0x203   :  { %2939 = vmatprep.subr.bf16.mxu0 %v4564_v3  ;;  %3111 = vmatprep.subr.bf16.mxu1 %v4567_v4  ;;  %v4628_v3 = vld [vmem:[#allocation8 + $0x6e0] ss:$16 sps:$4 sm:$0xff]   ;;  %v4631_v4 = vld [vmem:[#allocation8 + $0x6e8] ss:$16 sps:$4 sm:$0xff]  }
 0x206   :  { %2940 = vmatpush1.bf16.msra.mxu0 %v4562_v5  ;;  %3112 = vmatpush1.bf16.msra.mxu1 %v4565_v6  ;;  %v4636_v5 = vld [vmem:[#allocation8 + $0x704] ss:$16 sps:$4 sm:$0xff]   ;;  %v4639_v6 = vld [vmem:[#allocation8 + $0x70c] ss:$16 sps:$4 sm:$0xff]  }
 0x207   :  { %2941 = vmatprep.subr.bf16.mxu0 %v4570_v13  ;;  %3113 = vmatprep.subr.bf16.mxu1 %v4573_v14  ;;  %v4637_v13 = vld [vmem:[#allocation8 + $0x708] ss:$16 sps:$4 sm:$0xff]   ;;  %v4642_v14 = vld [vmem:[#allocation8 + $0x724] ss:$16 sps:$4 sm:$0xff]  }
 0x20a   :  { %2942 = vmatpush1.bf16.msra.mxu0 %v4568_v17  ;;  %3114 = vmatpush1.bf16.msra.mxu1 %v4571_v18  ;;  %v4640_v17 = vld [vmem:[#allocation8 + $0x720] ss:$16 sps:$4 sm:$0xff]   ;;  %v4643_v18 = vld [vmem:[#allocation8 + $0x728] ss:$16 sps:$4 sm:$0xff]  }
 0x20b   :  { %2943 = vmatprep.subr.bf16.mxu0 %v4576_v19  ;;  %3115 = vmatprep.subr.bf16.mxu1 %v4579_v20  ;;  %v4651_v19 = vld [vmem:[#allocation8 + $0x74c] ss:$16 sps:$4 sm:$0xff]   ;;  %v4646_v20 = vld [vmem:[#allocation8 + $0x740] ss:$16 sps:$4 sm:$0xff]  }
 0x20e   :  { %2944 = vmatpush1.bf16.msra.mxu0 %v4574_v60  ;;  %3116 = vmatpush1.bf16.msra.mxu1 %v4577_v24  ;;  %v4654_v60 = vld [vmem:[#allocation8 + $0x764] ss:$16 sps:$4 sm:$0xff]   ;;  %v4657_v24 = vld [vmem:[#allocation8 + $0x76c] ss:$16 sps:$4 sm:$0xff]  }
 0x20f   :  { %2945 = vmatprep.subr.bf16.mxu0 %v4582_v1  ;;  %3117 = vmatprep.subr.bf16.mxu1 %v4585_v28  ;;  %v4655_v1 = vld [vmem:[#allocation8 + $0x768] ss:$16 sps:$4 sm:$0xff]   ;;  %v4660_v28 = vld [vmem:[#allocation8 + $0x784] ss:$16 sps:$4 sm:$0xff]  }
 0x212   :  { %2946 = vmatpush1.bf16.msra.mxu0 %v4580_v30  ;;  %3118 = vmatpush1.bf16.msra.mxu1 %v4583_v32  ;;  %v4658_v30 = vld [vmem:[#allocation8 + $0x780] ss:$16 sps:$4 sm:$0xff]   ;;  %v4661_v32 = vld [vmem:[#allocation8 + $0x788] ss:$16 sps:$4 sm:$0xff]  }
 0x213   :  { %2958 = vmatprep.subr.bf16.mxu0 %v4588_v35  ;;  %3130 = vmatprep.subr.bf16.mxu1 %v4591_v36  ;;  %v4666_v35 = vld [vmem:[#allocation8 + $0x7a4] ss:$16 sps:$4 sm:$0xff]   ;;  %v4669_v36 = vld [vmem:[#allocation8 + $0x7ac] ss:$16 sps:$4 sm:$0xff]  }
 0x215   :  { %2948 = vmatmul.mubr.bf16.vlgmr.msra.gmra.mrb[8].mxu0 %v1267_v40  ;;  %3120 = vmatmul.mubr.bf16.vlgmr.msra.gmra.mrb[8].mxu1 %v1267_v40  ;;  %v4672_v40 = vld [vmem:[#allocation8 + $0x7c4] ss:$16 sps:$4 sm:$0xff]  }
 0x216   :  { %2959 = vmatpush1.bf16.msra.mxu0 %v4586_v38  ;;  %3131 = vmatpush1.bf16.msra.mxu1 %v4589_v39  ;;  %v4667_v38 = vld [vmem:[#allocation8 + $0x7a8] ss:$16 sps:$4 sm:$0xff]   ;;  %v1205_v39 = vpack.c.bf16 %v1186_v33, %v1186_v33 }
 0x217   :  { %2960 = vmatprep.subr.bf16.mxu0 %v4594_v41  ;;  %3132 = vmatprep.subr.bf16.mxu1 %v4597_v42  ;;  %v4675_v41 = vld [vmem:[#allocation8 + $0x7cc] ss:$16 sps:$4 sm:$0xff]   ;;  %v4670_v42 = vld [vmem:[#allocation8 + $0x7c0] ss:$16 sps:$4 sm:$0xff]  }
 0x218   :  { %2990 = vmatprep.mubr.bf16.mxu0 %v1270_v43  ;;  %3162 = vmatprep.mubr.bf16.mxu1 %v1270_v43  ;;  %v4673_v43 = vld [vmem:[#allocation8 + $0x7c8] ss:$16 sps:$4 sm:$0xff]   ;;  %v1250_v8 = vpack.i.b16 %v1205_v39, %v1205_v39 }
 0x21a   :  { %2961 = vmatpush1.bf16.msra.mxu0 %v4592_v44  ;;  %3133 = vmatpush1.bf16.msra.mxu1 %v4595_v45  ;;  %v4676_v44 = vld [vmem:[#allocation8 + $0x7e0] ss:$16 sps:$4 sm:$0xff]   ;;  %v4679_v45 = vld [vmem:[#allocation8 + $0x7e8] ss:$16 sps:$4 sm:$0xff]  }
 0x21b   :  { %2962 = vmatprep.subr.bf16.mxu0 %v4600_v46  ;;  %3134 = vmatprep.subr.bf16.mxu1 %v4603_v47  ;;  %v1255_v46 = vrot.slane %v1250_v8, %v5058_v9  ;;  %v4682_v47 = vld [vmem:[#allocation10 + $0x40] sm:$0xff]  }
 0x21e   :  { %2963 = vmatpush1.bf16.msra.mxu0 %v4598_v51  ;;  %3135 = vmatpush1.bf16.msra.mxu1 %v4601_v48  ;;  %v4683_v51 = vld [vmem:[#allocation10 + $0xc0] sm:$0xff]  }
 0x21f   :  { %2964 = vmatprep.subr.bf16.mxu0 %v4606_v22  ;;  %3136 = vmatprep.subr.bf16.mxu1 %v4609_v26  ;;  %v4684_v48 = vld [vmem:[#allocation10] sm:$0xff]   ;;  %v1269_v26 = vadd.bf16 %v1255_v46, %v5117_v23  ;;  %v4694_v23 = vld [vmem:[#allocation10 + $0x58] sm:$0xff]  }
 0x220   :  { %v4685_v22 = vld [vmem:[#allocation10 + $0x80] sm:$0xff]  }
 0x222   :  { %2965 = vmatpush1.bf16.msra.mxu0 %v4604_v49  ;;  %3137 = vmatpush1.bf16.msra.mxu1 %v4607_v50  ;;  %v4686_v49 = vld [vmem:[#allocation10 + $0x48] sm:$0xff]  }
 0x223   :  { %2966 = vmatprep.subr.bf16.mxu0 %v4612_v52  ;;  %3138 = vmatprep.subr.bf16.mxu1 %v4615_v53  ;;  %v4687_v50 = vld [vmem:[#allocation10 + $0xc8] sm:$0xff]  }
 0x224   :  { %v4688_v52 = vld [vmem:[#allocation10 + $0x8] sm:$0xff]  }
 0x225   :  { %v4689_v53 = vld [vmem:[#allocation10 + $0x88] sm:$0xff]  }
 0x226   :  { %2967 = vmatpush1.bf16.msra.mxu0 %v4610_v54  ;;  %3139 = vmatpush1.bf16.msra.mxu1 %v4613_v55  ;;  %v4690_v54 = vld [vmem:[#allocation10 + $0x50] sm:$0xff]  }
 0x227   :  { %2968 = vmatprep.subr.bf16.mxu0 %v4618_v56  ;;  %3140 = vmatprep.subr.bf16.mxu1 %v4621_v57  ;;  %v4691_v55 = vld [vmem:[#allocation10 + $0xd0] sm:$0xff]  }
 0x228   :  { %v4692_v56 = vld [vmem:[#allocation10 + $0x10] sm:$0xff]  }
 0x229   :  { %v4693_v57 = vld [vmem:[#allocation10 + $0x90] sm:$0xff]  }
 0x22a   :  { %2969 = vmatpush1.bf16.msra.mxu0 %v4616_v58  ;;  %3141 = vmatpush1.bf16.msra.mxu1 %v4619_v59  ;;  %v4695_v58 = vld [vmem:[#allocation10 + $0xd8] sm:$0xff]  }
 0x22b   :  { %2970 = vmatprep.subr.bf16.mxu0 %v4624_v11  ;;  %3142 = vmatprep.subr.bf16.mxu1 %v4627_v61  ;;  %v4696_v59 = vld [vmem:[#allocation10 + $0x18] sm:$0xff]   ;;  %v4698_v61 = vld [vmem:[#allocation10 + $0x60] sm:$0xff]  }
 0x22c   :  { %v4697_v11 = vld [vmem:[#allocation10 + $0x98] sm:$0xff]  }
 0x22e   :  { %2971 = vmatpush1.bf16.msra.mxu0 %v4622_v62  ;;  %3143 = vmatpush1.bf16.msra.mxu1 %v4625_v63  ;;  %v4699_v62 = vld [vmem:[#allocation10 + $0xe0] sm:$0xff]  }
 0x22f   :  { %2972 = vmatprep.subr.bf16.mxu0 %v4630_v0  ;;  %3144 = vmatprep.subr.bf16.mxu1 %v4633_v2  ;;  %v4700_v63 = vld [vmem:[#allocation10 + $0x20] sm:$0xff]   ;;  %v4702_v2 = vld [vmem:[#allocation10 + $0x68] sm:$0xff]  }
 0x230   :  { %v4701_v0 = vld [vmem:[#allocation10 + $0xa0] sm:$0xff]  }
 0x232   :  { %2973 = vmatpush1.bf16.msra.mxu0 %v4628_v3  ;;  %3145 = vmatpush1.bf16.msra.mxu1 %v4631_v4  ;;  %v4703_v3 = vld [vmem:[#allocation10 + $0xe8] sm:$0xff]  }
 0x233   :  { %2974 = vmatprep.subr.bf16.mxu0 %v4636_v5  ;;  %3146 = vmatprep.subr.bf16.mxu1 %v4639_v6  ;;  %v4704_v4 = vld [vmem:[#allocation10 + $0x28] sm:$0xff]   ;;  %v4706_v6 = vld [vmem:[#allocation10 + $0x70] sm:$0xff]  }
 0x234   :  { %v4705_v5 = vld [vmem:[#allocation10 + $0xa8] sm:$0xff]  }
 0x236   :  { %2975 = vmatpush1.bf16.msra.mxu0 %v4634_v7  ;;  %3147 = vmatpush1.bf16.msra.mxu1 %v4637_v13  ;;  %v4707_v7 = vld [vmem:[#allocation10 + $0xf0] sm:$0xff]  }
 0x237   :  { %2976 = vmatprep.subr.bf16.mxu0 %v4642_v14  ;;  %3148 = vmatprep.subr.bf16.mxu1 %v4645_v15  ;;  %v4708_v13 = vld [vmem:[#allocation10 + $0x30] sm:$0xff]   ;;  %v4710_v15 = vld [vmem:[#allocation10 + $0x78] sm:$0xff]  }
 0x238   :  { %v4709_v14 = vld [vmem:[#allocation10 + $0xb0] sm:$0xff]  }
 0x23a   :  { %2977 = vmatpush1.bf16.msra.mxu0 %v4640_v17  ;;  %3149 = vmatpush1.bf16.msra.mxu1 %v4643_v18  ;;  %v4711_v17 = vld [vmem:[#allocation10 + $0xf8] sm:$0xff]  }
 0x23b   :  { %2978 = vmatprep.subr.bf16.mxu0 %v4648_v16  ;;  %3150 = vmatprep.subr.bf16.mxu1 %v4651_v19  ;;  %v4712_v18 = vld [vmem:[#allocation10 + $0x38] sm:$0xff]   ;;  %v4900_v19 = vmov 0.0  }
 0x23c   :  { %v4713_v16 = vld [vmem:[#allocation10 + $0xb8] sm:$0xff]  }
 0x23e   :  { %2979 = vmatpush1.bf16.msra.mxu0 %v4646_v20  ;;  %3151 = vmatpush1.bf16.msra.mxu1 %v4649_v21  ;;  %v3193_v20 = vld [vmem:[%s5194_s6] sm:$0xf] }
 0x23f   :  { %2980 = vmatprep.subr.bf16.mxu0 %v4654_v60  ;;  %3152 = vmatprep.subr.bf16.mxu1 %v4657_v24  ;;  %v1527_v21 = vld [vmem:[%s5193_s5] sm:$0xf]  ;;  %v3202_v60 = vrot.slane %v3193_v20, %v5068_v12  ;;  %v3210_v24 = vrot.slane %v3193_v20, %v5082_v31 }
 0x241   :  { %v3216_v33 = vpack.c.bf16 %v3202_v60, %v3202_v60  ;;  %v4716_v60 = vld [vmem:[#allocation11 + $0x10] sm:$0xff]  }
 0x242   :  { %2981 = vmatpush1.bf16.msra.mxu0 %v4652_v25  ;;  %3153 = vmatpush1.bf16.msra.mxu1 %v4655_v1  ;;  %v1532_v25 = vrot.slane %v1527_v21, %v5058_v9  ;;  %v1540_v1 = vrot.slane %v1527_v21, %v5079_v27 }
 0x243   :  { %2982 = vmatprep.subr.bf16.mxu0 %v4660_v28  ;;  %3154 = vmatprep.subr.bf16.mxu1 %v4663_v34  ;;  %v3198_v28 = vrot.slane %v3193_v20, %v5058_v9  ;;  %v3206_v34 = vrot.slane %v3193_v20, %v5079_v27 }
 0x246   :  { %2983 = vmatpush1.bf16.msra.mxu0 %v4658_v30  ;;  %3155 = vmatpush1.bf16.msra.mxu1 %v4661_v32  ;;  %v1536_v30 = vrot.slane %v1527_v21, %v5068_v12  ;;  %v1544_v32 = vrot.slane %v1527_v21, %v5082_v31  ;;  %v4715_v21 = vld [vmem:[#allocation11 + $0x8] sm:$0xff]  }
 0x247   :  { %2984 = vmatprep.subr.bf16.mxu0 %v4666_v35  ;;  %3156 = vmatprep.subr.bf16.mxu1 %v4669_v36  ;;  %v3218_v35 = vpack.c.bf16 %v3210_v24, %v3210_v24  ;;  %v4717_v24 = vld [vmem:[#allocation11 + $0x18] sm:$0xff]  }
 0x249   :  { %v3241_v27 = vpack.i.b16 %v3218_v35, %v3218_v35 }
 0x24a   :  { %2985 = vmatpush1.bf16.msra.mxu0 %v4664_v37  ;;  %3157 = vmatpush1.bf16.msra.mxu1 %v4667_v38 }
 0x24b   :  { %2986 = vmatprep.subr.bf16.mxu0 %v4672_v40  ;;  %3158 = vmatprep.subr.bf16.mxu1 %v4675_v41 }
 0x24e   :  { %2987 = vmatpush1.bf16.msra.mxu0 %v4670_v42  ;;  %3159 = vmatpush1.bf16.msra.mxu1 %v4673_v43  ;;  %v3215_v42 = vpack.c.bf16 %v3198_v28, %v3198_v28  ;;  %v3217_v43 = vpack.c.bf16 %v3206_v34, %v3206_v34  ;;  %v4720_v28 = vld [vmem:[#allocation11 + $0x30] sm:$0xff]   ;;  %v4721_v34 = vld [vmem:[#allocation11 + $0x38] sm:$0xff]  }
 0x24f   :  { %2988 = vmatprep.subr.bf16.mxu0 %v4678_v10  ;;  %3160 = vmatprep.subr.bf16.mxu1 %v4681_v29 }
 0x252   :  { %2989 = vmatpush1.bf16.msra.mxu0 %v4676_v44  ;;  %3161 = vmatpush1.bf16.msra.mxu1 %v4679_v45  ;;  %v3227_v45 = vpack.i.b16 %v3216_v33, %v3216_v33  ;;  %v4131_v33 = vld [vmem:[%s5196_s8] ss:$0 sm:$0xff] }
 0x253   :  { %4173 = vmatprep.subr.bf16.mxu0 %v4682_v47  ;;  %4195 = vmatprep.subr.bf16.mxu1 %v4683_v51 }
 0x255   :  { %2991 = vmatmul.mubr.bf16.vlgmr.msra.gmra.mrb[8].mxu0 %v1269_v26  ;;  %3163 = vmatmul.mubr.bf16.vlgmr.msra.gmra.mrb[8].mxu1 %v1269_v26 }
 0x256   :  { %4174 = vmatpush3.bf16.msra.mxu0 %v4684_v48  ;;  %4196 = vmatpush3.bf16.msra.mxu1 %v4685_v22 }
 0x257   :  { %4175 = vmatprep.subr.bf16.mxu0 %v4686_v49  ;;  %4197 = vmatprep.subr.bf16.mxu1 %v4687_v50 }
 0x25a   :  { %4176 = vmatpush3.bf16.msra.mxu0 %v4688_v52  ;;  %4198 = vmatpush3.bf16.msra.mxu1 %v4689_v53  ;;  %v3220_v53 = vpack.i.b16 %v3215_v42, %v3215_v42 }
 0x25b   :  { %4177 = vmatprep.subr.bf16.mxu0 %v4690_v54  ;;  %4199 = vmatprep.subr.bf16.mxu1 %v4691_v55  ;;  %v3234_v55 = vpack.i.b16 %v3217_v43, %v3217_v43 }
 0x25e   :  { %4178 = vmatpush3.bf16.msra.mxu0 %v4692_v56  ;;  %4200 = vmatpush3.bf16.msra.mxu1 %v4693_v57 }
 0x25f   :  { %4179 = vmatprep.subr.bf16.mxu0 %v4694_v23  ;;  %4201 = vmatprep.subr.bf16.mxu1 %v4695_v58  ;;  %v3232_v23 = vrot.slane %v3227_v45, %v5058_v9  ;;  %v3246_v58 = vrot.slane %v3241_v27, %v5058_v9 }
 0x262   :  { %4180 = vmatpush3.bf16.msra.mxu0 %v4696_v59  ;;  %4202 = vmatpush3.bf16.msra.mxu1 %v4697_v11 }
 0x263   :  { %4181 = vmatprep.subr.bf16.mxu0 %v4698_v61  ;;  %4203 = vmatprep.subr.bf16.mxu1 %v4699_v62 }
 0x266   :  { %4182 = vmatpush3.bf16.msra.mxu0 %v4700_v63  ;;  %4204 = vmatpush3.bf16.msra.mxu1 %v4701_v0 }
 0x267   :  { %4183 = vmatprep.subr.bf16.mxu0 %v4702_v2  ;;  %4205 = vmatprep.subr.bf16.mxu1 %v4703_v3 }
 0x26a   :  { %4184 = vmatpush3.bf16.msra.mxu0 %v4704_v4  ;;  %4206 = vmatpush3.bf16.msra.mxu1 %v4705_v5  ;;  %v3225_v5 = vrot.slane %v3220_v53, %v5058_v9 }
 0x26b   :  { %4185 = vmatprep.subr.bf16.mxu0 %v4706_v6  ;;  %4207 = vmatprep.subr.bf16.mxu1 %v4707_v7  ;;  %v3239_v7 = vrot.slane %v3234_v55, %v5058_v9 }
 0x26e   :  { %4186 = vmatpush3.bf16.msra.mxu0 %v4708_v13  ;;  %4208 = vmatpush3.bf16.msra.mxu1 %v4709_v14 }
 0x26f   :  { %4187 = vmatprep.subr.bf16.mxu0 %v4710_v15  ;;  %4209 = vmatprep.subr.bf16.mxu1 %v4711_v17 }
 0x272   :  { %4188 = vmatpush3.bf16.msra.mxu0 %v4712_v18  ;;  %4210 = vmatpush3.bf16.msra.mxu1 %v4713_v16  ;;  %v4714_v18 = vld [vmem:[#allocation11] sm:$0xff]  }
 0x273   :  { %4226 = vmatprep.subr.bf16.mxu0 %v4900_v19 }
 0x328   :  { %v2992_v36 = vpop.f32.mrb[8].mxu0  ;;  %v3164_v37 = vpop.f32.mrb[8].mxu1 }
 0x329   :  { %v4246_v38 = vadd.f32 %v2992_v36, %v1532_v25  ;;  %v4250_v39 = vadd.f32 %v3164_v37, %v1540_v1  ;;  %v2994_v40 = vpop.f32.mrb[9].mxu0  ;;  %v3166_v41 = vpop.f32.mrb[9].mxu1  ;;  %v3601_v37 = vld [vmem:[%s5197_s9] sm:$0x1] }
 0x32a   :  { %v4247_v8 = vadd.f32 %v2994_v40, %v1536_v30  ;;  %v4251_v10 = vadd.f32 %v3166_v41, %v1544_v32  ;;  %v2996_v29 = vpop.f32.mrb[10].mxu0  ;;  %v3168_v44 = vpop.f32.mrb[10].mxu1 }
 0x32b   :  { %v3173_v46 = vmul.f32 0.01, %v4246_v38  ;;  %v3175_v12 = vmul.f32 0.01, %v4250_v39  ;;  %v4248_v47 = vadd.f32 %v2996_v29, %v1532_v25  ;;  %v4252_v31 = vadd.f32 %v3168_v44, %v1540_v1  ;;  %v2998_v51 = vpop.f32.mrb[11].mxu0  ;;  %v3170_v48 = vpop.f32.mrb[11].mxu1 }
 0x32c   :  { %v3174_v22 = vmul.f32 0.01, %v4247_v8  ;;  %v3176_v26 = vmul.f32 0.01, %v4251_v10  ;;  %v4249_v49 = vadd.f32 %v2998_v51, %v1536_v30  ;;  %v4253_v50 = vadd.f32 %v3170_v48, %v1544_v32  ;;  %v4718_v25 = vld [vmem:[#allocation11 + $0x20] sm:$0xff]   ;;  %v4719_v1 = vld [vmem:[#allocation11 + $0x28] sm:$0xff]  }
 0x32d   :  { %v3177_v52 = vmul.f32 0.01, %v4248_v47  ;;  %v3179_v54 = vmul.f32 0.01, %v4252_v31  ;;  %v3181_v59 = vmax.f32 %v4246_v38, %v3173_v46  ;;  %v3183_v11 = vmax.f32 %v4250_v39, %v3175_v12 }
 0x32e   :  { %v3178_v56 = vmul.f32 0.01, %v4249_v49  ;;  %v3180_v57 = vmul.f32 0.01, %v4253_v50  ;;  %v3182_v63 = vmax.f32 %v4247_v8, %v3174_v22  ;;  %v3184_v0 = vmax.f32 %v4251_v10, %v3176_v26 }
 0x32f   :  { %v3185_v61 = vmax.f32 %v4248_v47, %v3177_v52  ;;  %v3187_v62 = vmax.f32 %v4252_v31, %v3179_v54  ;;  %v3602_v29 = vpack.c.bf16 %v3601_v37, %v3601_v37 }
 0x330   :  { %v3186_v2 = vmax.f32 %v4249_v49, %v3178_v56  ;;  %v3188_v3 = vmax.f32 %v4253_v50, %v3180_v57  ;;  %v4164_v49 = vld [vmem:[%s5199_s11] ss:$0 sm:$0xff] }
 0x331   :  { %v3189_v4 = vpack.c.bf16 %v3185_v61, %v3181_v59  ;;  %v3191_v6 = vpack.c.bf16 %v3187_v62, %v3183_v11  ;;  %v3604_v12 = vpack.i.b16 %v3602_v29, %v3602_v29 }
 0x332   :  { %v3190_v13 = vpack.c.bf16 %v3186_v2, %v3182_v63  ;;  %v3192_v14 = vpack.c.bf16 %v3188_v3, %v3184_v0 }
 0x333   :  { %v3247_v16 = vadd.bf16 %v3225_v5, %v3189_v4  ;;  %v3249_v20 = vadd.bf16 %v3239_v7, %v3191_v6  ;;  %v3609_v48 = vrot.slane %v3604_v12, %v5058_v9 }
 0x334   :  { %v3248_v15 = vadd.bf16 %v3232_v23, %v3190_v13  ;;  %v3250_v17 = vadd.bf16 %v3246_v58, %v3192_v14 }
 0x336   :  { %3546 = vmatprep.mubr.bf16.mxu0 %v3248_v15  ;;  %3587 = vmatprep.mubr.bf16.mxu1 %v3250_v17 }
 0x337   :  { %3547 = vmatmul.mubr.bf16.vlgmr.msra.gmra.mrb[12].mxu0 %v3247_v16  ;;  %3588 = vmatmul.mubr.bf16.vlgmr.msra.gmra.mrb[12].mxu1 %v3249_v20 }
 0x338   :  { %4227 = vmatpush3.bf16.msra.mxu0 %v4714_v18  ;;  %4242 = vmatprep.mubr.msk.bf16.mxu0 %vm4901_vm0, %v4900_v19 }
 0x339   :  { %4228 = vmatprep.subr.bf16.mxu0 %v4900_v19 }
 0x33c   :  { %4229 = vmatpush3.bf16.msra.mxu0 %v4715_v21 }
 0x33d   :  { %4230 = vmatprep.subr.bf16.mxu0 %v4900_v19 }
 0x340   :  { %4231 = vmatpush3.bf16.msra.mxu0 %v4716_v60 }
 0x341   :  { %4232 = vmatprep.subr.bf16.mxu0 %v4900_v19 }
 0x344   :  { %4233 = vmatpush3.bf16.msra.mxu0 %v4717_v24 }
 0x345   :  { %4234 = vmatprep.subr.bf16.mxu0 %v4900_v19 }
 0x348   :  { %4235 = vmatpush3.bf16.msra.mxu0 %v4718_v25 }
 0x349   :  { %4236 = vmatprep.subr.bf16.mxu0 %v4900_v19 }
 0x34c   :  { %4237 = vmatpush3.bf16.msra.mxu0 %v4719_v1 }
 0x34d   :  { %4238 = vmatprep.subr.bf16.mxu0 %v4900_v19 }
 0x350   :  { %4239 = vmatpush3.bf16.msra.mxu0 %v4720_v28 }
 0x351   :  { %4240 = vmatprep.subr.bf16.mxu0 %v4900_v19 }
 0x354   :  { %4241 = vmatpush3.bf16.msra.mxu0 %v4721_v34 }
 0x40a   :  { %v4189_v30 = vpop.f32.mrb[12].mxu0  ;;  %v4211_v32 = vpop.f32.mrb[12].mxu1 }
 0x40b   :  { %v4190_v35 = vpop.f32.mrb[13].mxu0  ;;  %v4212_v36 = vpop.f32.mrb[13].mxu1 }
 0x40c   :  { %v4191_v38 = vadd.f32 %v4190_v35, %v4189_v30  ;;  %v4213_v39 = vadd.f32 %v4212_v36, %v4211_v32  ;;  %v4192_v40 = vpop.f32.mrb[14].mxu0  ;;  %v4214_v41 = vpop.f32.mrb[14].mxu1 }
 0x40d   :  { %v4193_v42 = vpop.f32.mrb[15].mxu0  ;;  %v4215_v43 = vpop.f32.mrb[15].mxu1 }
 0x40e   :  { %v3549_v8 = vadd.f32 %v4191_v38, %v4131_v33  ;;  %v4194_v19 = vadd.f32 %v4193_v42, %v4192_v40  ;;  %v4216_v10 = vadd.f32 %v4215_v43, %v4214_v41 }
 0x410   :  { %v3590_v44 = vadd.f32 %v4213_v39, %v3549_v8  ;;  %v3552_v45 = vadd.f32 %v4194_v19, %v4131_v33 }
 0x412   :  { %v3596_v27 = vmul.f32 0.01, %v3590_v44  ;;  %v3593_v46 = vadd.f32 %v4216_v10, %v3552_v45 }
 0x414   :  { %v3597_v47 = vmul.f32 0.01, %v3593_v46  ;;  %v3598_v31 = vmax.f32 %v3590_v44, %v3596_v27 }
 0x416   :  { %v3599_v51 = vmax.f32 %v3593_v46, %v3597_v47 }
 0x418   :  { %v3600_v22 = vpack.c.bf16 %v3599_v51, %v3598_v31 }
 0x41a   :  { %v3610_v26 = vadd.bf16 %v3609_v48, %v3600_v22 }
 0x41c   :  { %4243 = vmatmul.mubr.bf16.vlgmr.msra.gmra.mrb[16].mxu0 %v3610_v26 }
 0x4ef   :  { %v3716_v50 = vpop.f32.mrb[16].mxu0 }
 0x4f0   :  { %v3717_v52 = vadd.f32 %v4164_v49, %v3716_v50  ;;  %v4244_v53 = vpop.f32.mrb[17].mxu0 }
 0x4f1   :  { %v3719_v54 = vpop.f32.mrb[18].mxu0 }
 0x4f2   :  { %3723 = vst [vmem:[#allocation13] sm:$0xff] %v3717_v52  ;;  %v3720_v55 = vadd.f32 %v4164_v49, %v3719_v54  ;;  %v4245_v56 = vpop.f32.mrb[19].mxu0 }
 0x4f4   :  { %3724 = vst [vmem:[#allocation13 + $0x8] sm:$0xff] %v3720_v55 }
 0x4f5   :  { %4865 = shalt.err (!%p4862_p10)
}
 0x4f6   :  { %s4866_s15 = scalar_lea.hbm %s5200_s12, 256 }
 0x4f7   :  { %p4867_p11 = scmp.ne.s32.totalorder %s5200_s12, %s4866_s15  ;;  %p4870_p12 = scmp.lt.u32.totalorder %s4866_s15, %s5200_s12 }
 0x4f9   :  { %p4872_p13 = pnand %p4870_p12, %p4867_p11 }
 0x4fb   :  { %4875 = shalt.err (!%p4872_p13)
}
 0x4fc   :  { %3736 = dma.vmem_to_hbm [thread:$0]  %s3731_s29, 256, %s5200_s12, [#allocation4], %s4893_s4, %s4893_s4, %s4894_s18  }
 0x4fd   :  { %4884 = dma.done.wait [#allocation4], 256  }
 0x4fe   :  { %4885 = vsyncadd [#allocation4], 4294967040 }
 0x4ff   :  { %3740 = vsyncpa [#allocation3], 1 }
 0x500   :  { %3741 = vsyncpa [#allocation6], 1 }
 0x501   :  { %3742 = vsyncpa [#allocation9], 1 }
 0x502   :  { %3743 = vsyncpa [#allocation12], 1 }
 0x503   :  { %3744 = vsyncpa [#allocation4], 1 }

// kernel: tpu_custom_call.1
= control target key start
LH: loop header
LB: loop body
LE: loop exit
PB: predicated region body
PF: predicated region fallthrough
CT: control target
= control target key end

     0   :  { %17 = vsyncpa [#allocation3], 0  ;;  %s5188_s0 = inlined_call_operand.hbm [shape: bf16[16,256], index: 0, kind: input, shape index: {}]   ;;  %s5189_s1 = inlined_call_operand.hbm [shape: bf16[256,1024], index: 1, kind: input, shape index: {}]   ;;  %s5190_s2 = inlined_call_operand.hbm [shape: f32[1,1024], index: 2, kind: input, shape index: {}]   ;;  %s5191_s3 = inlined_call_operand.vmem [shape: f32[1,1024], index: 3, kind: input, shape index: {}]   ;;  %s5192_s4 = inlined_call_operand.hbm [shape: bf16[1024,512], index: 4, kind: input, shape index: {}]   ;;  %s5193_s5 = inlined_call_operand.vmem [shape: f32[1,512], index: 5, kind: input, shape index: {}]   ;;  %s5194_s6 = inlined_call_operand.vmem [shape: f32[1,512], index: 6, kind: input, shape index: {}]   ;;  %s5195_s7 = inlined_call_operand.hbm [shape: bf16[512,128], index: 7, kind: input, shape index: {}]   ;;  %s5196_s8 = inlined_call_operand.vmem [shape: f32[1,128], index: 8, kind: input, shape index: {}]   ;;  %s5197_s9 = inlined_call_operand.vmem [shape: f32[1,128], index: 9, kind: input, shape index: {}]   ;;  %s5198_s10 = inlined_call_operand.hbm [shape: bf16[128,128], index: 10, kind: input, shape index: {}]   ;;  %s5199_s11 = inlined_call_operand.vmem [shape: f32[1,128], index: 11, kind: input, shape index: {}]   ;;  %s5200_s12 = inlined_call_operand.hbm [shape: f32[16,128], index: 12, kind: output, shape index: {}]  }
   0x1   :  { %18 = vsyncpa [#allocation6], 0 }
   0x2   :  { %19 = vsyncpa [#allocation9], 0 }
   0x3   :  { %20 = vsyncpa [#allocation12], 0 }
   0x4   :  { %21 = vsyncpa [#allocation4], 0  ;;  %s4886_s21 = smov [#allocation5]   ;;  %s4722_s25 = scalar_lea.hbm %s5189_s1, 16384 }
   0x5   :  { %s39_s22 = sshll.u32 %s4886_s21, 4  ;;  %p4723_p0 = scmp.ne.s32.totalorder %s5189_s1, %s4722_s25  ;;  %s40_s22 = int_to_ptr.vmem [resolvable:$true] %s39_s22 }
   0x6   :  { %p4726_p1 = scmp.lt.u32.totalorder %s4722_s25, %s5189_s1 }
   0x8   :  { %p4728_p2 = pnand %p4726_p1, %p4723_p0 }
   0xa   :  { %4731 = shalt.err (!%p4728_p2)
}
   0xb   :  { %s4732_s30 = scalar_lea.vmem %s40_s22, 16384  ;;  %p4737_p4 = scmp.lt.s32.totalorder %s40_s22, %s40_s22 }
   0xc   :  { %p4733_p3 = scmp.ne.s32.totalorder %s40_s22, %s4732_s30  ;;  %p4738_p5 = scmp.lt.s32.totalorder %s4732_s30, %s4732_s30 }
   0xe   :  { %p4739_p6 = por %p4738_p5, %p4737_p4 }
  0x10   :  { %p4740_p7 = pnand %p4739_p6, %p4733_p3 }
  0x12   :  { %4743 = shalt.err (!%p4740_p7)
}
  0x13   :  { %s4887_s13 = smov 512   ;;  %s4888_s14 = smov 32  }
  0x14   :  { %45 = dma.hbm_to_vmem [thread:$0]  %s5189_s1, 16384, %s40_s22, [#allocation6], %s4887_s13, %s4887_s13, %s4888_s14  }
  0x15   :  { %s4889_s17 = smov [#allocation8]   ;;  %s4744_s21 = scalar_lea.hbm %s5192_s4, 32768 }
  0x16   :  { %s63_s18 = sshll.u32 %s4889_s17, 4  ;;  %p4745_p8 = scmp.ne.s32.totalorder %s5192_s4, %s4744_s21  ;;  %s64_s18 = int_to_ptr.vmem [resolvable:$true] %s63_s18 }
  0x17   :  { %p4748_p9 = scmp.lt.u32.totalorder %s4744_s21, %s5192_s4 }
  0x19   :  { %p4750_p10 = pnand %p4748_p9, %p4745_p8 }
  0x1b   :  { %4753 = shalt.err (!%p4750_p10)
}
  0x1c   :  { %s4754_s27 = scalar_lea.vmem %s64_s18, 32768  ;;  %p4759_p12 = scmp.lt.s32.totalorder %s64_s18, %s64_s18 }
  0x1d   :  { %p4755_p11 = scmp.ne.s32.totalorder %s64_s18, %s4754_s27  ;;  %p4760_p13 = scmp.lt.s32.totalorder %s4754_s27, %s4754_s27 }
  0x1f   :  { %p4761_p0 = por %p4760_p13, %p4759_p12 }
  0x21   :  { %p4762_p1 = pnand %p4761_p0, %p4755_p11 }
  0x23   :  { %4765 = shalt.err (!%p4762_p1)
}
  0x24   :  { %s4890_s1 = smov 256   ;;  %s4891_s22 = smov 16  }
  0x25   :  { %69 = dma.hbm_to_vmem [thread:$0]  %s5192_s4, 32768, %s64_s18, [#allocation9], %s4890_s1, %s4890_s1, %s4891_s22  }
  0x26   :  { %s4892_s30 = smov [#allocation2]   ;;  %s4766_s16 = scalar_lea.hbm %s5188_s0, 256 }
  0x27   :  { %s27_s13 = sshll.u32 %s4892_s30, 4  ;;  %p4767_p2 = scmp.ne.s32.totalorder %s5188_s0, %s4766_s16  ;;  %s28_s13 = int_to_ptr.vmem [resolvable:$true] %s27_s13 }
  0x28   :  { %p4770_p3 = scmp.lt.u32.totalorder %s4766_s16, %s5188_s0 }
  0x2a   :  { %p4772_p4 = pnand %p4770_p3, %p4767_p2 }
  0x2c   :  { %4775 = shalt.err (!%p4772_p4)
}
  0x2d   :  { %s4776_s23 = scalar_lea.vmem %s28_s13, 256  ;;  %p4781_p6 = scmp.lt.s32.totalorder %s28_s13, %s28_s13 }
  0x2e   :  { %p4777_p5 = scmp.ne.s32.totalorder %s28_s13, %s4776_s23  ;;  %p4782_p7 = scmp.lt.s32.totalorder %s4776_s23, %s4776_s23 }
  0x30   :  { %p4783_p8 = por %p4782_p7, %p4781_p6 }
  0x32   :  { %p4784_p9 = pnand %p4783_p8, %p4777_p5 }
  0x34   :  { %4787 = shalt.err (!%p4784_p9)
}
  0x35   :  { %s4893_s4 = smov 128   ;;  %s4894_s18 = smov 8  }
  0x36   :  { %33 = dma.hbm_to_vmem [thread:$0]  %s5188_s0, 256, %s28_s13, [#allocation3], %s4893_s4, %s4893_s4, %s4894_s18  }
  0x37   :  { %s4895_s26 = smov [#allocation7]   ;;  %s4896_s1 = smov [#allocation10]  }
  0x38   :  { %s52_s27 = sshll.u32 %s4895_s26, 4  ;;  %s79_s22 = sshll.u32 %s4896_s1, 4  ;;  %s53_s27 = int_to_ptr.vmem [resolvable:$true] %s52_s27  ;;  %s80_s22 = int_to_ptr.vmem [resolvable:$true] %s79_s22 }
  0x39   :  { %s4788_s30 = scalar_lea.hbm %s5190_s2, 128 }
  0x3a   :  { %p4789_p10 = scmp.ne.s32.totalorder %s5190_s2, %s4788_s30  ;;  %p4792_p11 = scmp.lt.u32.totalorder %s4788_s30, %s5190_s2 }
  0x3c   :  { %p4794_p12 = pnand %p4792_p11, %p4789_p10 }
  0x3e   :  { %4797 = shalt.err (!%p4794_p12)
}
  0x3f   :  { %s4798_s0 = scalar_lea.vmem %s53_s27, 128  ;;  %p4803_p0 = scmp.lt.s32.totalorder %s53_s27, %s53_s27 }
  0x40   :  { %p4799_p13 = scmp.ne.s32.totalorder %s53_s27, %s4798_s0  ;;  %p4804_p1 = scmp.lt.s32.totalorder %s4798_s0, %s4798_s0 }
  0x42   :  { %p4805_p2 = por %p4804_p1, %p4803_p0 }
  0x44   :  { %p4806_p3 = pnand %p4805_p2, %p4799_p13 }
  0x46   :  { %4809 = shalt.err (!%p4806_p3)
}
  0x47   :  { %55 = dma.hbm_to_vmem [thread:$0]  %s5190_s2, 128, %s53_s27, [#allocation6]  }
  0x48   :  { %s4810_s23 = scalar_lea.hbm %s5195_s7, 4096 }
  0x49   :  { %p4811_p4 = scmp.ne.s32.totalorder %s5195_s7, %s4810_s23  ;;  %p4814_p5 = scmp.lt.u32.totalorder %s4810_s23, %s5195_s7 }
  0x4b   :  { %p4816_p6 = pnand %p4814_p5, %p4811_p4 }
  0x4d   :  { %4819 = shalt.err (!%p4816_p6)
}
  0x4e   :  { %s4820_s28 = scalar_lea.vmem %s80_s22, 4096  ;;  %p4825_p8 = scmp.lt.s32.totalorder %s80_s22, %s80_s22 }
  0x4f   :  { %p4821_p7 = scmp.ne.s32.totalorder %s80_s22, %s4820_s28  ;;  %p4826_p9 = scmp.lt.s32.totalorder %s4820_s28, %s4820_s28 }
  0x51   :  { %p4827_p10 = por %p4826_p9, %p4825_p8 }
  0x53   :  { %p4828_p11 = pnand %p4827_p10, %p4821_p7 }
  0x55   :  { %4831 = shalt.err (!%p4828_p11)
}
  0x56   :  { %s4897_s2 = smov 64   ;;  %s4898_s27 = smov 4  }
  0x57   :  { %85 = dma.hbm_to_vmem [thread:$0]  %s5195_s7, 4096, %s80_s22, [#allocation9], %s4897_s2, %s4897_s2, %s4898_s27  }
  0x58   :  { %s4899_s14 = smov [#allocation11]   ;;  %s4832_s0 = scalar_lea.hbm %s5198_s10, 1024 }
  0x59   :  { %s95_s15 = sshll.u32 %s4899_s14, 4  ;;  %p4833_p12 = scmp.ne.s32.totalorder %s5198_s10, %s4832_s0  ;;  %s96_s15 = int_to_ptr.vmem [resolvable:$true] %s95_s15 }
  0x5a   :  { %p4836_p13 = scmp.lt.u32.totalorder %s4832_s0, %s5198_s10 }
  0x5c   :  { %p4838_p0 = pnand %p4836_p13, %p4833_p12 }
  0x5e   :  { %4841 = shalt.err (!%p4838_p0)
}
  0x5f   :  { %s4842_s23 = scalar_lea.vmem %s96_s15, 1024  ;;  %p4847_p2 = scmp.lt.s32.totalorder %s96_s15, %s96_s15 }
  0x60   :  { %p4843_p1 = scmp.ne.s32.totalorder %s96_s15, %s4842_s23  ;;  %p4848_p3 = scmp.lt.s32.totalorder %s4842_s23, %s4842_s23 }
  0x62   :  { %p4849_p4 = por %p4848_p3, %p4847_p2 }
  0x64   :  { %p4850_p5 = pnand %p4849_p4, %p4843_p1 }
  0x66   :  { %4853 = shalt.err (!%p4850_p5)
}
  0x67   :  { %101 = dma.hbm_to_vmem [thread:$0]  %s5198_s10, 1024, %s96_s15, [#allocation12], %s4897_s2, %s4897_s2, %s4898_s27  }
  0x68   :  { %4876 = dma.done.wait [#allocation3], 256  }
  0x69   :  { %4877 = vsyncadd [#allocation3], 4294967040 }
  0x6a   :  { %4878 = dma.done.wait [#allocation6], 16512  }
  0x6b   :  { %4879 = vsyncadd [#allocation6], 4294950784 }
  0x6c   :  { %4880 = dma.done.wait [#allocation9], 36864  }
  0x6d   :  { %4881 = vsyncadd [#allocation9], 4294930432 }
  0x6e   :  { %4882 = dma.done.wait [#allocation12], 1024  }
  0x6f   :  { %4883 = vsyncadd [#allocation12], 4294966272  ;;  %v125_v0 = vld [vmem:[#allocation5] sm:$0xff]  ;;  %v126_v17 = vld [vmem:[#allocation5 + $0x8] sm:$0xff]  ;;  %vm4901_vm0 = vmmov 0   ;;  %s4902_s27 = smov [#allocation13]  }
  0x70   :  { %v129_v1 = vld [vmem:[#allocation5 + $0x20] sm:$0xff]  ;;  %v130_v18 = vld [vmem:[#allocation5 + $0x28] sm:$0xff]  ;;  %v5043_v22 = vld [vmem:[#allocation2 + $0x4] ss:$8 sps:$4 sm:$0xff]   ;;  %s3730_s29 = sshll.u32 %s4902_s27, 4  ;;  %s3731_s29 = int_to_ptr.vmem [resolvable:$true] %s3730_s29 }
  0x71   :  { %v133_v2 = vld [vmem:[#allocation5 + $0x40] sm:$0xff]  ;;  %v3748_v3 = vcombine.high %v125_v0, %v129_v1  ;;  %v3747_v4 = vcombine.low %v125_v0, %v129_v1  ;;  %v3750_v19 = vcombine.high %v126_v17, %v130_v18  ;;  %v3749_v20 = vcombine.low %v126_v17, %v130_v18  ;;  %v134_v23 = vld [vmem:[#allocation5 + $0x48] sm:$0xff]  ;;  %977 = vmatprep.mubr.bf16.mxu0 %v5043_v22  ;;  %s4854_s30 = scalar_lea.vmem %s3731_s29, 256  ;;  %p4859_p7 = scmp.lt.s32.totalorder %s3731_s29, %s3731_s29 }
  0x72   :  { %v137_v5 = vld [vmem:[#allocation5 + $0x60] sm:$0xff]  ;;  %v138_v24 = vld [vmem:[#allocation5 + $0x68] sm:$0xff]  ;;  %1020 = vmatprep.mubr.bf16.mxu1 %v5043_v22  ;;  %p4855_p6 = scmp.ne.s32.totalorder %s3731_s29, %s4854_s30  ;;  %p4860_p8 = scmp.lt.s32.totalorder %s4854_s30, %s4854_s30 }
  0x73   :  { %v3756_v6 = vcombine.high %v133_v2, %v137_v5  ;;  %v141_v7 = vld [vmem:[#allocation5 + $0x80] sm:$0xff]  ;;  %945 = vmatprep.subr.bf16.mxu0 %v3748_v3  ;;  %v3755_v9 = vcombine.low %v133_v2, %v137_v5  ;;  %988 = vmatprep.subr.bf16.mxu1 %v3750_v19  ;;  %v3758_v26 = vcombine.high %v134_v23, %v138_v24  ;;  %v142_v27 = vld [vmem:[#allocation5 + $0x88] sm:$0xff] }
  0x74   :  { %v145_v8 = vld [vmem:[#allocation5 + $0xa0] sm:$0xff]  ;;  %946 = vmatpush1.bf16.msra.mxu0 %v3747_v4  ;;  %v146_v28 = vld [vmem:[#allocation5 + $0xa8] sm:$0xff]  ;;  %989 = vmatpush1.bf16.msra.mxu1 %v3749_v20  ;;  %v3757_v31 = vcombine.low %v134_v23, %v138_v24  ;;  %p4861_p9 = por %p4860_p8, %p4859_p7 }
  0x75   :  { %947 = vmatprep.subr.bf16.mxu0 %v3756_v6  ;;  %v3764_v10 = vcombine.high %v141_v7, %v145_v8  ;;  %v149_v11 = vld [vmem:[#allocation5 + $0xc0] sm:$0xff]  ;;  %v3763_v13 = vcombine.low %v141_v7, %v145_v8  ;;  %990 = vmatprep.subr.bf16.mxu1 %v3758_v26  ;;  %v3766_v32 = vcombine.high %v142_v27, %v146_v28  ;;  %v150_v34 = vld [vmem:[#allocation5 + $0xc8] sm:$0xff] }
  0x76   :  { %v153_v12 = vld [vmem:[#allocation5 + $0xe0] sm:$0xff]  ;;  %v154_v35 = vld [vmem:[#allocation5 + $0xe8] sm:$0xff]  ;;  %v3765_v39 = vcombine.low %v142_v27, %v146_v28  ;;  %p4862_p10 = pnand %p4861_p9, %p4855_p6 }
  0x77   :  { %v3772_v14 = vcombine.high %v149_v11, %v153_v12  ;;  %v157_v15 = vld [vmem:[#allocation5 + $0x100] sm:$0xff]  ;;  %v3771_v21 = vcombine.low %v149_v11, %v153_v12  ;;  %v3774_v40 = vcombine.high %v150_v34, %v154_v35  ;;  %v158_v42 = vld [vmem:[#allocation5 + $0x108] sm:$0xff]  ;;  %v3773_v47 = vcombine.low %v150_v34, %v154_v35 }
  0x78   :  { %948 = vmatpush1.bf16.msra.mxu0 %v3755_v9  ;;  %v161_v16 = vld [vmem:[#allocation5 + $0x120] sm:$0xff]  ;;  %991 = vmatpush1.bf16.msra.mxu1 %v3757_v31  ;;  %v162_v43 = vld [vmem:[#allocation5 + $0x128] sm:$0xff] }
  0x79   :  { %949 = vmatprep.subr.bf16.mxu0 %v3764_v10  ;;  %v3780_v25 = vcombine.high %v157_v15, %v161_v16  ;;  %v165_v29 = vld [vmem:[#allocation5 + $0x140] sm:$0xff]  ;;  %v3779_v33 = vcombine.low %v157_v15, %v161_v16  ;;  %992 = vmatprep.subr.bf16.mxu1 %v3766_v32  ;;  %v3782_v48 = vcombine.high %v158_v42, %v162_v43  ;;  %v166_v50 = vld [vmem:[#allocation5 + $0x148] sm:$0xff] }
  0x7a   :  { %v169_v30 = vld [vmem:[#allocation5 + $0x160] sm:$0xff]  ;;  %v170_v51 = vld [vmem:[#allocation5 + $0x168] sm:$0xff]  ;;  %v3781_v55 = vcombine.low %v158_v42, %v162_v43 }
  0x7b   :  { %v3788_v36 = vcombine.high %v165_v29, %v169_v30  ;;  %v173_v37 = vld [vmem:[#allocation5 + $0x180] sm:$0xff]  ;;  %v3787_v41 = vcombine.low %v165_v29, %v169_v30  ;;  %v3790_v56 = vcombine.high %v166_v50, %v170_v51  ;;  %v174_v58 = vld [vmem:[#allocation5 + $0x188] sm:$0xff]  ;;  %v3789_v63 = vcombine.low %v166_v50, %v170_v51 }
  0x7c   :  { %950 = vmatpush1.bf16.msra.mxu0 %v3763_v13  ;;  %v177_v38 = vld [vmem:[#allocation5 + $0x1a0] sm:$0xff]  ;;  %993 = vmatpush1.bf16.msra.mxu1 %v3765_v39  ;;  %v178_v59 = vld [vmem:[#allocation5 + $0x1a8] sm:$0xff] }
  0x7d   :  { %951 = vmatprep.subr.bf16.mxu0 %v3772_v14  ;;  %v3796_v44 = vcombine.high %v173_v37, %v177_v38  ;;  %v181_v45 = vld [vmem:[#allocation5 + $0x1c0] sm:$0xff]  ;;  %994 = vmatprep.subr.bf16.mxu1 %v3774_v40  ;;  %v3795_v49 = vcombine.low %v173_v37, %v177_v38  ;;  %v3798_v0 = vcombine.high %v174_v58, %v178_v59  ;;  %v182_v2 = vld [vmem:[#allocation5 + $0x1c8] sm:$0xff] }
  0x7e   :  { %v185_v46 = vld [vmem:[#allocation5 + $0x1e0] sm:$0xff]  ;;  %v186_v3 = vld [vmem:[#allocation5 + $0x1e8] sm:$0xff]  ;;  %v3797_v7 = vcombine.low %v174_v58, %v178_v59 }
  0x7f   :  { %v3804_v52 = vcombine.high %v181_v45, %v185_v46  ;;  %v189_v53 = vld [vmem:[#allocation5 + $0x200] sm:$0xff]  ;;  %v3803_v57 = vcombine.low %v181_v45, %v185_v46  ;;  %v3806_v8 = vcombine.high %v182_v2, %v186_v3  ;;  %v190_v10 = vld [vmem:[#allocation5 + $0x208] sm:$0xff]  ;;  %v3805_v15 = vcombine.low %v182_v2, %v186_v3 }
  0x80   :  { %952 = vmatpush1.bf16.msra.mxu0 %v3771_v21  ;;  %v193_v54 = vld [vmem:[#allocation5 + $0x220] sm:$0xff]  ;;  %995 = vmatpush1.bf16.msra.mxu1 %v3773_v47  ;;  %v194_v11 = vld [vmem:[#allocation5 + $0x228] sm:$0xff] }
  0x81   :  { %953 = vmatprep.subr.bf16.mxu0 %v3780_v25  ;;  %996 = vmatprep.subr.bf16.mxu1 %v3782_v48  ;;  %v3812_v60 = vcombine.high %v189_v53, %v193_v54  ;;  %v197_v61 = vld [vmem:[#allocation5 + $0x240] sm:$0xff]  ;;  %v3811_v1 = vcombine.low %v189_v53, %v193_v54  ;;  %v3814_v16 = vcombine.high %v190_v10, %v194_v11  ;;  %v198_v18 = vld [vmem:[#allocation5 + $0x248] sm:$0xff] }
  0x82   :  { %v201_v62 = vld [vmem:[#allocation5 + $0x260] sm:$0xff]  ;;  %v202_v19 = vld [vmem:[#allocation5 + $0x268] sm:$0xff]  ;;  %v3813_v24 = vcombine.low %v190_v10, %v194_v11  ;;  %v128_v11 = vld [vmem:[#allocation5 + $0x18] sm:$0xff] }
  0x83   :  { %v3820_v4 = vcombine.high %v197_v61, %v201_v62  ;;  %v205_v5 = vld [vmem:[#allocation5 + $0x280] sm:$0xff]  ;;  %v3819_v9 = vcombine.low %v197_v61, %v201_v62  ;;  %v3822_v25 = vcombine.high %v198_v18, %v202_v19  ;;  %v206_v26 = vld [vmem:[#allocation5 + $0x288] sm:$0xff]  ;;  %v3821_v32 = vcombine.low %v198_v18, %v202_v19  ;;  %v136_v19 = vld [vmem:[#allocation5 + $0x58] sm:$0xff] }
  0x84   :  { %954 = vmatpush1.bf16.msra.mxu0 %v3779_v33  ;;  %997 = vmatpush1.bf16.msra.mxu1 %v3781_v55  ;;  %v209_v6 = vld [vmem:[#allocation5 + $0x2a0] sm:$0xff]  ;;  %v210_v28 = vld [vmem:[#allocation5 + $0x2a8] sm:$0xff]  ;;  %v127_v55 = vld [vmem:[#allocation5 + $0x10] sm:$0xff] }
  0x85   :  { %955 = vmatprep.subr.bf16.mxu0 %v3788_v36  ;;  %998 = vmatprep.subr.bf16.mxu1 %v3790_v56  ;;  %v3828_v12 = vcombine.high %v205_v5, %v209_v6  ;;  %v213_v13 = vld [vmem:[#allocation5 + $0x2c0] sm:$0xff]  ;;  %v3827_v17 = vcombine.low %v205_v5, %v209_v6  ;;  %v3830_v33 = vcombine.high %v206_v26, %v210_v28  ;;  %v214_v34 = vld [vmem:[#allocation5 + $0x2c8] sm:$0xff]  ;;  %v131_v56 = vld [vmem:[#allocation5 + $0x30] sm:$0xff] }
  0x86   :  { %v217_v14 = vld [vmem:[#allocation5 + $0x2e0] sm:$0xff]  ;;  %v218_v36 = vld [vmem:[#allocation5 + $0x2e8] sm:$0xff]  ;;  %v3829_v40 = vcombine.low %v206_v26, %v210_v28  ;;  %v3752_v61 = vcombine.high %v127_v55, %v131_v56  ;;  %v3751_v5 = vcombine.low %v127_v55, %v131_v56  ;;  %v144_v28 = vld [vmem:[#allocation5 + $0x98] sm:$0xff] }
  0x87   :  { %v3836_v20 = vcombine.high %v213_v13, %v217_v14  ;;  %v221_v21 = vld [vmem:[#allocation5 + $0x300] sm:$0xff]  ;;  %v3835_v27 = vcombine.low %v213_v13, %v217_v14  ;;  %v222_v42 = vld [vmem:[#allocation5 + $0x308] sm:$0xff]  ;;  %v3837_v48 = vcombine.low %v214_v34, %v218_v36  ;;  %v132_v13 = vld [vmem:[#allocation5 + $0x38] sm:$0xff] }
  0x88   :  { %956 = vmatpush1.bf16.msra.mxu0 %v3787_v41  ;;  %999 = vmatpush1.bf16.msra.mxu1 %v3789_v63  ;;  %v225_v23 = vld [vmem:[#allocation5 + $0x320] sm:$0xff]  ;;  %v3838_v41 = vcombine.high %v214_v34, %v218_v36  ;;  %v230_v50 = vld [vmem:[#allocation5 + $0x348] sm:$0xff]  ;;  %v135_v63 = vld [vmem:[#allocation5 + $0x50] sm:$0xff]  ;;  %v3754_v18 = vcombine.high %v128_v11, %v132_v13  ;;  %v3753_v26 = vcombine.low %v128_v11, %v132_v13 }
  0x89   :  { %957 = vmatprep.subr.bf16.mxu0 %v3796_v44  ;;  %1000 = vmatprep.subr.bf16.mxu1 %v3798_v0  ;;  %v3844_v29 = vcombine.high %v221_v21, %v225_v23  ;;  %v229_v30 = vld [vmem:[#allocation5 + $0x340] sm:$0xff]  ;;  %v3843_v35 = vcombine.low %v221_v21, %v225_v23  ;;  %v226_v44 = vld [vmem:[#allocation5 + $0x328] sm:$0xff]  ;;  %v139_v0 = vld [vmem:[#allocation5 + $0x70] sm:$0xff] }
  0x8a   :  { %v233_v31 = vld [vmem:[#allocation5 + $0x360] sm:$0xff]  ;;  %v3845_v54 = vcombine.low %v222_v42, %v226_v44  ;;  %v238_v58 = vld [vmem:[#allocation5 + $0x388] sm:$0xff]  ;;  %v3760_v6 = vcombine.high %v135_v63, %v139_v0  ;;  %v140_v21 = vld [vmem:[#allocation5 + $0x78] sm:$0xff] }
  0x8b   :  { %v3852_v37 = vcombine.high %v229_v30, %v233_v31  ;;  %v237_v38 = vld [vmem:[#allocation5 + $0x380] sm:$0xff]  ;;  %v3851_v43 = vcombine.low %v229_v30, %v233_v31  ;;  %v246_v3 = vld [vmem:[#allocation5 + $0x3c8] sm:$0xff]  ;;  %v148_v30 = vld [vmem:[#allocation5 + $0xb8] sm:$0xff]  ;;  %v3761_v34 = vcombine.low %v136_v19, %v140_v21 }
  0x8c   :  { %958 = vmatpush1.bf16.msra.mxu0 %v3795_v49  ;;  %1001 = vmatpush1.bf16.msra.mxu1 %v3797_v7  ;;  %v241_v39 = vld [vmem:[#allocation5 + $0x3a0] sm:$0xff]  ;;  %v3846_v49 = vcombine.high %v222_v42, %v226_v44  ;;  %v156_v36 = vld [vmem:[#allocation5 + $0xf8] sm:$0xff]  ;;  %v3769_v42 = vcombine.low %v144_v28, %v148_v30  ;;  %v195_v55 = vld [vmem:[#allocation5 + $0x230] sm:$0xff] }
  0x8d   :  { %959 = vmatprep.subr.bf16.mxu0 %v3804_v52  ;;  %1002 = vmatprep.subr.bf16.mxu1 %v3806_v8  ;;  %v3860_v45 = vcombine.high %v237_v38, %v241_v39  ;;  %v245_v46 = vld [vmem:[#allocation5 + $0x3c0] sm:$0xff]  ;;  %v3859_v51 = vcombine.low %v237_v38, %v241_v39  ;;  %v234_v52 = vld [vmem:[#allocation5 + $0x368] sm:$0xff]  ;;  %v143_v8 = vld [vmem:[#allocation5 + $0x90] sm:$0xff] }
  0x8e   :  { %v249_v47 = vld [vmem:[#allocation5 + $0x3e0] sm:$0xff]  ;;  %v3853_v62 = vcombine.low %v230_v50, %v234_v52  ;;  %v175_v39 = vld [vmem:[#allocation5 + $0x190] sm:$0xff]  ;;  %v164_v44 = vld [vmem:[#allocation5 + $0x138] sm:$0xff] }
  0x8f   :  { %v3868_v53 = vcombine.high %v245_v46, %v249_v47  ;;  %v3867_v59 = vcombine.low %v245_v46, %v249_v47  ;;  %v183_v47 = vld [vmem:[#allocation5 + $0x1d0] sm:$0xff]  ;;  %v192_v11 = vld [vmem:[#allocation5 + $0x218] sm:$0xff] }
  0x90   :  { %960 = vmatpush1.bf16.msra.mxu0 %v3803_v57  ;;  %1003 = vmatpush1.bf16.msra.mxu1 %v3805_v15  ;;  %v3854_v57 = vcombine.high %v230_v50, %v234_v52  ;;  %v168_v50 = vld [vmem:[#allocation5 + $0x158] sm:$0xff] }
  0x91   :  { %961 = vmatprep.subr.bf16.mxu0 %v3812_v60  ;;  %1004 = vmatprep.subr.bf16.mxu1 %v3814_v16  ;;  %v242_v60 = vld [vmem:[#allocation5 + $0x3a8] sm:$0xff]  ;;  %v151_v16 = vld [vmem:[#allocation5 + $0xd0] sm:$0xff] }
  0x92   :  { %v3862_v2 = vcombine.high %v238_v58, %v242_v60  ;;  %v3861_v7 = vcombine.low %v238_v58, %v242_v60  ;;  %v176_v58 = vld [vmem:[#allocation5 + $0x198] sm:$0xff] }
  0x94   :  { %962 = vmatpush1.bf16.msra.mxu0 %v3811_v1  ;;  %1005 = vmatpush1.bf16.msra.mxu1 %v3813_v24  ;;  %v5047_v1 = vld [vmem:[#allocation2] ss:$8 sps:$4 sm:$0xff]  }
  0x95   :  { %963 = vmatprep.subr.bf16.mxu0 %v3820_v4  ;;  %1006 = vmatprep.subr.bf16.mxu1 %v3822_v25  ;;  %v250_v4 = vld [vmem:[#allocation5 + $0x3e8] sm:$0xff]  ;;  %v159_v24 = vld [vmem:[#allocation5 + $0x110] sm:$0xff] }
  0x96   :  { %v3870_v10 = vcombine.high %v246_v3, %v250_v4  ;;  %v3869_v15 = vcombine.low %v246_v3, %v250_v4  ;;  %v163_v25 = vld [vmem:[#allocation5 + $0x130] sm:$0xff]  ;;  %v184_v3 = vld [vmem:[#allocation5 + $0x1d8] sm:$0xff] }
  0x97   :  { %v3784_v31 = vcombine.high %v159_v24, %v163_v25  ;;  %v3783_v38 = vcombine.low %v159_v24, %v163_v25  ;;  %v188_v4 = vld [vmem:[#allocation5 + $0x1f8] sm:$0xff]  ;;  %v223_v24 = vld [vmem:[#allocation5 + $0x310] sm:$0xff] }
  0x98   :  { %964 = vmatpush1.bf16.msra.mxu0 %v3819_v9  ;;  %1007 = vmatpush1.bf16.msra.mxu1 %v3821_v32  ;;  %v147_v9 = vld [vmem:[#allocation5 + $0xb0] sm:$0xff]  ;;  %v3810_v13 = vcombine.high %v184_v3, %v188_v4 }
  0x99   :  { %965 = vmatprep.subr.bf16.mxu0 %v3828_v12  ;;  %1008 = vmatprep.subr.bf16.mxu1 %v3830_v33  ;;  %v3759_v12 = vcombine.low %v135_v63, %v139_v0  ;;  %v3768_v14 = vcombine.high %v143_v8, %v147_v9  ;;  %v167_v32 = vld [vmem:[#allocation5 + $0x150] sm:$0xff] }
  0x9a   :  { %v171_v33 = vld [vmem:[#allocation5 + $0x170] sm:$0xff] }
  0x9b   :  { %v3791_v46 = vcombine.low %v167_v32, %v171_v33  ;;  %v203_v63 = vld [vmem:[#allocation5 + $0x270] sm:$0xff] }
  0x9c   :  { %966 = vmatpush1.bf16.msra.mxu0 %v3827_v17  ;;  %1009 = vmatpush1.bf16.msra.mxu1 %v3829_v40  ;;  %v155_v17 = vld [vmem:[#allocation5 + $0xf0] sm:$0xff] }
  0x9d   :  { %967 = vmatprep.subr.bf16.mxu0 %v3836_v20  ;;  %1010 = vmatprep.subr.bf16.mxu1 %v3838_v41  ;;  %v3767_v20 = vcombine.low %v143_v8, %v147_v9  ;;  %v3776_v23 = vcombine.high %v151_v16, %v155_v17  ;;  %v179_v40 = vld [vmem:[#allocation5 + $0x1b0] sm:$0xff]  ;;  %v3792_v41 = vcombine.high %v167_v32, %v171_v33 }
  0x9e   :  { %v211_v8 = vld [vmem:[#allocation5 + $0x2b0] sm:$0xff] }
  0x9f   :  { %v227_v25 = vld [vmem:[#allocation5 + $0x330] sm:$0xff] }
  0xa0   :  { %968 = vmatpush1.bf16.msra.mxu0 %v3835_v27  ;;  %1011 = vmatpush1.bf16.msra.mxu1 %v3837_v48  ;;  %v3762_v27 = vcombine.high %v136_v19, %v140_v21  ;;  %v187_v48 = vld [vmem:[#allocation5 + $0x1f0] sm:$0xff]  ;;  %v200_v19 = vld [vmem:[#allocation5 + $0x258] sm:$0xff] }
  0xa1   :  { %969 = vmatprep.subr.bf16.mxu0 %v3844_v29  ;;  %1012 = vmatprep.subr.bf16.mxu1 %v3846_v49  ;;  %v3775_v29 = vcombine.low %v151_v16, %v155_v17  ;;  %v3808_v56 = vcombine.high %v183_v47, %v187_v48  ;;  %v219_v16 = vld [vmem:[#allocation5 + $0x2f0] sm:$0xff] }
  0xa2   :  { %v231_v32 = vld [vmem:[#allocation5 + $0x350] sm:$0xff] }
  0xa3   :  { %v235_v33 = vld [vmem:[#allocation5 + $0x370] sm:$0xff] }
  0xa4   :  { %970 = vmatpush1.bf16.msra.mxu0 %v3843_v35  ;;  %1013 = vmatpush1.bf16.msra.mxu1 %v3845_v54  ;;  %v152_v35 = vld [vmem:[#allocation5 + $0xd8] sm:$0xff]  ;;  %v191_v54 = vld [vmem:[#allocation5 + $0x210] sm:$0xff] }
  0xa5   :  { %971 = vmatprep.subr.bf16.mxu0 %v3852_v37  ;;  %1014 = vmatprep.subr.bf16.mxu1 %v3854_v57  ;;  %v3770_v37 = vcombine.high %v144_v28, %v148_v30  ;;  %v3777_v49 = vcombine.low %v152_v35, %v156_v36  ;;  %v3816_v0 = vcombine.high %v191_v54, %v195_v55  ;;  %v208_v28 = vld [vmem:[#allocation5 + $0x298] sm:$0xff] }
  0xa8   :  { %972 = vmatpush1.bf16.msra.mxu0 %v3851_v43  ;;  %1015 = vmatpush1.bf16.msra.mxu1 %v3853_v62  ;;  %v160_v43 = vld [vmem:[#allocation5 + $0x118] sm:$0xff]  ;;  %v199_v62 = vld [vmem:[#allocation5 + $0x250] sm:$0xff] }
  0xa9   :  { %973 = vmatprep.subr.bf16.mxu0 %v3860_v45  ;;  %1016 = vmatprep.subr.bf16.mxu1 %v3862_v2  ;;  %v3778_v45 = vcombine.high %v152_v35, %v156_v36  ;;  %v3786_v52 = vcombine.high %v160_v43, %v164_v44  ;;  %v3785_v57 = vcombine.low %v160_v43, %v164_v44  ;;  %v216_v36 = vld [vmem:[#allocation5 + $0x2d8] sm:$0xff] }
  0xaa   :  { %v3824_v9 = vcombine.high %v199_v62, %v203_v63  ;;  %v224_v44 = vld [vmem:[#allocation5 + $0x318] sm:$0xff] }
  0xac   :  { %974 = vmatpush1.bf16.msra.mxu0 %v3859_v51  ;;  %1017 = vmatpush1.bf16.msra.mxu1 %v3861_v7  ;;  %v172_v51 = vld [vmem:[#allocation5 + $0x178] sm:$0xff]  ;;  %v207_v7 = vld [vmem:[#allocation5 + $0x290] sm:$0xff] }
  0xad   :  { %975 = vmatprep.subr.bf16.mxu0 %v3868_v53  ;;  %1018 = vmatprep.subr.bf16.mxu1 %v3870_v10  ;;  %v3799_v53 = vcombine.low %v175_v39, %v179_v40  ;;  %v3794_v60 = vcombine.high %v168_v50, %v172_v51  ;;  %v3793_v2 = vcombine.low %v168_v50, %v172_v51  ;;  %v232_v51 = vld [vmem:[#allocation5 + $0x358] sm:$0xff] }
  0xae   :  { %v3832_v17 = vcombine.high %v207_v7, %v211_v8 }
  0xb0   :  { %976 = vmatpush1.bf16.msra.mxu0 %v3867_v59  ;;  %1019 = vmatpush1.bf16.msra.mxu1 %v3869_v15  ;;  %v180_v59 = vld [vmem:[#allocation5 + $0x1b8] sm:$0xff]  ;;  %v215_v15 = vld [vmem:[#allocation5 + $0x2d0] sm:$0xff] }
  0xb1   :  { %1031 = vmatprep.subr.bf16.mxu0 %v3752_v61  ;;  %1074 = vmatprep.subr.bf16.mxu1 %v3754_v18  ;;  %v3807_v61 = vcombine.low %v183_v47, %v187_v48  ;;  %v3801_v10 = vcombine.low %v176_v58, %v180_v59  ;;  %v3809_v18 = vcombine.low %v184_v3, %v188_v4  ;;  %v247_v48 = vld [vmem:[#allocation5 + $0x3d0] sm:$0xff]  ;;  %v4306_v4 = vld [vmem:[#allocation8 + $0x24] ss:$16 sps:$4 sm:$0xff]  }
  0xb2   :  { %v3855_v47 = vcombine.low %v231_v32, %v235_v33 }
  0xb3   :  { %978 = vmatmul.mubr.bf16.vlgmr.msra.gmra.mrb[0].mxu0 %v5047_v1  ;;  %1021 = vmatmul.mubr.bf16.vlgmr.msra.gmra.mrb[0].mxu1 %v5047_v1 }
  0xb4   :  { %1032 = vmatpush1.bf16.msra.mxu0 %v3751_v5  ;;  %1063 = vmatprep.mubr.bf16.mxu0 %v5043_v22  ;;  %v3802_v5 = vcombine.high %v176_v58, %v180_v59  ;;  %v244_v58 = vld [vmem:[#allocation5 + $0x3b8] sm:$0xff] }
  0xb5   :  { %1033 = vmatprep.subr.bf16.mxu0 %v3760_v6  ;;  %1075 = vmatpush1.bf16.msra.mxu1 %v3753_v26  ;;  %v3815_v6 = vcombine.low %v191_v54, %v195_v55  ;;  %v3840_v26 = vcombine.high %v215_v15, %v219_v16 }
  0xb6   :  { %1106 = vmatprep.mubr.bf16.mxu1 %v5043_v22  ;;  %1076 = vmatprep.subr.bf16.mxu1 %v3762_v27  ;;  %v3800_v22 = vcombine.high %v175_v39, %v179_v40  ;;  %v3847_v39 = vcombine.low %v223_v24, %v227_v25  ;;  %v239_v40 = vld [vmem:[#allocation5 + $0x390] sm:$0xff] }
  0xb8   :  { %1034 = vmatpush1.bf16.msra.mxu0 %v3759_v12  ;;  %v196_v12 = vld [vmem:[#allocation5 + $0x238] sm:$0xff] }
  0xb9   :  { %1035 = vmatprep.subr.bf16.mxu0 %v3768_v14  ;;  %1077 = vmatpush1.bf16.msra.mxu1 %v3761_v34  ;;  %v3823_v14 = vcombine.low %v199_v62, %v203_v63  ;;  %v3818_v21 = vcombine.high %v192_v11, %v196_v12  ;;  %v3817_v27 = vcombine.low %v192_v11, %v196_v12  ;;  %v248_v63 = vld [vmem:[#allocation5 + $0x3d8] sm:$0xff] }
  0xba   :  { %1078 = vmatprep.subr.bf16.mxu1 %v3770_v37  ;;  %v3848_v34 = vcombine.high %v223_v24, %v227_v25  ;;  %v220_v37 = vld [vmem:[#allocation5 + $0x2f8] sm:$0xff] }
  0xbb   :  { %v3841_v50 = vcombine.low %v216_v36, %v220_v37  ;;  %v4310_v11 = vld [vmem:[#allocation8 + $0x40] ss:$16 sps:$4 sm:$0xff]   ;;  %v4318_v12 = vld [vmem:[#allocation8 + $0x64] ss:$16 sps:$4 sm:$0xff]  }
  0xbc   :  { %1036 = vmatpush1.bf16.msra.mxu0 %v3767_v20  ;;  %v204_v20 = vld [vmem:[#allocation5 + $0x278] sm:$0xff] }
  0xbd   :  { %1037 = vmatprep.subr.bf16.mxu0 %v3776_v23  ;;  %1079 = vmatpush1.bf16.msra.mxu1 %v3769_v42  ;;  %v3831_v23 = vcombine.low %v207_v7, %v211_v8  ;;  %v3826_v30 = vcombine.high %v200_v19, %v204_v20  ;;  %v3825_v35 = vcombine.low %v200_v19, %v204_v20  ;;  %v4312_v8 = vld [vmem:[#allocation8 + $0x44] ss:$16 sps:$4 sm:$0xff]   ;;  %v4322_v19 = vld [vmem:[#allocation8 + $0x80] ss:$16 sps:$4 sm:$0xff]  }
  0xbe   :  { %1080 = vmatprep.subr.bf16.mxu1 %v3778_v45  ;;  %v3856_v42 = vcombine.high %v231_v32, %v235_v33  ;;  %v228_v45 = vld [vmem:[#allocation5 + $0x338] sm:$0xff]  ;;  %v4331_v33 = vld [vmem:[#allocation8 + $0xa8] ss:$16 sps:$4 sm:$0xff]  }
  0xbf   :  { %v4330_v20 = vld [vmem:[#allocation8 + $0xa4] ss:$16 sps:$4 sm:$0xff]   ;;  %v4328_v24 = vld [vmem:[#allocation8 + $0xa0] ss:$16 sps:$4 sm:$0xff]  }
  0xc0   :  { %1038 = vmatpush1.bf16.msra.mxu0 %v3775_v29  ;;  %v212_v29 = vld [vmem:[#allocation5 + $0x2b8] sm:$0xff] }
  0xc1   :  { %1039 = vmatprep.subr.bf16.mxu0 %v3784_v31  ;;  %1081 = vmatpush1.bf16.msra.mxu1 %v3777_v49  ;;  %v3839_v31 = vcombine.low %v215_v15, %v219_v16  ;;  %v3833_v43 = vcombine.low %v208_v28, %v212_v29  ;;  %v4316_v15 = vld [vmem:[#allocation8 + $0x60] ss:$16 sps:$4 sm:$0xff]   ;;  %v4324_v16 = vld [vmem:[#allocation8 + $0x84] ss:$16 sps:$4 sm:$0xff]  }
  0xc2   :  { %1082 = vmatprep.subr.bf16.mxu1 %v3786_v52  ;;  %v236_v52 = vld [vmem:[#allocation5 + $0x378] sm:$0xff] }
  0xc3   :  { %v3858_v59 = vcombine.high %v232_v51, %v236_v52  ;;  %v3857_v62 = vcombine.low %v232_v51, %v236_v52  ;;  %v4336_v25 = vld [vmem:[#allocation8 + $0xc4] ss:$16 sps:$4 sm:$0xff]   ;;  %v4361_v52 = vld [vmem:[#allocation8 + $0x148] ss:$16 sps:$4 sm:$0xff]  }
  0xc4   :  { %1040 = vmatpush1.bf16.msra.mxu0 %v3783_v38  ;;  %v3834_v38 = vcombine.high %v208_v28, %v212_v29  ;;  %v4342_v28 = vld [vmem:[#allocation8 + $0xe4] ss:$16 sps:$4 sm:$0xff]   ;;  %v4325_v29 = vld [vmem:[#allocation8 + $0x88] ss:$16 sps:$4 sm:$0xff]  }
  0xc5   :  { %1041 = vmatprep.subr.bf16.mxu0 %v3792_v41  ;;  %1083 = vmatpush1.bf16.msra.mxu1 %v3785_v57  ;;  %v243_v41 = vld [vmem:[#allocation5 + $0x3b0] sm:$0xff]  ;;  %v240_v57 = vld [vmem:[#allocation5 + $0x398] sm:$0xff] }
  0xc6   :  { %1084 = vmatprep.subr.bf16.mxu1 %v3794_v60  ;;  %v3864_v49 = vcombine.high %v239_v40, %v243_v41  ;;  %v3863_v54 = vcombine.low %v239_v40, %v243_v41  ;;  %v4300_v60 = vld [vmem:[#allocation8 + $0x4] ss:$16 sps:$4 sm:$0xff]   ;;  %v3866_v3 = vcombine.high %v240_v57, %v244_v58  ;;  %v4343_v41 = vld [vmem:[#allocation8 + $0xe8] ss:$16 sps:$4 sm:$0xff]  }
  0xc7   :  { %v4348_v32 = vld [vmem:[#allocation8 + $0x104] ss:$16 sps:$4 sm:$0xff]  }
  0xc8   :  { %1042 = vmatpush1.bf16.msra.mxu0 %v3791_v46  ;;  %v3842_v46 = vcombine.high %v216_v36, %v220_v37  ;;  %v4354_v36 = vld [vmem:[#allocation8 + $0x124] ss:$16 sps:$4 sm:$0xff]   ;;  %v4337_v37 = vld [vmem:[#allocation8 + $0xc8] ss:$16 sps:$4 sm:$0xff]  }
  0xc9   :  { %1043 = vmatprep.subr.bf16.mxu0 %v3800_v22  ;;  %1085 = vmatpush1.bf16.msra.mxu1 %v3793_v2  ;;  %v251_v22 = vld [vmem:[#allocation5 + $0x3f0] sm:$0xff]  ;;  %v4298_v2 = vld [vmem:[#allocation8] ss:$16 sps:$4 sm:$0xff]   ;;  %v4360_v40 = vld [vmem:[#allocation8 + $0x144] ss:$16 sps:$4 sm:$0xff]  }
  0xca   :  { %1086 = vmatprep.subr.bf16.mxu1 %v3802_v5  ;;  %v3872_v55 = vcombine.high %v247_v48, %v251_v22  ;;  %v3865_v5 = vcombine.low %v240_v57, %v244_v58  ;;  %v4378_v51 = vld [vmem:[#allocation8 + $0x1a4] ss:$16 sps:$4 sm:$0xff]   ;;  %v4375_v57 = vld [vmem:[#allocation8 + $0x18c] ss:$16 sps:$4 sm:$0xff]   ;;  %v4382_v58 = vld [vmem:[#allocation8 + $0x1c0] ss:$16 sps:$4 sm:$0xff]  }
  0xcc   :  { %1044 = vmatpush1.bf16.msra.mxu0 %v3799_v53  ;;  %v3850_v53 = vcombine.high %v224_v44, %v228_v45 }
  0xcd   :  { %1045 = vmatprep.subr.bf16.mxu0 %v3808_v56  ;;  %1087 = vmatpush1.bf16.msra.mxu1 %v3801_v10  ;;  %v3849_v56 = vcombine.low %v224_v44, %v228_v45  ;;  %v4366_v44 = vld [vmem:[#allocation8 + $0x164] ss:$16 sps:$4 sm:$0xff]   ;;  %v4349_v45 = vld [vmem:[#allocation8 + $0x108] ss:$16 sps:$4 sm:$0xff]  }
  0xce   :  { %1088 = vmatprep.subr.bf16.mxu1 %v3810_v13  ;;  %v4301_v13 = vld [vmem:[#allocation8 + $0x8] ss:$16 sps:$4 sm:$0xff]  }
  0xd0   :  { %1046 = vmatpush1.bf16.msra.mxu0 %v3807_v61  ;;  %v3871_v61 = vcombine.low %v247_v48, %v251_v22  ;;  %v4372_v48 = vld [vmem:[#allocation8 + $0x184] ss:$16 sps:$4 sm:$0xff]   ;;  %v4355_v22 = vld [vmem:[#allocation8 + $0x128] ss:$16 sps:$4 sm:$0xff]  }
  0xd1   :  { %1047 = vmatprep.subr.bf16.mxu0 %v3816_v0  ;;  %1089 = vmatpush1.bf16.msra.mxu1 %v3809_v18  ;;  %v252_v0 = vld [vmem:[#allocation5 + $0x3f8] sm:$0xff]  ;;  %v4315_v18 = vld [vmem:[#allocation8 + $0x4c] ss:$16 sps:$4 sm:$0xff]  }
  0xd2   :  { %1090 = vmatprep.subr.bf16.mxu1 %v3818_v21  ;;  %v3874_v7 = vcombine.high %v248_v63, %v252_v0  ;;  %v3873_v10 = vcombine.low %v248_v63, %v252_v0  ;;  %v4313_v21 = vld [vmem:[#allocation8 + $0x48] ss:$16 sps:$4 sm:$0xff]   ;;  %v4396_v63 = vld [vmem:[#allocation8 + $0x204] ss:$16 sps:$4 sm:$0xff]  }
  0xd3   :  { %v4379_v0 = vld [vmem:[#allocation8 + $0x1a8] ss:$16 sps:$4 sm:$0xff]  }
  0xd4   :  { %1048 = vmatpush1.bf16.msra.mxu0 %v3815_v6  ;;  %v4304_v6 = vld [vmem:[#allocation8 + $0x20] ss:$16 sps:$4 sm:$0xff]  }
  0xd5   :  { %1049 = vmatprep.subr.bf16.mxu0 %v3824_v9  ;;  %1091 = vmatpush1.bf16.msra.mxu1 %v3817_v27  ;;  %v4303_v9 = vld [vmem:[#allocation8 + $0xc] ss:$16 sps:$4 sm:$0xff]   ;;  %v4334_v27 = vld [vmem:[#allocation8 + $0xc0] ss:$16 sps:$4 sm:$0xff]  }
  0xd6   :  { %1092 = vmatprep.subr.bf16.mxu1 %v3826_v30  ;;  %v4333_v30 = vld [vmem:[#allocation8 + $0xac] ss:$16 sps:$4 sm:$0xff]  }
  0xd8   :  { %1050 = vmatpush1.bf16.msra.mxu0 %v3823_v14  ;;  %v4309_v14 = vld [vmem:[#allocation8 + $0x2c] ss:$16 sps:$4 sm:$0xff]  }
  0xd9   :  { %1051 = vmatprep.subr.bf16.mxu0 %v3832_v17  ;;  %1093 = vmatpush1.bf16.msra.mxu1 %v3825_v35  ;;  %v4307_v17 = vld [vmem:[#allocation8 + $0x28] ss:$16 sps:$4 sm:$0xff]   ;;  %v4346_v35 = vld [vmem:[#allocation8 + $0x100] ss:$16 sps:$4 sm:$0xff]  }
  0xda   :  { %1094 = vmatprep.subr.bf16.mxu1 %v3834_v38  ;;  %v4345_v38 = vld [vmem:[#allocation8 + $0xec] ss:$16 sps:$4 sm:$0xff]  }
  0xdc   :  { %1052 = vmatpush1.bf16.msra.mxu0 %v3831_v23  ;;  %v4321_v23 = vld [vmem:[#allocation8 + $0x6c] ss:$16 sps:$4 sm:$0xff]  }
  0xdd   :  { %1053 = vmatprep.subr.bf16.mxu0 %v3840_v26  ;;  %1095 = vmatpush1.bf16.msra.mxu1 %v3833_v43  ;;  %v4319_v26 = vld [vmem:[#allocation8 + $0x68] ss:$16 sps:$4 sm:$0xff]   ;;  %v4358_v43 = vld [vmem:[#allocation8 + $0x140] ss:$16 sps:$4 sm:$0xff]  }
  0xde   :  { %1096 = vmatprep.subr.bf16.mxu1 %v3842_v46  ;;  %v4357_v46 = vld [vmem:[#allocation8 + $0x12c] ss:$16 sps:$4 sm:$0xff]  }
  0xe0   :  { %1054 = vmatpush1.bf16.msra.mxu0 %v3839_v31  ;;  %v4340_v31 = vld [vmem:[#allocation8 + $0xe0] ss:$16 sps:$4 sm:$0xff]  }
  0xe1   :  { %1055 = vmatprep.subr.bf16.mxu0 %v3848_v34  ;;  %1097 = vmatpush1.bf16.msra.mxu1 %v3841_v50  ;;  %v4339_v34 = vld [vmem:[#allocation8 + $0xcc] ss:$16 sps:$4 sm:$0xff]   ;;  %v4370_v50 = vld [vmem:[#allocation8 + $0x180] ss:$16 sps:$4 sm:$0xff]  }
  0xe2   :  { %1098 = vmatprep.subr.bf16.mxu1 %v3850_v53  ;;  %v4369_v53 = vld [vmem:[#allocation8 + $0x16c] ss:$16 sps:$4 sm:$0xff]  }
  0xe4   :  { %1056 = vmatpush1.bf16.msra.mxu0 %v3847_v39  ;;  %v4352_v39 = vld [vmem:[#allocation8 + $0x120] ss:$16 sps:$4 sm:$0xff]  }
  0xe5   :  { %1057 = vmatprep.subr.bf16.mxu0 %v3856_v42  ;;  %1099 = vmatpush1.bf16.msra.mxu1 %v3849_v56  ;;  %v4351_v42 = vld [vmem:[#allocation8 + $0x10c] ss:$16 sps:$4 sm:$0xff]   ;;  %v4367_v56 = vld [vmem:[#allocation8 + $0x168] ss:$16 sps:$4 sm:$0xff]  }
  0xe6   :  { %1100 = vmatprep.subr.bf16.mxu1 %v3858_v59  ;;  %v4390_v59 = vld [vmem:[#allocation8 + $0x1e4] ss:$16 sps:$4 sm:$0xff]  }
  0xe8   :  { %1058 = vmatpush1.bf16.msra.mxu0 %v3855_v47  ;;  %v4364_v47 = vld [vmem:[#allocation8 + $0x160] ss:$16 sps:$4 sm:$0xff]  }
  0xe9   :  { %1059 = vmatprep.subr.bf16.mxu0 %v3864_v49  ;;  %1101 = vmatpush1.bf16.msra.mxu1 %v3857_v62  ;;  %v4363_v49 = vld [vmem:[#allocation8 + $0x14c] ss:$16 sps:$4 sm:$0xff]   ;;  %v4388_v62 = vld [vmem:[#allocation8 + $0x1e0] ss:$16 sps:$4 sm:$0xff]  }
  0xea   :  { %1102 = vmatprep.subr.bf16.mxu1 %v3866_v3  ;;  %v4385_v3 = vld [vmem:[#allocation8 + $0x1c8] ss:$16 sps:$4 sm:$0xff]  }
  0xec   :  { %1060 = vmatpush1.bf16.msra.mxu0 %v3863_v54  ;;  %v4376_v54 = vld [vmem:[#allocation8 + $0x1a0] ss:$16 sps:$4 sm:$0xff]  }
  0xed   :  { %1061 = vmatprep.subr.bf16.mxu0 %v3872_v55  ;;  %1103 = vmatpush1.bf16.msra.mxu1 %v3865_v5  ;;  %v4384_v55 = vld [vmem:[#allocation8 + $0x1c4] ss:$16 sps:$4 sm:$0xff]   ;;  %v4391_v5 = vld [vmem:[#allocation8 + $0x1e8] ss:$16 sps:$4 sm:$0xff]  }
  0xee   :  { %1104 = vmatprep.subr.bf16.mxu1 %v3874_v7  ;;  %v255_v7 = vlaneseq }
  0xf0   :  { %1062 = vmatpush1.bf16.msra.mxu0 %v3871_v61  ;;  %v4381_v61 = vld [vmem:[#allocation8 + $0x1ac] ss:$16 sps:$4 sm:$0xff]  }
  0xf1   :  { %2829 = vmatprep.subr.bf16.mxu0 %v4300_v60  ;;  %1105 = vmatpush1.bf16.msra.mxu1 %v3873_v10  ;;  %v4373_v60 = vld [vmem:[#allocation8 + $0x188] ss:$16 sps:$4 sm:$0xff]  }
  0xf2   :  { %3001 = vmatprep.subr.bf16.mxu1 %v4303_v9  ;;  %v5063_v10 = vld [vmem:[%s5191_s3] sm:$0xff] }
  0xf3   :  { %1064 = vmatmul.mubr.bf16.vlgmr.msra.gmra.mrb[4].mxu0 %v5047_v1 }
  0xf4   :  { %2830 = vmatpush1.bf16.msra.mxu0 %v4298_v2  ;;  %1107 = vmatmul.mubr.bf16.vlgmr.msra.gmra.mrb[4].mxu1 %v5047_v1  ;;  %v4327_v1 = vld [vmem:[#allocation8 + $0x8c] ss:$16 sps:$4 sm:$0xff]  }
  0xf5   :  { %2831 = vmatprep.subr.bf16.mxu0 %v4306_v4  ;;  %3002 = vmatpush1.bf16.msra.mxu1 %v4301_v13  ;;  %v4387_v2 = vld [vmem:[#allocation8 + $0x1cc] ss:$16 sps:$4 sm:$0xff]  }
  0xf6   :  { %3003 = vmatprep.subr.bf16.mxu1 %v4309_v14  ;;  %v4393_v4 = vld [vmem:[#allocation8 + $0x1ec] ss:$16 sps:$4 sm:$0xff]  }
  0xf8   :  { %2832 = vmatpush1.bf16.msra.mxu0 %v4304_v6  ;;  %v4399_v6 = vld [vmem:[#allocation8 + $0x20c] ss:$16 sps:$4 sm:$0xff]  }
  0xf9   :  { %2833 = vmatprep.subr.bf16.mxu0 %v4312_v8  ;;  %3004 = vmatpush1.bf16.msra.mxu1 %v4307_v17  ;;  %v5055_v8 = vshrl.u32 %v255_v7, 7  ;;  %v4411_v7 = vld [vmem:[#allocation8 + $0x24c] ss:$16 sps:$4 sm:$0xff]  }
  0xfa   :  { %3005 = vmatprep.subr.bf16.mxu1 %v4315_v18 }
  0xfb   :  { %v5058_v9 = vsub.s32 0, %v5055_v8 }
  0xfc   :  { %2834 = vmatpush1.bf16.msra.mxu0 %v4310_v11  ;;  %v5065_v11 = vld [vmem:[#allocation7] sm:$0xff] }
  0xfd   :  { %2835 = vmatprep.subr.bf16.mxu0 %v4318_v12  ;;  %3006 = vmatpush1.bf16.msra.mxu1 %v4313_v21  ;;  %v5068_v12 = vsub.s32 1, %v5055_v8  ;;  %v258_v14 = vrot.slane %v5065_v11, %v5058_v9 }
  0xfe   :  { %3007 = vmatprep.subr.bf16.mxu1 %v4321_v23 }
  0xff   :  { %v1166_v13 = vrot.slane %v5063_v10, %v5068_v12 }
 0x100   :  { %2836 = vmatpush1.bf16.msra.mxu0 %v4316_v15  ;;  %v1162_v15 = vrot.slane %v5063_v10, %v5058_v9 }
 0x101   :  { %2837 = vmatprep.subr.bf16.mxu0 %v4324_v16  ;;  %3008 = vmatpush1.bf16.msra.mxu1 %v4319_v26  ;;  %v262_v16 = vrot.slane %v5065_v11, %v5068_v12  ;;  %v1200_v18 = vpack.c.bf16 %v1166_v13, %v1166_v13 }
 0x102   :  { %3009 = vmatprep.subr.bf16.mxu1 %v4327_v1  ;;  %v1199_v21 = vpack.c.bf16 %v1162_v15, %v1162_v15 }
 0x104   :  { %2838 = vmatpush1.bf16.msra.mxu0 %v4322_v19 }
 0x105   :  { %2839 = vmatprep.subr.bf16.mxu0 %v4330_v20  ;;  %3010 = vmatpush1.bf16.msra.mxu1 %v4325_v29 }
 0x106   :  { %3011 = vmatprep.subr.bf16.mxu1 %v4333_v30  ;;  %v1215_v30 = vpack.i.b16 %v1200_v18, %v1200_v18  ;;  %v4409_v18 = vld [vmem:[#allocation8 + $0x248] ss:$16 sps:$4 sm:$0xff]  }
 0x108   :  { %2840 = vmatpush1.bf16.msra.mxu0 %v4328_v24 }
 0x109   :  { %2841 = vmatprep.subr.bf16.mxu0 %v4336_v25  ;;  %3012 = vmatpush1.bf16.msra.mxu1 %v4331_v33  ;;  %v1208_v33 = vpack.i.b16 %v1199_v21, %v1199_v21  ;;  %v4417_v21 = vld [vmem:[#allocation8 + $0x26c] ss:$16 sps:$4 sm:$0xff]  }
 0x10a   :  { %3013 = vmatprep.subr.bf16.mxu1 %v4339_v34 }
 0x10c   :  { %2842 = vmatpush1.bf16.msra.mxu0 %v4334_v27  ;;  %v5079_v27 = vsub.s32 2, %v5055_v8 }
 0x10d   :  { %2843 = vmatprep.subr.bf16.mxu0 %v4342_v28  ;;  %3014 = vmatpush1.bf16.msra.mxu1 %v4337_v37 }
 0x10e   :  { %3015 = vmatprep.subr.bf16.mxu1 %v4345_v38  ;;  %v266_v38 = vrot.slane %v5065_v11, %v5079_v27 }
 0x110   :  { %2844 = vmatpush1.bf16.msra.mxu0 %v4340_v31  ;;  %v5082_v31 = vsub.s32 3, %v5055_v8 }
 0x111   :  { %2845 = vmatprep.subr.bf16.mxu0 %v4348_v32  ;;  %3016 = vmatpush1.bf16.msra.mxu1 %v4343_v41  ;;  %v1220_v41 = vrot.slane %v1215_v30, %v5058_v9  ;;  %v4426_v30 = vld [vmem:[#allocation8 + $0x2a4] ss:$16 sps:$4 sm:$0xff]  }
 0x112   :  { %3017 = vmatprep.subr.bf16.mxu1 %v4351_v42  ;;  %v270_v42 = vrot.slane %v5065_v11, %v5082_v31 }
 0x114   :  { %2846 = vmatpush1.bf16.msra.mxu0 %v4346_v35  ;;  %v1174_v35 = vrot.slane %v5063_v10, %v5082_v31 }
 0x115   :  { %2847 = vmatprep.subr.bf16.mxu0 %v4354_v36  ;;  %3018 = vmatpush1.bf16.msra.mxu1 %v4349_v45 }
 0x116   :  { %3019 = vmatprep.subr.bf16.mxu1 %v4357_v46 }
 0x118   :  { %2848 = vmatpush1.bf16.msra.mxu0 %v4352_v39 }
 0x119   :  { %2849 = vmatprep.subr.bf16.mxu0 %v4360_v40  ;;  %3020 = vmatpush1.bf16.msra.mxu1 %v4355_v22 }
 0x11a   :  { %3021 = vmatprep.subr.bf16.mxu1 %v4363_v49 }
 0x11c   :  { %2850 = vmatpush1.bf16.msra.mxu0 %v4358_v43 }
 0x11d   :  { %2851 = vmatprep.subr.bf16.mxu0 %v4366_v44  ;;  %3022 = vmatpush1.bf16.msra.mxu1 %v4361_v52  ;;  %v1213_v44 = vrot.slane %v1208_v33, %v5058_v9  ;;  %v4402_v52 = vld [vmem:[#allocation8 + $0x224] ss:$16 sps:$4 sm:$0xff]   ;;  %v4424_v33 = vld [vmem:[#allocation8 + $0x2a0] ss:$16 sps:$4 sm:$0xff]  }
 0x11e   :  { %3023 = vmatprep.subr.bf16.mxu1 %v4369_v53 }
 0x120   :  { %2852 = vmatpush1.bf16.msra.mxu0 %v4364_v47  ;;  %v1202_v47 = vpack.c.bf16 %v1174_v35, %v1174_v35  ;;  %v4432_v35 = vld [vmem:[#allocation8 + $0x2c4] ss:$16 sps:$4 sm:$0xff]  }
 0x121   :  { %2853 = vmatprep.subr.bf16.mxu0 %v4372_v48  ;;  %3024 = vmatpush1.bf16.msra.mxu1 %v4367_v56  ;;  %v4394_v48 = vld [vmem:[#allocation8 + $0x200] ss:$16 sps:$4 sm:$0xff]   ;;  %v4405_v56 = vld [vmem:[#allocation8 + $0x22c] ss:$16 sps:$4 sm:$0xff]  }
 0x122   :  { %3025 = vmatprep.subr.bf16.mxu1 %v4375_v57 }
 0x124   :  { %2854 = vmatpush1.bf16.msra.mxu0 %v4370_v50 }
 0x125   :  { %2855 = vmatprep.subr.bf16.mxu0 %v4378_v51  ;;  %3026 = vmatpush1.bf16.msra.mxu1 %v4373_v60  ;;  %v4397_v51 = vld [vmem:[#allocation8 + $0x208] ss:$16 sps:$4 sm:$0xff]  }
 0x126   :  { %3027 = vmatprep.subr.bf16.mxu1 %v4381_v61 }
 0x128   :  { %2856 = vmatpush1.bf16.msra.mxu0 %v4376_v54 }
 0x129   :  { %2857 = vmatprep.subr.bf16.mxu0 %v4384_v55  ;;  %3028 = vmatpush1.bf16.msra.mxu1 %v4379_v0 }
 0x12a   :  { %3029 = vmatprep.subr.bf16.mxu1 %v4387_v2  ;;  %v4400_v2 = vld [vmem:[#allocation8 + $0x220] ss:$16 sps:$4 sm:$0xff]  }
 0x12c   :  { %2858 = vmatpush1.bf16.msra.mxu0 %v4382_v58 }
 0x12d   :  { %2859 = vmatprep.subr.bf16.mxu0 %v4390_v59  ;;  %3030 = vmatpush1.bf16.msra.mxu1 %v4385_v3  ;;  %v4403_v3 = vld [vmem:[#allocation8 + $0x228] ss:$16 sps:$4 sm:$0xff]  }
 0x12e   :  { %3031 = vmatprep.subr.bf16.mxu1 %v4393_v4 }
 0x130   :  { %2860 = vmatpush1.bf16.msra.mxu0 %v4388_v62  ;;  %v1229_v62 = vpack.i.b16 %v1202_v47, %v1202_v47  ;;  %v4450_v47 = vld [vmem:[#allocation8 + $0x324] ss:$16 sps:$4 sm:$0xff]  }
 0x131   :  { %2872 = vmatprep.subr.bf16.mxu0 %v4396_v63  ;;  %3032 = vmatpush1.bf16.msra.mxu1 %v4391_v5 }
 0x132   :  { %3044 = vmatprep.subr.bf16.mxu1 %v4399_v6  ;;  %v4408_v6 = vld [vmem:[#allocation8 + $0x244] ss:$16 sps:$4 sm:$0xff]   ;;  %v1234_v15 = vrot.slane %v1229_v62, %v5058_v9  ;;  %v4466_v62 = vld [vmem:[#allocation8 + $0x380] ss:$16 sps:$4 sm:$0xff]  }
 0x186   :  { %v979_v17 = vpop.f32.mrb[0].mxu0  ;;  %v1022_v46 = vpop.f32.mrb[0].mxu1 }
 0x187   :  { %v980_v19 = vadd.f32 %v979_v17, %v258_v14  ;;  %v981_v20 = vpop.f32.mrb[1].mxu0  ;;  %v1023_v22 = vadd.f32 %v1022_v46, %v266_v38  ;;  %v1024_v49 = vpop.f32.mrb[1].mxu1  ;;  %v4406_v17 = vld [vmem:[#allocation8 + $0x240] ss:$16 sps:$4 sm:$0xff]   ;;  %v4445_v46 = vld [vmem:[#allocation8 + $0x308] ss:$16 sps:$4 sm:$0xff]  }
 0x188   :  { %v982_v23 = vadd.f32 %v981_v20, %v262_v16  ;;  %v983_v24 = vpop.f32.mrb[2].mxu0  ;;  %v1025_v53 = vadd.f32 %v1024_v49, %v270_v42  ;;  %v1026_v54 = vpop.f32.mrb[2].mxu1  ;;  %v4414_v20 = vld [vmem:[#allocation8 + $0x264] ss:$16 sps:$4 sm:$0xff]   ;;  %v4451_v49 = vld [vmem:[#allocation8 + $0x328] ss:$16 sps:$4 sm:$0xff]  }
 0x189   :  { %v1117_v25 = vmul.f32 0.01, %v980_v19  ;;  %v984_v26 = vadd.f32 %v983_v24, %v258_v14  ;;  %v985_v1 = vpop.f32.mrb[3].mxu0  ;;  %v1119_v57 = vmul.f32 0.01, %v1023_v22  ;;  %v1027_v58 = vadd.f32 %v1026_v54, %v266_v38  ;;  %v1028_v59 = vpop.f32.mrb[3].mxu1 }
 0x18a   :  { %v1118_v28 = vmul.f32 0.01, %v982_v23  ;;  %v986_v29 = vadd.f32 %v985_v1, %v262_v16  ;;  %v1120_v60 = vmul.f32 0.01, %v1025_v53  ;;  %v1029_v61 = vadd.f32 %v1028_v59, %v270_v42  ;;  %v4412_v24 = vld [vmem:[#allocation8 + $0x260] ss:$16 sps:$4 sm:$0xff]  }
 0x18b   :  { %v1125_v32 = vmul.f32 0.01, %v984_v26  ;;  %v1133_v36 = vmax.f32 %v980_v19, %v1117_v25  ;;  %v1135_v63 = vmax.f32 %v1023_v22, %v1119_v57  ;;  %v1127_v0 = vmul.f32 0.01, %v1027_v58  ;;  %v4415_v25 = vld [vmem:[#allocation8 + $0x268] ss:$16 sps:$4 sm:$0xff]  }
 0x18c   :  { %v1126_v34 = vmul.f32 0.01, %v986_v29  ;;  %v1134_v39 = vmax.f32 %v982_v23, %v1118_v28  ;;  %v1136_v4 = vmax.f32 %v1025_v53, %v1120_v60  ;;  %v1128_v5 = vmul.f32 0.01, %v1029_v61  ;;  %v4423_v1 = vld [vmem:[#allocation8 + $0x28c] ss:$16 sps:$4 sm:$0xff]  }
 0x18d   :  { %v1141_v37 = vmax.f32 %v984_v26, %v1125_v32  ;;  %v1143_v13 = vmax.f32 %v1027_v58, %v1127_v0  ;;  %v4420_v26 = vld [vmem:[#allocation8 + $0x284] ss:$16 sps:$4 sm:$0xff]   ;;  %v4418_v28 = vld [vmem:[#allocation8 + $0x280] ss:$16 sps:$4 sm:$0xff]   ;;  %v4429_v32 = vld [vmem:[#allocation8 + $0x2ac] ss:$16 sps:$4 sm:$0xff]   ;;  %v1170_v0 = vrot.slane %v5063_v10, %v5079_v27 }
 0x18e   :  { %v1142_v40 = vmax.f32 %v986_v29, %v1126_v34  ;;  %v1144_v14 = vmax.f32 %v1029_v61, %v1128_v5  ;;  %v4421_v29 = vld [vmem:[#allocation8 + $0x288] ss:$16 sps:$4 sm:$0xff]   ;;  %v4448_v22 = vld [vmem:[#allocation8 + $0x320] ss:$16 sps:$4 sm:$0xff]   ;;  %v4462_v54 = vld [vmem:[#allocation8 + $0x364] ss:$16 sps:$4 sm:$0xff]  }
 0x18f   :  { %v1149_v43 = vpack.c.bf16 %v1141_v37, %v1133_v36  ;;  %v5093_v16 = vpack.c.bf16 %v1143_v13, %v1135_v63  ;;  %v4427_v34 = vld [vmem:[#allocation8 + $0x2a8] ss:$16 sps:$4 sm:$0xff]   ;;  %v4435_v36 = vld [vmem:[#allocation8 + $0x2cc] ss:$16 sps:$4 sm:$0xff]   ;;  %v4430_v37 = vld [vmem:[#allocation8 + $0x2c0] ss:$16 sps:$4 sm:$0xff]  }
 0x190   :  { %v1150_v45 = vpack.c.bf16 %v1142_v40, %v1134_v39  ;;  %v1152_v19 = vpack.c.bf16 %v1144_v14, %v1136_v4  ;;  %v4433_v38 = vld [vmem:[#allocation8 + $0x2c8] ss:$16 sps:$4 sm:$0xff]   ;;  %v4438_v39 = vld [vmem:[#allocation8 + $0x2e4] ss:$16 sps:$4 sm:$0xff]   ;;  %v4441_v40 = vld [vmem:[#allocation8 + $0x2ec] ss:$16 sps:$4 sm:$0xff]  }
 0x191   :  { %v1263_v55 = vadd.bf16 %v1213_v44, %v1149_v43  ;;  %v4439_v42 = vld [vmem:[#allocation8 + $0x2e8] ss:$16 sps:$4 sm:$0xff]   ;;  %v4444_v43 = vld [vmem:[#allocation8 + $0x304] ss:$16 sps:$4 sm:$0xff]   ;;  %v4447_v44 = vld [vmem:[#allocation8 + $0x30c] ss:$16 sps:$4 sm:$0xff]  }
 0x192   :  { %v1264_v50 = vadd.bf16 %v1220_v41, %v1150_v45  ;;  %v1266_v23 = vadd.bf16 %v1234_v15, %v1152_v19  ;;  %v4436_v41 = vld [vmem:[#allocation8 + $0x2e0] ss:$16 sps:$4 sm:$0xff]   ;;  %v4457_v53 = vld [vmem:[#allocation8 + $0x348] ss:$16 sps:$4 sm:$0xff]   ;;  %v4468_v58 = vld [vmem:[#allocation8 + $0x384] ss:$16 sps:$4 sm:$0xff]   ;;  %v1201_v15 = vpack.c.bf16 %v1170_v0, %v1170_v0 }
 0x193   :  { %v4442_v45 = vld [vmem:[#allocation8 + $0x300] ss:$16 sps:$4 sm:$0xff]   ;;  %v4463_v57 = vld [vmem:[#allocation8 + $0x368] ss:$16 sps:$4 sm:$0xff]   ;;  %v4471_v59 = vld [vmem:[#allocation8 + $0x38c] ss:$16 sps:$4 sm:$0xff]  }
 0x194   :  { %2861 = vmatprep.mubr.bf16.mxu0 %v1264_v50  ;;  %3033 = vmatprep.mubr.bf16.mxu1 %v1264_v50  ;;  %v4456_v50 = vld [vmem:[#allocation8 + $0x344] ss:$16 sps:$4 sm:$0xff]   ;;  %v273_v60 = vsub.s32 4, %v5055_v8  ;;  %v277_v61 = vsub.s32 5, %v5055_v8  ;;  %v4469_v63 = vld [vmem:[#allocation8 + $0x388] ss:$16 sps:$4 sm:$0xff]  }
 0x195   :  { %2862 = vmatmul.mubr.bf16.vlgmr.msra.gmra.mrb[8].mxu0 %v1263_v55  ;;  %3034 = vmatmul.mubr.bf16.vlgmr.msra.gmra.mrb[8].mxu1 %v1263_v55  ;;  %v4465_v55 = vld [vmem:[#allocation8 + $0x36c] ss:$16 sps:$4 sm:$0xff]   ;;  %v4475_v13 = vld [vmem:[#allocation8 + $0x3a8] ss:$16 sps:$4 sm:$0xff]  }
 0x196   :  { %2873 = vmatpush1.bf16.msra.mxu0 %v4394_v48  ;;  %3045 = vmatpush1.bf16.msra.mxu1 %v4397_v51  ;;  %v4453_v48 = vld [vmem:[#allocation8 + $0x32c] ss:$16 sps:$4 sm:$0xff]   ;;  %v274_v4 = vrot.slane %v5065_v11, %v273_v60  ;;  %v278_v5 = vrot.slane %v5065_v11, %v277_v61 }
 0x197   :  { %2874 = vmatprep.subr.bf16.mxu0 %v4402_v52  ;;  %3046 = vmatprep.subr.bf16.mxu1 %v4405_v56  ;;  %v4459_v51 = vld [vmem:[#allocation8 + $0x34c] ss:$16 sps:$4 sm:$0xff]   ;;  %v4454_v52 = vld [vmem:[#allocation8 + $0x340] ss:$16 sps:$4 sm:$0xff]  }
 0x198   :  { %2904 = vmatprep.mubr.bf16.mxu0 %v1266_v23  ;;  %3076 = vmatprep.mubr.bf16.mxu1 %v1266_v23  ;;  %v4460_v56 = vld [vmem:[#allocation8 + $0x360] ss:$16 sps:$4 sm:$0xff]  }
 0x19a   :  { %2875 = vmatpush1.bf16.msra.mxu0 %v4400_v2  ;;  %3047 = vmatpush1.bf16.msra.mxu1 %v4403_v3  ;;  %v4474_v2 = vld [vmem:[#allocation8 + $0x3a4] ss:$16 sps:$4 sm:$0xff]   ;;  %v4477_v3 = vld [vmem:[#allocation8 + $0x3ac] ss:$16 sps:$4 sm:$0xff]  }
 0x19b   :  { %2876 = vmatprep.subr.bf16.mxu0 %v4408_v6  ;;  %3048 = vmatprep.subr.bf16.mxu1 %v4411_v7  ;;  %v1182_v6 = vrot.slane %v5063_v10, %v277_v61  ;;  %v4472_v7 = vld [vmem:[#allocation8 + $0x3a0] ss:$16 sps:$4 sm:$0xff]  }
 0x19d   :  { %v1204_v23 = vpack.c.bf16 %v1182_v6, %v1182_v6 }
 0x19e   :  { %2877 = vmatpush1.bf16.msra.mxu0 %v4406_v17  ;;  %3049 = vmatpush1.bf16.msra.mxu1 %v4409_v18  ;;  %v4480_v17 = vld [vmem:[#allocation8 + $0x3c4] ss:$16 sps:$4 sm:$0xff]   ;;  %v4483_v18 = vld [vmem:[#allocation8 + $0x3cc] ss:$16 sps:$4 sm:$0xff]  }
 0x19f   :  { %2878 = vmatprep.subr.bf16.mxu0 %v4414_v20  ;;  %3050 = vmatprep.subr.bf16.mxu1 %v4417_v21 }
 0x1a2   :  { %2879 = vmatpush1.bf16.msra.mxu0 %v4412_v24  ;;  %3051 = vmatpush1.bf16.msra.mxu1 %v4415_v25  ;;  %v4478_v25 = vld [vmem:[#allocation8 + $0x3c0] ss:$16 sps:$4 sm:$0xff]  }
 0x1a3   :  { %2880 = vmatprep.subr.bf16.mxu0 %v4420_v26  ;;  %3052 = vmatprep.subr.bf16.mxu1 %v4423_v1 }
 0x1a6   :  { %2881 = vmatpush1.bf16.msra.mxu0 %v4418_v28  ;;  %3053 = vmatpush1.bf16.msra.mxu1 %v4421_v29  ;;  %v281_v29 = vsub.s32 6, %v5055_v8 }
 0x1a7   :  { %2882 = vmatprep.subr.bf16.mxu0 %v4426_v30  ;;  %3054 = vmatprep.subr.bf16.mxu1 %v4429_v32  ;;  %v4481_v30 = vld [vmem:[#allocation8 + $0x3c8] ss:$16 sps:$4 sm:$0xff]  }
 0x1aa   :  { %2883 = vmatpush1.bf16.msra.mxu0 %v4424_v33  ;;  %3055 = vmatpush1.bf16.msra.mxu1 %v4427_v34  ;;  %v285_v34 = vsub.s32 7, %v5055_v8 }
 0x1ab   :  { %2884 = vmatprep.subr.bf16.mxu0 %v4432_v35  ;;  %3056 = vmatprep.subr.bf16.mxu1 %v4435_v36  ;;  %v1222_v35 = vpack.i.b16 %v1201_v15, %v1201_v15  ;;  %v4486_v36 = vld [vmem:[#allocation8 + $0x3e4] ss:$16 sps:$4 sm:$0xff]   ;;  %v4499_v15 = vld [vmem:[#allocation8 + $0x428] ss:$16 sps:$4 sm:$0xff]  }
 0x1ae   :  { %2885 = vmatpush1.bf16.msra.mxu0 %v4430_v37  ;;  %3057 = vmatpush1.bf16.msra.mxu1 %v4433_v38  ;;  %v4489_v37 = vld [vmem:[#allocation8 + $0x3ec] ss:$16 sps:$4 sm:$0xff]  }
 0x1af   :  { %2886 = vmatprep.subr.bf16.mxu0 %v4438_v39  ;;  %3058 = vmatprep.subr.bf16.mxu1 %v4441_v40 }
 0x1b2   :  { %2887 = vmatpush1.bf16.msra.mxu0 %v4436_v41  ;;  %3059 = vmatpush1.bf16.msra.mxu1 %v4439_v42  ;;  %v1243_v41 = vpack.i.b16 %v1204_v23, %v1204_v23 }
 0x1b3   :  { %2888 = vmatprep.subr.bf16.mxu0 %v4444_v43  ;;  %3060 = vmatprep.subr.bf16.mxu1 %v4447_v44  ;;  %v282_v44 = vrot.slane %v5065_v11, %v281_v29 }
 0x1b6   :  { %2889 = vmatpush1.bf16.msra.mxu0 %v4442_v45  ;;  %3061 = vmatpush1.bf16.msra.mxu1 %v4445_v46  ;;  %v4484_v45 = vld [vmem:[#allocation8 + $0x3e0] ss:$16 sps:$4 sm:$0xff]   ;;  %v4487_v46 = vld [vmem:[#allocation8 + $0x3e8] ss:$16 sps:$4 sm:$0xff]  }
 0x1b7   :  { %2890 = vmatprep.subr.bf16.mxu0 %v4450_v47  ;;  %3062 = vmatprep.subr.bf16.mxu1 %v4453_v48  ;;  %v286_v48 = vrot.slane %v5065_v11, %v285_v34 }
 0x1ba   :  { %2891 = vmatpush1.bf16.msra.mxu0 %v4448_v22  ;;  %3063 = vmatpush1.bf16.msra.mxu1 %v4451_v49  ;;  %v1227_v22 = vrot.slane %v1222_v35, %v5058_v9  ;;  %v4492_v49 = vld [vmem:[#allocation8 + $0x404] ss:$16 sps:$4 sm:$0xff]   ;;  %v4519_v35 = vld [vmem:[#allocation8 + $0x48c] ss:$16 sps:$4 sm:$0xff]  }
 0x1bb   :  { %2892 = vmatprep.subr.bf16.mxu0 %v4456_v50  ;;  %3064 = vmatprep.subr.bf16.mxu1 %v4459_v51  ;;  %v4495_v50 = vld [vmem:[#allocation8 + $0x40c] ss:$16 sps:$4 sm:$0xff]  }
 0x1be   :  { %2893 = vmatpush1.bf16.msra.mxu0 %v4454_v52  ;;  %3065 = vmatpush1.bf16.msra.mxu1 %v4457_v53  ;;  %v1248_v53 = vrot.slane %v1243_v41, %v5058_v9  ;;  %v4523_v41 = vld [vmem:[#allocation8 + $0x4a8] ss:$16 sps:$4 sm:$0xff]  }
 0x1bf   :  { %2894 = vmatprep.subr.bf16.mxu0 %v4462_v54  ;;  %3066 = vmatprep.subr.bf16.mxu1 %v4465_v55  ;;  %v4490_v55 = vld [vmem:[#allocation8 + $0x400] ss:$16 sps:$4 sm:$0xff]  }
 0x1c2   :  { %2895 = vmatpush1.bf16.msra.mxu0 %v4460_v56  ;;  %3067 = vmatpush1.bf16.msra.mxu1 %v4463_v57 }
 0x1c3   :  { %2896 = vmatprep.subr.bf16.mxu0 %v4468_v58  ;;  %3068 = vmatprep.subr.bf16.mxu1 %v4471_v59  ;;  %v4493_v58 = vld [vmem:[#allocation8 + $0x408] ss:$16 sps:$4 sm:$0xff]   ;;  %v4498_v59 = vld [vmem:[#allocation8 + $0x424] ss:$16 sps:$4 sm:$0xff]  }
 0x1c6   :  { %2897 = vmatpush1.bf16.msra.mxu0 %v4466_v62  ;;  %3069 = vmatpush1.bf16.msra.mxu1 %v4469_v63  ;;  %v1065_v14 = vpop.f32.mrb[4].mxu0  ;;  %v1265_v62 = vadd.bf16 %v1227_v22, %v5093_v16  ;;  %v4501_v63 = vld [vmem:[#allocation8 + $0x42c] ss:$16 sps:$4 sm:$0xff]   ;;  %v4504_v16 = vld [vmem:[#allocation8 + $0x444] ss:$16 sps:$4 sm:$0xff]  }
 0x1c7   :  { %2898 = vmatprep.subr.bf16.mxu0 %v4474_v2  ;;  %3070 = vmatprep.subr.bf16.mxu1 %v4477_v3  ;;  %v1066_v19 = vadd.f32 %v1065_v14, %v274_v4  ;;  %v1067_v20 = vpop.f32.mrb[5].mxu0  ;;  %v1108_v54 = vpop.f32.mrb[4].mxu1  ;;  %v4496_v14 = vld [vmem:[#allocation8 + $0x420] ss:$16 sps:$4 sm:$0xff]   ;;  %v4535_v22 = vld [vmem:[#allocation8 + $0x4e8] ss:$16 sps:$4 sm:$0xff]  }
 0x1c8   :  { %v1068_v21 = vadd.f32 %v1067_v20, %v278_v5  ;;  %v1069_v24 = vpop.f32.mrb[6].mxu0  ;;  %v1109_v56 = vadd.f32 %v1108_v54, %v282_v44  ;;  %v1110_v57 = vpop.f32.mrb[5].mxu1  ;;  %v4546_v54 = vld [vmem:[#allocation8 + $0x524] ss:$16 sps:$4 sm:$0xff]  }
 0x1c9   :  { %v1121_v26 = vmul.f32 0.01, %v1066_v19  ;;  %v1070_v1 = vadd.f32 %v1069_v24, %v274_v4  ;;  %v1071_v28 = vpop.f32.mrb[7].mxu0  ;;  %v1111_v11 = vadd.f32 %v1110_v57, %v286_v48  ;;  %v1112_v61 = vpop.f32.mrb[6].mxu1  ;;  %v4502_v24 = vld [vmem:[#allocation8 + $0x440] ss:$16 sps:$4 sm:$0xff]  }
 0x1ca   :  { %2899 = vmatpush1.bf16.msra.mxu0 %v4472_v7  ;;  %3071 = vmatpush1.bf16.msra.mxu1 %v4475_v13  ;;  %v1122_v32 = vmul.f32 0.01, %v1068_v21  ;;  %v1072_v33 = vadd.f32 %v1071_v28, %v278_v5  ;;  %v1123_v0 = vmul.f32 0.01, %v1109_v56  ;;  %v1113_v2 = vadd.f32 %v1112_v61, %v282_v44  ;;  %v1114_v3 = vpop.f32.mrb[7].mxu1 }
 0x1cb   :  { %2900 = vmatprep.subr.bf16.mxu0 %v4480_v17  ;;  %3072 = vmatprep.subr.bf16.mxu1 %v4483_v18  ;;  %v1137_v38 = vmax.f32 %v1066_v19, %v1121_v26  ;;  %v1129_v39 = vmul.f32 0.01, %v1070_v1  ;;  %v1124_v5 = vmul.f32 0.01, %v1111_v11  ;;  %v1115_v6 = vadd.f32 %v1114_v3, %v286_v48  ;;  %v4507_v19 = vld [vmem:[#allocation8 + $0x44c] ss:$16 sps:$4 sm:$0xff]  }
 0x1cc   :  { %v1138_v40 = vmax.f32 %v1068_v21, %v1122_v32  ;;  %v1130_v42 = vmul.f32 0.01, %v1072_v33  ;;  %v1139_v7 = vmax.f32 %v1109_v56, %v1123_v0  ;;  %v1131_v13 = vmul.f32 0.01, %v1113_v2  ;;  %v4513_v28 = vld [vmem:[#allocation8 + $0x46c] ss:$16 sps:$4 sm:$0xff]  }
 0x1cd   :  { %v1145_v43 = vmax.f32 %v1070_v1, %v1129_v39  ;;  %v1140_v17 = vmax.f32 %v1111_v11, %v1124_v5  ;;  %v1132_v18 = vmul.f32 0.01, %v1115_v6  ;;  %v4510_v1 = vld [vmem:[#allocation8 + $0x464] ss:$16 sps:$4 sm:$0xff]   ;;  %v4511_v32 = vld [vmem:[#allocation8 + $0x468] ss:$16 sps:$4 sm:$0xff]  }
 0x1ce   :  { %2901 = vmatpush1.bf16.msra.mxu0 %v4478_v25  ;;  %3073 = vmatpush1.bf16.msra.mxu1 %v4481_v30  ;;  %v1146_v47 = vmax.f32 %v1072_v33, %v1130_v42  ;;  %v1147_v20 = vmax.f32 %v1113_v2, %v1131_v13  ;;  %v4505_v25 = vld [vmem:[#allocation8 + $0x448] ss:$16 sps:$4 sm:$0xff]   ;;  %v4508_v30 = vld [vmem:[#allocation8 + $0x460] ss:$16 sps:$4 sm:$0xff]   ;;  %v4516_v33 = vld [vmem:[#allocation8 + $0x484] ss:$16 sps:$4 sm:$0xff]  }
 0x1cf   :  { %2902 = vmatprep.subr.bf16.mxu0 %v4486_v36  ;;  %3074 = vmatprep.subr.bf16.mxu1 %v4489_v37  ;;  %v5113_v51 = vpack.c.bf16 %v1145_v43, %v1137_v38  ;;  %v1148_v21 = vmax.f32 %v1115_v6, %v1132_v18  ;;  %v4514_v36 = vld [vmem:[#allocation8 + $0x480] ss:$16 sps:$4 sm:$0xff]   ;;  %v4517_v37 = vld [vmem:[#allocation8 + $0x488] ss:$16 sps:$4 sm:$0xff]   ;;  %v4522_v38 = vld [vmem:[#allocation8 + $0x4a4] ss:$16 sps:$4 sm:$0xff]  }
 0x1d0   :  { %v1154_v52 = vpack.c.bf16 %v1146_v47, %v1138_v40  ;;  %v5117_v23 = vpack.c.bf16 %v1147_v20, %v1139_v7  ;;  %v4525_v39 = vld [vmem:[#allocation8 + $0x4ac] ss:$16 sps:$4 sm:$0xff]   ;;  %v4520_v40 = vld [vmem:[#allocation8 + $0x4a0] ss:$16 sps:$4 sm:$0xff]   ;;  %v4528_v42 = vld [vmem:[#allocation8 + $0x4c4] ss:$16 sps:$4 sm:$0xff]   ;;  %v1178_v7 = vrot.slane %v5063_v10, %v273_v60 }
 0x1d1   :  { %v5119_v26 = vpack.c.bf16 %v1148_v21, %v1140_v17  ;;  %v4531_v43 = vld [vmem:[#allocation8 + $0x4cc] ss:$16 sps:$4 sm:$0xff]   ;;  %v4526_v44 = vld [vmem:[#allocation8 + $0x4c0] ss:$16 sps:$4 sm:$0xff]   ;;  %v4547_v57 = vld [vmem:[#allocation8 + $0x528] ss:$16 sps:$4 sm:$0xff]  }
 0x1d2   :  { %2903 = vmatpush1.bf16.msra.mxu0 %v4484_v45  ;;  %3075 = vmatpush1.bf16.msra.mxu1 %v4487_v46  ;;  %v1268_v4 = vadd.bf16 %v1248_v53, %v1154_v52  ;;  %v4529_v45 = vld [vmem:[#allocation8 + $0x4c8] ss:$16 sps:$4 sm:$0xff]   ;;  %v4534_v46 = vld [vmem:[#allocation8 + $0x4e4] ss:$16 sps:$4 sm:$0xff]   ;;  %v4537_v47 = vld [vmem:[#allocation8 + $0x4ec] ss:$16 sps:$4 sm:$0xff]  }
 0x1d3   :  { %2915 = vmatprep.subr.bf16.mxu0 %v4492_v49  ;;  %3087 = vmatprep.subr.bf16.mxu1 %v4495_v50  ;;  %v4532_v48 = vld [vmem:[#allocation8 + $0x4e0] ss:$16 sps:$4 sm:$0xff]   ;;  %v4540_v49 = vld [vmem:[#allocation8 + $0x504] ss:$16 sps:$4 sm:$0xff]   ;;  %v4543_v50 = vld [vmem:[#allocation8 + $0x50c] ss:$16 sps:$4 sm:$0xff]  }
 0x1d4   :  { %v4538_v52 = vld [vmem:[#allocation8 + $0x500] ss:$16 sps:$4 sm:$0xff]   ;;  %v4541_v53 = vld [vmem:[#allocation8 + $0x508] ss:$16 sps:$4 sm:$0xff]   ;;  %v4564_v3 = vld [vmem:[#allocation8 + $0x584] ss:$16 sps:$4 sm:$0xff]  }
 0x1d5   :  { %2905 = vmatmul.mubr.bf16.vlgmr.msra.gmra.mrb[8].mxu0 %v1265_v62  ;;  %3077 = vmatmul.mubr.bf16.vlgmr.msra.gmra.mrb[8].mxu1 %v1265_v62  ;;  %v4544_v56 = vld [vmem:[#allocation8 + $0x520] ss:$16 sps:$4 sm:$0xff]   ;;  %v4553_v61 = vld [vmem:[#allocation8 + $0x548] ss:$16 sps:$4 sm:$0xff]   ;;  %v4558_v62 = vld [vmem:[#allocation8 + $0x564] ss:$16 sps:$4 sm:$0xff]  }
 0x1d6   :  { %2916 = vmatpush1.bf16.msra.mxu0 %v4490_v55  ;;  %3088 = vmatpush1.bf16.msra.mxu1 %v4493_v58  ;;  %v4549_v55 = vld [vmem:[#allocation8 + $0x52c] ss:$16 sps:$4 sm:$0xff]   ;;  %v4552_v58 = vld [vmem:[#allocation8 + $0x544] ss:$16 sps:$4 sm:$0xff]   ;;  %v4550_v11 = vld [vmem:[#allocation8 + $0x540] ss:$16 sps:$4 sm:$0xff]  }
 0x1d7   :  { %2917 = vmatprep.subr.bf16.mxu0 %v4498_v59  ;;  %3089 = vmatprep.subr.bf16.mxu1 %v4501_v63  ;;  %v4555_v59 = vld [vmem:[#allocation8 + $0x54c] ss:$16 sps:$4 sm:$0xff]   ;;  %v4556_v0 = vld [vmem:[#allocation8 + $0x560] ss:$16 sps:$4 sm:$0xff]   ;;  %v4559_v2 = vld [vmem:[#allocation8 + $0x568] ss:$16 sps:$4 sm:$0xff]  }
 0x1d8   :  { %2947 = vmatprep.mubr.bf16.mxu0 %v1268_v4  ;;  %3119 = vmatprep.mubr.bf16.mxu1 %v1268_v4  ;;  %v4561_v63 = vld [vmem:[#allocation8 + $0x56c] ss:$16 sps:$4 sm:$0xff]   ;;  %v4562_v5 = vld [vmem:[#allocation8 + $0x580] ss:$16 sps:$4 sm:$0xff]   ;;  %v4565_v6 = vld [vmem:[#allocation8 + $0x588] ss:$16 sps:$4 sm:$0xff]  }
 0x1d9   :  { %v4567_v4 = vld [vmem:[#allocation8 + $0x58c] ss:$16 sps:$4 sm:$0xff]   ;;  %v4570_v13 = vld [vmem:[#allocation8 + $0x5a4] ss:$16 sps:$4 sm:$0xff]   ;;  %v4568_v17 = vld [vmem:[#allocation8 + $0x5a0] ss:$16 sps:$4 sm:$0xff]  }
 0x1da   :  { %2918 = vmatpush1.bf16.msra.mxu0 %v4496_v14  ;;  %3090 = vmatpush1.bf16.msra.mxu1 %v4499_v15  ;;  %v4573_v14 = vld [vmem:[#allocation8 + $0x5ac] ss:$16 sps:$4 sm:$0xff]   ;;  %v1190_v15 = vrot.slane %v5063_v10, %v285_v34  ;;  %v4571_v18 = vld [vmem:[#allocation8 + $0x5a8] ss:$16 sps:$4 sm:$0xff]   ;;  %v4574_v60 = vld [vmem:[#allocation8 + $0x5c0] ss:$16 sps:$4 sm:$0xff]  }
 0x1db   :  { %2919 = vmatprep.subr.bf16.mxu0 %v4504_v16  ;;  %3091 = vmatprep.subr.bf16.mxu1 %v4507_v19  ;;  %v1203_v16 = vpack.c.bf16 %v1178_v7, %v1178_v7  ;;  %v4576_v19 = vld [vmem:[#allocation8 + $0x5c4] ss:$16 sps:$4 sm:$0xff]   ;;  %v4579_v20 = vld [vmem:[#allocation8 + $0x5cc] ss:$16 sps:$4 sm:$0xff]   ;;  %v4634_v7 = vld [vmem:[#allocation8 + $0x700] ss:$16 sps:$4 sm:$0xff]  }
 0x1dc   :  { %v1206_v21 = vpack.c.bf16 %v1190_v15, %v1190_v15  ;;  %v4645_v15 = vld [vmem:[#allocation8 + $0x72c] ss:$16 sps:$4 sm:$0xff]  }
 0x1de   :  { %2920 = vmatpush1.bf16.msra.mxu0 %v4502_v24  ;;  %3092 = vmatpush1.bf16.msra.mxu1 %v4505_v25  ;;  %v4577_v24 = vld [vmem:[#allocation8 + $0x5c8] ss:$16 sps:$4 sm:$0xff]   ;;  %v1236_v25 = vpack.i.b16 %v1203_v16, %v1203_v16  ;;  %v1257_v34 = vpack.i.b16 %v1206_v21, %v1206_v21  ;;  %v4648_v16 = vld [vmem:[#allocation8 + $0x744] ss:$16 sps:$4 sm:$0xff]  }
 0x1df   :  { %2921 = vmatprep.subr.bf16.mxu0 %v4510_v1  ;;  %3093 = vmatprep.subr.bf16.mxu1 %v4513_v28  ;;  %v4582_v1 = vld [vmem:[#allocation8 + $0x5e4] ss:$16 sps:$4 sm:$0xff]   ;;  %v4585_v28 = vld [vmem:[#allocation8 + $0x5ec] ss:$16 sps:$4 sm:$0xff]   ;;  %v4649_v21 = vld [vmem:[#allocation8 + $0x748] ss:$16 sps:$4 sm:$0xff]  }
 0x1e2   :  { %2922 = vmatpush1.bf16.msra.mxu0 %v4508_v30  ;;  %3094 = vmatpush1.bf16.msra.mxu1 %v4511_v32  ;;  %v4580_v30 = vld [vmem:[#allocation8 + $0x5e0] ss:$16 sps:$4 sm:$0xff]   ;;  %v4583_v32 = vld [vmem:[#allocation8 + $0x5e8] ss:$16 sps:$4 sm:$0xff]  }
 0x1e3   :  { %2923 = vmatprep.subr.bf16.mxu0 %v4516_v33  ;;  %3095 = vmatprep.subr.bf16.mxu1 %v4519_v35  ;;  %v1241_v33 = vrot.slane %v1236_v25, %v5058_v9  ;;  %v4588_v35 = vld [vmem:[#allocation8 + $0x604] ss:$16 sps:$4 sm:$0xff]   ;;  %v4652_v25 = vld [vmem:[#allocation8 + $0x760] ss:$16 sps:$4 sm:$0xff]  }
 0x1e6   :  { %2924 = vmatpush1.bf16.msra.mxu0 %v4514_v36  ;;  %3096 = vmatpush1.bf16.msra.mxu1 %v4517_v37  ;;  %v4591_v36 = vld [vmem:[#allocation8 + $0x60c] ss:$16 sps:$4 sm:$0xff]   ;;  %v1262_v37 = vrot.slane %v1257_v34, %v5058_v9 }
 0x1e7   :  { %2925 = vmatprep.subr.bf16.mxu0 %v4522_v38  ;;  %3097 = vmatprep.subr.bf16.mxu1 %v4525_v39  ;;  %v4586_v38 = vld [vmem:[#allocation8 + $0x600] ss:$16 sps:$4 sm:$0xff]   ;;  %v4589_v39 = vld [vmem:[#allocation8 + $0x608] ss:$16 sps:$4 sm:$0xff]   ;;  %v4663_v34 = vld [vmem:[#allocation8 + $0x78c] ss:$16 sps:$4 sm:$0xff]  }
 0x1ea   :  { %2926 = vmatpush1.bf16.msra.mxu0 %v4520_v40  ;;  %3098 = vmatpush1.bf16.msra.mxu1 %v4523_v41  ;;  %v1267_v40 = vadd.bf16 %v1241_v33, %v5113_v51  ;;  %v4594_v41 = vld [vmem:[#allocation8 + $0x624] ss:$16 sps:$4 sm:$0xff]   ;;  %v4598_v51 = vld [vmem:[#allocation8 + $0x640] ss:$16 sps:$4 sm:$0xff]   ;;  %v1186_v33 = vrot.slane %v5063_v10, %v281_v29  ;;  %v4681_v29 = vld [vmem:[#allocation8 + $0x7ec] ss:$16 sps:$4 sm:$0xff]  }
 0x1eb   :  { %2927 = vmatprep.subr.bf16.mxu0 %v4528_v42  ;;  %3099 = vmatprep.subr.bf16.mxu1 %v4531_v43  ;;  %v4597_v42 = vld [vmem:[#allocation8 + $0x62c] ss:$16 sps:$4 sm:$0xff]   ;;  %v1270_v43 = vadd.bf16 %v1262_v37, %v5119_v26  ;;  %v4664_v37 = vld [vmem:[#allocation8 + $0x7a0] ss:$16 sps:$4 sm:$0xff]   ;;  %v4678_v10 = vld [vmem:[#allocation8 + $0x7e4] ss:$16 sps:$4 sm:$0xff]  }
 0x1ec   :  { %v4609_v26 = vld [vmem:[#allocation8 + $0x66c] ss:$16 sps:$4 sm:$0xff]  }
 0x1ee   :  { %2928 = vmatpush1.bf16.msra.mxu0 %v4526_v44  ;;  %3100 = vmatpush1.bf16.msra.mxu1 %v4529_v45  ;;  %v4592_v44 = vld [vmem:[#allocation8 + $0x620] ss:$16 sps:$4 sm:$0xff]   ;;  %v4595_v45 = vld [vmem:[#allocation8 + $0x628] ss:$16 sps:$4 sm:$0xff]  }
 0x1ef   :  { %2929 = vmatprep.subr.bf16.mxu0 %v4534_v46  ;;  %3101 = vmatprep.subr.bf16.mxu1 %v4537_v47  ;;  %v4600_v46 = vld [vmem:[#allocation8 + $0x644] ss:$16 sps:$4 sm:$0xff]   ;;  %v4603_v47 = vld [vmem:[#allocation8 + $0x64c] ss:$16 sps:$4 sm:$0xff]  }
 0x1f2   :  { %2930 = vmatpush1.bf16.msra.mxu0 %v4532_v48  ;;  %3102 = vmatpush1.bf16.msra.mxu1 %v4535_v22  ;;  %v4601_v48 = vld [vmem:[#allocation8 + $0x648] ss:$16 sps:$4 sm:$0xff]   ;;  %v4606_v22 = vld [vmem:[#allocation8 + $0x664] ss:$16 sps:$4 sm:$0xff]  }
 0x1f3   :  { %2931 = vmatprep.subr.bf16.mxu0 %v4540_v49  ;;  %3103 = vmatprep.subr.bf16.mxu1 %v4543_v50  ;;  %v4604_v49 = vld [vmem:[#allocation8 + $0x660] ss:$16 sps:$4 sm:$0xff]   ;;  %v4607_v50 = vld [vmem:[#allocation8 + $0x668] ss:$16 sps:$4 sm:$0xff]  }
 0x1f6   :  { %2932 = vmatpush1.bf16.msra.mxu0 %v4538_v52  ;;  %3104 = vmatpush1.bf16.msra.mxu1 %v4541_v53  ;;  %v4612_v52 = vld [vmem:[#allocation8 + $0x684] ss:$16 sps:$4 sm:$0xff]   ;;  %v4615_v53 = vld [vmem:[#allocation8 + $0x68c] ss:$16 sps:$4 sm:$0xff]  }
 0x1f7   :  { %2933 = vmatprep.subr.bf16.mxu0 %v4546_v54  ;;  %3105 = vmatprep.subr.bf16.mxu1 %v4549_v55  ;;  %v4610_v54 = vld [vmem:[#allocation8 + $0x680] ss:$16 sps:$4 sm:$0xff]   ;;  %v4613_v55 = vld [vmem:[#allocation8 + $0x688] ss:$16 sps:$4 sm:$0xff]  }
 0x1fa   :  { %2934 = vmatpush1.bf16.msra.mxu0 %v4544_v56  ;;  %3106 = vmatpush1.bf16.msra.mxu1 %v4547_v57  ;;  %v4618_v56 = vld [vmem:[#allocation8 + $0x6a4] ss:$16 sps:$4 sm:$0xff]   ;;  %v4621_v57 = vld [vmem:[#allocation8 + $0x6ac] ss:$16 sps:$4 sm:$0xff]  }
 0x1fb   :  { %2935 = vmatprep.subr.bf16.mxu0 %v4552_v58  ;;  %3107 = vmatprep.subr.bf16.mxu1 %v4555_v59  ;;  %v4616_v58 = vld [vmem:[#allocation8 + $0x6a0] ss:$16 sps:$4 sm:$0xff]   ;;  %v4619_v59 = vld [vmem:[#allocation8 + $0x6a8] ss:$16 sps:$4 sm:$0xff]  }
 0x1fe   :  { %2936 = vmatpush1.bf16.msra.mxu0 %v4550_v11  ;;  %3108 = vmatpush1.bf16.msra.mxu1 %v4553_v61  ;;  %v4624_v11 = vld [vmem:[#allocation8 + $0x6c4] ss:$16 sps:$4 sm:$0xff]   ;;  %v4627_v61 = vld [vmem:[#allocation8 + $0x6cc] ss:$16 sps:$4 sm:$0xff]  }
 0x1ff   :  { %2937 = vmatprep.subr.bf16.mxu0 %v4558_v62  ;;  %3109 = vmatprep.subr.bf16.mxu1 %v4561_v63  ;;  %v4622_v62 = vld [vmem:[#allocation8 + $0x6c0] ss:$16 sps:$4 sm:$0xff]   ;;  %v4625_v63 = vld [vmem:[#allocation8 + $0x6c8] ss:$16 sps:$4 sm:$0xff]  }
 0x202   :  { %2938 = vmatpush1.bf16.msra.mxu0 %v4556_v0  ;;  %3110 = vmatpush1.bf16.msra.mxu1 %v4559_v2  ;;  %v4630_v0 = vld [vmem:[#allocation8 + $0x6e4] ss:$16 sps:$4 sm:$0xff]   ;;  %v4633_v2 = vld [vmem:[#allocation8 + $0x6ec] ss:$16 sps:$4 sm:$0xff]  }
 0x203   :  { %2939 = vmatprep.subr.bf16.mxu0 %v4564_v3  ;;  %3111 = vmatprep.subr.bf16.mxu1 %v4567_v4  ;;  %v4628_v3 = vld [vmem:[#allocation8 + $0x6e0] ss:$16 sps:$4 sm:$0xff]   ;;  %v4631_v4 = vld [vmem:[#allocation8 + $0x6e8] ss:$16 sps:$4 sm:$0xff]  }
 0x206   :  { %2940 = vmatpush1.bf16.msra.mxu0 %v4562_v5  ;;  %3112 = vmatpush1.bf16.msra.mxu1 %v4565_v6  ;;  %v4636_v5 = vld [vmem:[#allocation8 + $0x704] ss:$16 sps:$4 sm:$0xff]   ;;  %v4639_v6 = vld [vmem:[#allocation8 + $0x70c] ss:$16 sps:$4 sm:$0xff]  }
 0x207   :  { %2941 = vmatprep.subr.bf16.mxu0 %v4570_v13  ;;  %3113 = vmatprep.subr.bf16.mxu1 %v4573_v14  ;;  %v4637_v13 = vld [vmem:[#allocation8 + $0x708] ss:$16 sps:$4 sm:$0xff]   ;;  %v4642_v14 = vld [vmem:[#allocation8 + $0x724] ss:$16 sps:$4 sm:$0xff]  }
 0x20a   :  { %2942 = vmatpush1.bf16.msra.mxu0 %v4568_v17  ;;  %3114 = vmatpush1.bf16.msra.mxu1 %v4571_v18  ;;  %v4640_v17 = vld [vmem:[#allocation8 + $0x720] ss:$16 sps:$4 sm:$0xff]   ;;  %v4643_v18 = vld [vmem:[#allocation8 + $0x728] ss:$16 sps:$4 sm:$0xff]  }
 0x20b   :  { %2943 = vmatprep.subr.bf16.mxu0 %v4576_v19  ;;  %3115 = vmatprep.subr.bf16.mxu1 %v4579_v20  ;;  %v4651_v19 = vld [vmem:[#allocation8 + $0x74c] ss:$16 sps:$4 sm:$0xff]   ;;  %v4646_v20 = vld [vmem:[#allocation8 + $0x740] ss:$16 sps:$4 sm:$0xff]  }
 0x20e   :  { %2944 = vmatpush1.bf16.msra.mxu0 %v4574_v60  ;;  %3116 = vmatpush1.bf16.msra.mxu1 %v4577_v24  ;;  %v4654_v60 = vld [vmem:[#allocation8 + $0x764] ss:$16 sps:$4 sm:$0xff]   ;;  %v4657_v24 = vld [vmem:[#allocation8 + $0x76c] ss:$16 sps:$4 sm:$0xff]  }
 0x20f   :  { %2945 = vmatprep.subr.bf16.mxu0 %v4582_v1  ;;  %3117 = vmatprep.subr.bf16.mxu1 %v4585_v28  ;;  %v4655_v1 = vld [vmem:[#allocation8 + $0x768] ss:$16 sps:$4 sm:$0xff]   ;;  %v4660_v28 = vld [vmem:[#allocation8 + $0x784] ss:$16 sps:$4 sm:$0xff]  }
 0x212   :  { %2946 = vmatpush1.bf16.msra.mxu0 %v4580_v30  ;;  %3118 = vmatpush1.bf16.msra.mxu1 %v4583_v32  ;;  %v4658_v30 = vld [vmem:[#allocation8 + $0x780] ss:$16 sps:$4 sm:$0xff]   ;;  %v4661_v32 = vld [vmem:[#allocation8 + $0x788] ss:$16 sps:$4 sm:$0xff]  }
 0x213   :  { %2958 = vmatprep.subr.bf16.mxu0 %v4588_v35  ;;  %3130 = vmatprep.subr.bf16.mxu1 %v4591_v36  ;;  %v4666_v35 = vld [vmem:[#allocation8 + $0x7a4] ss:$16 sps:$4 sm:$0xff]   ;;  %v4669_v36 = vld [vmem:[#allocation8 + $0x7ac] ss:$16 sps:$4 sm:$0xff]  }
 0x215   :  { %2948 = vmatmul.mubr.bf16.vlgmr.msra.gmra.mrb[8].mxu0 %v1267_v40  ;;  %3120 = vmatmul.mubr.bf16.vlgmr.msra.gmra.mrb[8].mxu1 %v1267_v40  ;;  %v4672_v40 = vld [vmem:[#allocation8 + $0x7c4] ss:$16 sps:$4 sm:$0xff]  }
 0x216   :  { %2959 = vmatpush1.bf16.msra.mxu0 %v4586_v38  ;;  %3131 = vmatpush1.bf16.msra.mxu1 %v4589_v39  ;;  %v4667_v38 = vld [vmem:[#allocation8 + $0x7a8] ss:$16 sps:$4 sm:$0xff]   ;;  %v1205_v39 = vpack.c.bf16 %v1186_v33, %v1186_v33 }
 0x217   :  { %2960 = vmatprep.subr.bf16.mxu0 %v4594_v41  ;;  %3132 = vmatprep.subr.bf16.mxu1 %v4597_v42  ;;  %v4675_v41 = vld [vmem:[#allocation8 + $0x7cc] ss:$16 sps:$4 sm:$0xff]   ;;  %v4670_v42 = vld [vmem:[#allocation8 + $0x7c0] ss:$16 sps:$4 sm:$0xff]  }
 0x218   :  { %2990 = vmatprep.mubr.bf16.mxu0 %v1270_v43  ;;  %3162 = vmatprep.mubr.bf16.mxu1 %v1270_v43  ;;  %v4673_v43 = vld [vmem:[#allocation8 + $0x7c8] ss:$16 sps:$4 sm:$0xff]   ;;  %v1250_v8 = vpack.i.b16 %v1205_v39, %v1205_v39 }
 0x21a   :  { %2961 = vmatpush1.bf16.msra.mxu0 %v4592_v44  ;;  %3133 = vmatpush1.bf16.msra.mxu1 %v4595_v45  ;;  %v4676_v44 = vld [vmem:[#allocation8 + $0x7e0] ss:$16 sps:$4 sm:$0xff]   ;;  %v4679_v45 = vld [vmem:[#allocation8 + $0x7e8] ss:$16 sps:$4 sm:$0xff]  }
 0x21b   :  { %2962 = vmatprep.subr.bf16.mxu0 %v4600_v46  ;;  %3134 = vmatprep.subr.bf16.mxu1 %v4603_v47  ;;  %v1255_v46 = vrot.slane %v1250_v8, %v5058_v9  ;;  %v4682_v47 = vld [vmem:[#allocation10 + $0x40] sm:$0xff]  }
 0x21e   :  { %2963 = vmatpush1.bf16.msra.mxu0 %v4598_v51  ;;  %3135 = vmatpush1.bf16.msra.mxu1 %v4601_v48  ;;  %v4683_v51 = vld [vmem:[#allocation10 + $0xc0] sm:$0xff]  }
 0x21f   :  { %2964 = vmatprep.subr.bf16.mxu0 %v4606_v22  ;;  %3136 = vmatprep.subr.bf16.mxu1 %v4609_v26  ;;  %v4684_v48 = vld [vmem:[#allocation10] sm:$0xff]   ;;  %v1269_v26 = vadd.bf16 %v1255_v46, %v5117_v23  ;;  %v4694_v23 = vld [vmem:[#allocation10 + $0x58] sm:$0xff]  }
 0x220   :  { %v4685_v22 = vld [vmem:[#allocation10 + $0x80] sm:$0xff]  }
 0x222   :  { %2965 = vmatpush1.bf16.msra.mxu0 %v4604_v49  ;;  %3137 = vmatpush1.bf16.msra.mxu1 %v4607_v50  ;;  %v4686_v49 = vld [vmem:[#allocation10 + $0x48] sm:$0xff]  }
 0x223   :  { %2966 = vmatprep.subr.bf16.mxu0 %v4612_v52  ;;  %3138 = vmatprep.subr.bf16.mxu1 %v4615_v53  ;;  %v4687_v50 = vld [vmem:[#allocation10 + $0xc8] sm:$0xff]  }
 0x224   :  { %v4688_v52 = vld [vmem:[#allocation10 + $0x8] sm:$0xff]  }
 0x225   :  { %v4689_v53 = vld [vmem:[#allocation10 + $0x88] sm:$0xff]  }
 0x226   :  { %2967 = vmatpush1.bf16.msra.mxu0 %v4610_v54  ;;  %3139 = vmatpush1.bf16.msra.mxu1 %v4613_v55  ;;  %v4690_v54 = vld [vmem:[#allocation10 + $0x50] sm:$0xff]  }
 0x227   :  { %2968 = vmatprep.subr.bf16.mxu0 %v4618_v56  ;;  %3140 = vmatprep.subr.bf16.mxu1 %v4621_v57  ;;  %v4691_v55 = vld [vmem:[#allocation10 + $0xd0] sm:$0xff]  }
 0x228   :  { %v4692_v56 = vld [vmem:[#allocation10 + $0x10] sm:$0xff]  }
 0x229   :  { %v4693_v57 = vld [vmem:[#allocation10 + $0x90] sm:$0xff]  }
 0x22a   :  { %2969 = vmatpush1.bf16.msra.mxu0 %v4616_v58  ;;  %3141 = vmatpush1.bf16.msra.mxu1 %v4619_v59  ;;  %v4695_v58 = vld [vmem:[#allocation10 + $0xd8] sm:$0xff]  }
 0x22b   :  { %2970 = vmatprep.subr.bf16.mxu0 %v4624_v11  ;;  %3142 = vmatprep.subr.bf16.mxu1 %v4627_v61  ;;  %v4696_v59 = vld [vmem:[#allocation10 + $0x18] sm:$0xff]   ;;  %v4698_v61 = vld [vmem:[#allocation10 + $0x60] sm:$0xff]  }
 0x22c   :  { %v4697_v11 = vld [vmem:[#allocation10 + $0x98] sm:$0xff]  }
 0x22e   :  { %2971 = vmatpush1.bf16.msra.mxu0 %v4622_v62  ;;  %3143 = vmatpush1.bf16.msra.mxu1 %v4625_v63  ;;  %v4699_v62 = vld [vmem:[#allocation10 + $0xe0] sm:$0xff]  }
 0x22f   :  { %2972 = vmatprep.subr.bf16.mxu0 %v4630_v0  ;;  %3144 = vmatprep.subr.bf16.mxu1 %v4633_v2  ;;  %v4700_v63 = vld [vmem:[#allocation10 + $0x20] sm:$0xff]   ;;  %v4702_v2 = vld [vmem:[#allocation10 + $0x68] sm:$0xff]  }
 0x230   :  { %v4701_v0 = vld [vmem:[#allocation10 + $0xa0] sm:$0xff]  }
 0x232   :  { %2973 = vmatpush1.bf16.msra.mxu0 %v4628_v3  ;;  %3145 = vmatpush1.bf16.msra.mxu1 %v4631_v4  ;;  %v4703_v3 = vld [vmem:[#allocation10 + $0xe8] sm:$0xff]  }
 0x233   :  { %2974 = vmatprep.subr.bf16.mxu0 %v4636_v5  ;;  %3146 = vmatprep.subr.bf16.mxu1 %v4639_v6  ;;  %v4704_v4 = vld [vmem:[#allocation10 + $0x28] sm:$0xff]   ;;  %v4706_v6 = vld [vmem:[#allocation10 + $0x70] sm:$0xff]  }
 0x234   :  { %v4705_v5 = vld [vmem:[#allocation10 + $0xa8] sm:$0xff]  }
 0x236   :  { %2975 = vmatpush1.bf16.msra.mxu0 %v4634_v7  ;;  %3147 = vmatpush1.bf16.msra.mxu1 %v4637_v13  ;;  %v4707_v7 = vld [vmem:[#allocation10 + $0xf0] sm:$0xff]  }
 0x237   :  { %2976 = vmatprep.subr.bf16.mxu0 %v4642_v14  ;;  %3148 = vmatprep.subr.bf16.mxu1 %v4645_v15  ;;  %v4708_v13 = vld [vmem:[#allocation10 + $0x30] sm:$0xff]   ;;  %v4710_v15 = vld [vmem:[#allocation10 + $0x78] sm:$0xff]  }
 0x238   :  { %v4709_v14 = vld [vmem:[#allocation10 + $0xb0] sm:$0xff]  }
 0x23a   :  { %2977 = vmatpush1.bf16.msra.mxu0 %v4640_v17  ;;  %3149 = vmatpush1.bf16.msra.mxu1 %v4643_v18  ;;  %v4711_v17 = vld [vmem:[#allocation10 + $0xf8] sm:$0xff]  }
 0x23b   :  { %2978 = vmatprep.subr.bf16.mxu0 %v4648_v16  ;;  %3150 = vmatprep.subr.bf16.mxu1 %v4651_v19  ;;  %v4712_v18 = vld [vmem:[#allocation10 + $0x38] sm:$0xff]   ;;  %v4900_v19 = vmov 0.0  }
 0x23c   :  { %v4713_v16 = vld [vmem:[#allocation10 + $0xb8] sm:$0xff]  }
 0x23e   :  { %2979 = vmatpush1.bf16.msra.mxu0 %v4646_v20  ;;  %3151 = vmatpush1.bf16.msra.mxu1 %v4649_v21  ;;  %v3193_v20 = vld [vmem:[%s5194_s6] sm:$0xf] }
 0x23f   :  { %2980 = vmatprep.subr.bf16.mxu0 %v4654_v60  ;;  %3152 = vmatprep.subr.bf16.mxu1 %v4657_v24  ;;  %v1527_v21 = vld [vmem:[%s5193_s5] sm:$0xf]  ;;  %v3202_v60 = vrot.slane %v3193_v20, %v5068_v12  ;;  %v3210_v24 = vrot.slane %v3193_v20, %v5082_v31 }
 0x241   :  { %v3216_v33 = vpack.c.bf16 %v3202_v60, %v3202_v60  ;;  %v4716_v60 = vld [vmem:[#allocation11 + $0x10] sm:$0xff]  }
 0x242   :  { %2981 = vmatpush1.bf16.msra.mxu0 %v4652_v25  ;;  %3153 = vmatpush1.bf16.msra.mxu1 %v4655_v1  ;;  %v1532_v25 = vrot.slane %v1527_v21, %v5058_v9  ;;  %v1540_v1 = vrot.slane %v1527_v21, %v5079_v27 }
 0x243   :  { %2982 = vmatprep.subr.bf16.mxu0 %v4660_v28  ;;  %3154 = vmatprep.subr.bf16.mxu1 %v4663_v34  ;;  %v3198_v28 = vrot.slane %v3193_v20, %v5058_v9  ;;  %v3206_v34 = vrot.slane %v3193_v20, %v5079_v27 }
 0x246   :  { %2983 = vmatpush1.bf16.msra.mxu0 %v4658_v30  ;;  %3155 = vmatpush1.bf16.msra.mxu1 %v4661_v32  ;;  %v1536_v30 = vrot.slane %v1527_v21, %v5068_v12  ;;  %v1544_v32 = vrot.slane %v1527_v21, %v5082_v31  ;;  %v4715_v21 = vld [vmem:[#allocation11 + $0x8] sm:$0xff]  }
 0x247   :  { %2984 = vmatprep.subr.bf16.mxu0 %v4666_v35  ;;  %3156 = vmatprep.subr.bf16.mxu1 %v4669_v36  ;;  %v3218_v35 = vpack.c.bf16 %v3210_v24, %v3210_v24  ;;  %v4717_v24 = vld [vmem:[#allocation11 + $0x18] sm:$0xff]  }
 0x249   :  { %v3241_v27 = vpack.i.b16 %v3218_v35, %v3218_v35 }
 0x24a   :  { %2985 = vmatpush1.bf16.msra.mxu0 %v4664_v37  ;;  %3157 = vmatpush1.bf16.msra.mxu1 %v4667_v38 }
 0x24b   :  { %2986 = vmatprep.subr.bf16.mxu0 %v4672_v40  ;;  %3158 = vmatprep.subr.bf16.mxu1 %v4675_v41 }
 0x24e   :  { %2987 = vmatpush1.bf16.msra.mxu0 %v4670_v42  ;;  %3159 = vmatpush1.bf16.msra.mxu1 %v4673_v43  ;;  %v3215_v42 = vpack.c.bf16 %v3198_v28, %v3198_v28  ;;  %v3217_v43 = vpack.c.bf16 %v3206_v34, %v3206_v34  ;;  %v4720_v28 = vld [vmem:[#allocation11 + $0x30] sm:$0xff]   ;;  %v4721_v34 = vld [vmem:[#allocation11 + $0x38] sm:$0xff]  }
 0x24f   :  { %2988 = vmatprep.subr.bf16.mxu0 %v4678_v10  ;;  %3160 = vmatprep.subr.bf16.mxu1 %v4681_v29 }
 0x252   :  { %2989 = vmatpush1.bf16.msra.mxu0 %v4676_v44  ;;  %3161 = vmatpush1.bf16.msra.mxu1 %v4679_v45  ;;  %v3227_v45 = vpack.i.b16 %v3216_v33, %v3216_v33  ;;  %v4131_v33 = vld [vmem:[%s5196_s8] ss:$0 sm:$0xff] }
 0x253   :  { %4173 = vmatprep.subr.bf16.mxu0 %v4682_v47  ;;  %4195 = vmatprep.subr.bf16.mxu1 %v4683_v51 }
 0x255   :  { %2991 = vmatmul.mubr.bf16.vlgmr.msra.gmra.mrb[8].mxu0 %v1269_v26  ;;  %3163 = vmatmul.mubr.bf16.vlgmr.msra.gmra.mrb[8].mxu1 %v1269_v26 }
 0x256   :  { %4174 = vmatpush3.bf16.msra.mxu0 %v4684_v48  ;;  %4196 = vmatpush3.bf16.msra.mxu1 %v4685_v22 }
 0x257   :  { %4175 = vmatprep.subr.bf16.mxu0 %v4686_v49  ;;  %4197 = vmatprep.subr.bf16.mxu1 %v4687_v50 }
 0x25a   :  { %4176 = vmatpush3.bf16.msra.mxu0 %v4688_v52  ;;  %4198 = vmatpush3.bf16.msra.mxu1 %v4689_v53  ;;  %v3220_v53 = vpack.i.b16 %v3215_v42, %v3215_v42 }
 0x25b   :  { %4177 = vmatprep.subr.bf16.mxu0 %v4690_v54  ;;  %4199 = vmatprep.subr.bf16.mxu1 %v4691_v55  ;;  %v3234_v55 = vpack.i.b16 %v3217_v43, %v3217_v43 }
 0x25e   :  { %4178 = vmatpush3.bf16.msra.mxu0 %v4692_v56  ;;  %4200 = vmatpush3.bf16.msra.mxu1 %v4693_v57 }
 0x25f   :  { %4179 = vmatprep.subr.bf16.mxu0 %v4694_v23  ;;  %4201 = vmatprep.subr.bf16.mxu1 %v4695_v58  ;;  %v3232_v23 = vrot.slane %v3227_v45, %v5058_v9  ;;  %v3246_v58 = vrot.slane %v3241_v27, %v5058_v9 }
 0x262   :  { %4180 = vmatpush3.bf16.msra.mxu0 %v4696_v59  ;;  %4202 = vmatpush3.bf16.msra.mxu1 %v4697_v11 }
 0x263   :  { %4181 = vmatprep.subr.bf16.mxu0 %v4698_v61  ;;  %4203 = vmatprep.subr.bf16.mxu1 %v4699_v62 }
 0x266   :  { %4182 = vmatpush3.bf16.msra.mxu0 %v4700_v63  ;;  %4204 = vmatpush3.bf16.msra.mxu1 %v4701_v0 }
 0x267   :  { %4183 = vmatprep.subr.bf16.mxu0 %v4702_v2  ;;  %4205 = vmatprep.subr.bf16.mxu1 %v4703_v3 }
 0x26a   :  { %4184 = vmatpush3.bf16.msra.mxu0 %v4704_v4  ;;  %4206 = vmatpush3.bf16.msra.mxu1 %v4705_v5  ;;  %v3225_v5 = vrot.slane %v3220_v53, %v5058_v9 }
 0x26b   :  { %4185 = vmatprep.subr.bf16.mxu0 %v4706_v6  ;;  %4207 = vmatprep.subr.bf16.mxu1 %v4707_v7  ;;  %v3239_v7 = vrot.slane %v3234_v55, %v5058_v9 }
 0x26e   :  { %4186 = vmatpush3.bf16.msra.mxu0 %v4708_v13  ;;  %4208 = vmatpush3.bf16.msra.mxu1 %v4709_v14 }
 0x26f   :  { %4187 = vmatprep.subr.bf16.mxu0 %v4710_v15  ;;  %4209 = vmatprep.subr.bf16.mxu1 %v4711_v17 }
 0x272   :  { %4188 = vmatpush3.bf16.msra.mxu0 %v4712_v18  ;;  %4210 = vmatpush3.bf16.msra.mxu1 %v4713_v16  ;;  %v4714_v18 = vld [vmem:[#allocation11] sm:$0xff]  }
 0x273   :  { %4226 = vmatprep.subr.bf16.mxu0 %v4900_v19 }
 0x328   :  { %v2992_v36 = vpop.f32.mrb[8].mxu0  ;;  %v3164_v37 = vpop.f32.mrb[8].mxu1 }
 0x329   :  { %v4246_v38 = vadd.f32 %v2992_v36, %v1532_v25  ;;  %v4250_v39 = vadd.f32 %v3164_v37, %v1540_v1  ;;  %v2994_v40 = vpop.f32.mrb[9].mxu0  ;;  %v3166_v41 = vpop.f32.mrb[9].mxu1  ;;  %v3601_v37 = vld [vmem:[%s5197_s9] sm:$0x1] }
 0x32a   :  { %v4247_v8 = vadd.f32 %v2994_v40, %v1536_v30  ;;  %v4251_v10 = vadd.f32 %v3166_v41, %v1544_v32  ;;  %v2996_v29 = vpop.f32.mrb[10].mxu0  ;;  %v3168_v44 = vpop.f32.mrb[10].mxu1 }
 0x32b   :  { %v3173_v46 = vmul.f32 0.01, %v4246_v38  ;;  %v3175_v12 = vmul.f32 0.01, %v4250_v39  ;;  %v4248_v47 = vadd.f32 %v2996_v29, %v1532_v25  ;;  %v4252_v31 = vadd.f32 %v3168_v44, %v1540_v1  ;;  %v2998_v51 = vpop.f32.mrb[11].mxu0  ;;  %v3170_v48 = vpop.f32.mrb[11].mxu1 }
 0x32c   :  { %v3174_v22 = vmul.f32 0.01, %v4247_v8  ;;  %v3176_v26 = vmul.f32 0.01, %v4251_v10  ;;  %v4249_v49 = vadd.f32 %v2998_v51, %v1536_v30  ;;  %v4253_v50 = vadd.f32 %v3170_v48, %v1544_v32  ;;  %v4718_v25 = vld [vmem:[#allocation11 + $0x20] sm:$0xff]   ;;  %v4719_v1 = vld [vmem:[#allocation11 + $0x28] sm:$0xff]  }
 0x32d   :  { %v3177_v52 = vmul.f32 0.01, %v4248_v47  ;;  %v3179_v54 = vmul.f32 0.01, %v4252_v31  ;;  %v3181_v59 = vmax.f32 %v4246_v38, %v3173_v46  ;;  %v3183_v11 = vmax.f32 %v4250_v39, %v3175_v12 }
 0x32e   :  { %v3178_v56 = vmul.f32 0.01, %v4249_v49  ;;  %v3180_v57 = vmul.f32 0.01, %v4253_v50  ;;  %v3182_v63 = vmax.f32 %v4247_v8, %v3174_v22  ;;  %v3184_v0 = vmax.f32 %v4251_v10, %v3176_v26 }
 0x32f   :  { %v3185_v61 = vmax.f32 %v4248_v47, %v3177_v52  ;;  %v3187_v62 = vmax.f32 %v4252_v31, %v3179_v54  ;;  %v3602_v29 = vpack.c.bf16 %v3601_v37, %v3601_v37 }
 0x330   :  { %v3186_v2 = vmax.f32 %v4249_v49, %v3178_v56  ;;  %v3188_v3 = vmax.f32 %v4253_v50, %v3180_v57  ;;  %v4164_v49 = vld [vmem:[%s5199_s11] ss:$0 sm:$0xff] }
 0x331   :  { %v3189_v4 = vpack.c.bf16 %v3185_v61, %v3181_v59  ;;  %v3191_v6 = vpack.c.bf16 %v3187_v62, %v3183_v11  ;;  %v3604_v12 = vpack.i.b16 %v3602_v29, %v3602_v29 }
 0x332   :  { %v3190_v13 = vpack.c.bf16 %v3186_v2, %v3182_v63  ;;  %v3192_v14 = vpack.c.bf16 %v3188_v3, %v3184_v0 }
 0x333   :  { %v3247_v16 = vadd.bf16 %v3225_v5, %v3189_v4  ;;  %v3249_v20 = vadd.bf16 %v3239_v7, %v3191_v6  ;;  %v3609_v48 = vrot.slane %v3604_v12, %v5058_v9 }
 0x334   :  { %v3248_v15 = vadd.bf16 %v3232_v23, %v3190_v13  ;;  %v3250_v17 = vadd.bf16 %v3246_v58, %v3192_v14 }
 0x336   :  { %3546 = vmatprep.mubr.bf16.mxu0 %v3248_v15  ;;  %3587 = vmatprep.mubr.bf16.mxu1 %v3250_v17 }
 0x337   :  { %3547 = vmatmul.mubr.bf16.vlgmr.msra.gmra.mrb[12].mxu0 %v3247_v16  ;;  %3588 = vmatmul.mubr.bf16.vlgmr.msra.gmra.mrb[12].mxu1 %v3249_v20 }
 0x338   :  { %4227 = vmatpush3.bf16.msra.mxu0 %v4714_v18  ;;  %4242 = vmatprep.mubr.msk.bf16.mxu0 %vm4901_vm0, %v4900_v19 }
 0x339   :  { %4228 = vmatprep.subr.bf16.mxu0 %v4900_v19 }
 0x33c   :  { %4229 = vmatpush3.bf16.msra.mxu0 %v4715_v21 }
 0x33d   :  { %4230 = vmatprep.subr.bf16.mxu0 %v4900_v19 }
 0x340   :  { %4231 = vmatpush3.bf16.msra.mxu0 %v4716_v60 }
 0x341   :  { %4232 = vmatprep.subr.bf16.mxu0 %v4900_v19 }
 0x344   :  { %4233 = vmatpush3.bf16.msra.mxu0 %v4717_v24 }
 0x345   :  { %4234 = vmatprep.subr.bf16.mxu0 %v4900_v19 }
 0x348   :  { %4235 = vmatpush3.bf16.msra.mxu0 %v4718_v25 }
 0x349   :  { %4236 = vmatprep.subr.bf16.mxu0 %v4900_v19 }
 0x34c   :  { %4237 = vmatpush3.bf16.msra.mxu0 %v4719_v1 }
 0x34d   :  { %4238 = vmatprep.subr.bf16.mxu0 %v4900_v19 }
 0x350   :  { %4239 = vmatpush3.bf16.msra.mxu0 %v4720_v28 }
 0x351   :  { %4240 = vmatprep.subr.bf16.mxu0 %v4900_v19 }
 0x354   :  { %4241 = vmatpush3.bf16.msra.mxu0 %v4721_v34 }
 0x40a   :  { %v4189_v30 = vpop.f32.mrb[12].mxu0  ;;  %v4211_v32 = vpop.f32.mrb[12].mxu1 }
 0x40b   :  { %v4190_v35 = vpop.f32.mrb[13].mxu0  ;;  %v4212_v36 = vpop.f32.mrb[13].mxu1 }
 0x40c   :  { %v4191_v38 = vadd.f32 %v4190_v35, %v4189_v30  ;;  %v4213_v39 = vadd.f32 %v4212_v36, %v4211_v32  ;;  %v4192_v40 = vpop.f32.mrb[14].mxu0  ;;  %v4214_v41 = vpop.f32.mrb[14].mxu1 }
 0x40d   :  { %v4193_v42 = vpop.f32.mrb[15].mxu0  ;;  %v4215_v43 = vpop.f32.mrb[15].mxu1 }
 0x40e   :  { %v3549_v8 = vadd.f32 %v4191_v38, %v4131_v33  ;;  %v4194_v19 = vadd.f32 %v4193_v42, %v4192_v40  ;;  %v4216_v10 = vadd.f32 %v4215_v43, %v4214_v41 }
 0x410   :  { %v3590_v44 = vadd.f32 %v4213_v39, %v3549_v8  ;;  %v3552_v45 = vadd.f32 %v4194_v19, %v4131_v33 }
 0x412   :  { %v3596_v27 = vmul.f32 0.01, %v3590_v44  ;;  %v3593_v46 = vadd.f32 %v4216_v10, %v3552_v45 }
 0x414   :  { %v3597_v47 = vmul.f32 0.01, %v3593_v46  ;;  %v3598_v31 = vmax.f32 %v3590_v44, %v3596_v27 }
 0x416   :  { %v3599_v51 = vmax.f32 %v3593_v46, %v3597_v47 }
 0x418   :  { %v3600_v22 = vpack.c.bf16 %v3599_v51, %v3598_v31 }
 0x41a   :  { %v3610_v26 = vadd.bf16 %v3609_v48, %v3600_v22 }
 0x41c   :  { %4243 = vmatmul.mubr.bf16.vlgmr.msra.gmra.mrb[16].mxu0 %v3610_v26 }
 0x4ef   :  { %v3716_v50 = vpop.f32.mrb[16].mxu0 }
 0x4f0   :  { %v3717_v52 = vadd.f32 %v4164_v49, %v3716_v50  ;;  %v4244_v53 = vpop.f32.mrb[17].mxu0 }
 0x4f1   :  { %v3719_v54 = vpop.f32.mrb[18].mxu0 }
 0x4f2   :  { %3723 = vst [vmem:[#allocation13] sm:$0xff] %v3717_v52  ;;  %v3720_v55 = vadd.f32 %v4164_v49, %v3719_v54  ;;  %v4245_v56 = vpop.f32.mrb[19].mxu0 }
 0x4f4   :  { %3724 = vst [vmem:[#allocation13 + $0x8] sm:$0xff] %v3720_v55 }
 0x4f5   :  { %4865 = shalt.err (!%p4862_p10)
}
 0x4f6   :  { %s4866_s15 = scalar_lea.hbm %s5200_s12, 256 }
 0x4f7   :  { %p4867_p11 = scmp.ne.s32.totalorder %s5200_s12, %s4866_s15  ;;  %p4870_p12 = scmp.lt.u32.totalorder %s4866_s15, %s5200_s12 }
 0x4f9   :  { %p4872_p13 = pnand %p4870_p12, %p4867_p11 }
 0x4fb   :  { %4875 = shalt.err (!%p4872_p13)
}
 0x4fc   :  { %3736 = dma.vmem_to_hbm [thread:$0]  %s3731_s29, 256, %s5200_s12, [#allocation4], %s4893_s4, %s4893_s4, %s4894_s18  }
 0x4fd   :  { %4884 = dma.done.wait [#allocation4], 256  }
 0x4fe   :  { %4885 = vsyncadd [#allocation4], 4294967040 }
 0x4ff   :  { %3740 = vsyncpa [#allocation3], 1 }
 0x500   :  { %3741 = vsyncpa [#allocation6], 1 }
 0x501   :  { %3742 = vsyncpa [#allocation9], 1 }
 0x502   :  { %3743 = vsyncpa [#allocation12], 1 }
 0x503   :  { %3744 = vsyncpa [#allocation4], 1 }

</bundles_post_ra>
